<compile_context>
chip_gen: v7x
topology: tpu7x:2x2x1
jax: 0.10.0
libtpu: 0.0.40
codegen_flags: <defaults>
</compile_context>

<pallas_src>
import functools

import jax
import jax.numpy as jnp
from jax.experimental import pallas as pl
from jax.experimental.pallas import tpu as pltpu

_NEG = -1e30  # bias for padded vocab columns -> excluded from the logsumexp


def _round_up(x, m):
    return (x + m - 1) // m * m


def _pick_row_tile(m):
    # m is always a multiple of 8 (batch padded to a sublane multiple).
    if m <= 512:
        return m
    for t in (512, 256, 128, 64, 32, 16, 8):   # prefer >=256 rows for the 256x256 MXU
        if m % t == 0:
            return t
    return m


def _pick_col_tile(n):
    # n is a multiple of 128 (lane-aligned); keep output blocks lane-dense.
    for t in (2048, 1024, 512, 256, 128):
        if n % t == 0:
            return t
    return n


def _pick_time_block(s, cap=8):
    # Largest divisor of s <= cap; the inner loop over these steps is fully unrolled.
    for t in range(min(s, cap), 0, -1):
        if s % t == 0:
            return t
    return 1


# ---------------------------------------------------------------------------
# Single-buffering probe: pl.Buffered(1) on never-changing blocks halves their
# resident VMEM (biggest win on v7x 64 MiB / v5e 16 MiB scoped). Fall back to the
# default double buffering if this Pallas build rejects buffer_count=1.
# ---------------------------------------------------------------------------
@functools.cache
def _single_buffer_ok():
    try:
        def _k(x_ref, o_ref):
            o_ref[...] = x_ref[...]
        x = jnp.zeros((8, 128), jnp.float32)
        jax.block_until_ready(pl.pallas_call(
            _k,
            out_shape=jax.ShapeDtypeStruct((8, 128), jnp.float32),
            grid=(2,),
            in_specs=[pl.BlockSpec((8, 128), lambda i: (0, 0),
                                   pipeline_mode=pl.Buffered(1))],
            out_specs=pl.BlockSpec((8, 128), lambda i: (0, 0)),
        )(x))
        return True
    except Exception:
        return False


def _resident_spec(block_shape, index_map):
    """BlockSpec for a block that stays resident across the inner (time/vocab) axis."""
    if _single_buffer_ok():
        return pl.BlockSpec(block_shape, index_map, pipeline_mode=pl.Buffered(1))
    return pl.BlockSpec(block_shape, index_map)


# ---------------------------------------------------------------------------
# Kernel 1: hoisted input projection  X_gates = X @ W_ih^T + (b_ih + b_hh)
# One large (S·Bp, Hp) @ (Hp, 4Hp) matmul (bf16 operands, f32 accumulation),
# tiled over rows and output columns (lane-dense output blocks).
# ---------------------------------------------------------------------------
def _proj_kernel(x_ref, w_ref, b_ref, o_ref):
    o_ref[...] = (jnp.dot(x_ref[...].astype(jnp.bfloat16), w_ref[...],
                          preferred_element_type=jnp.float32) + b_ref[...])


def matmul_bias(x, w_t, b):
    m, k = x.shape
    n = w_t.shape[1]
    tm = _pick_row_tile(m)
    tn = _pick_col_tile(n)
    return pl.pallas_call(
        _proj_kernel,
        out_shape=jax.ShapeDtypeStruct((m, n), jnp.float32),
        grid_spec=pltpu.PrefetchScalarGridSpec(
            num_scalar_prefetch=0,
            grid=(m // tm, n // tn),
            in_specs=[pl.BlockSpec((tm, k), lambda i, j: (i, 0)),   # resident over j
                      pl.BlockSpec((k, tn), lambda i, j: (0, j)),
                      pl.BlockSpec((1, tn), lambda i, j: (0, j))],
            out_specs=pl.BlockSpec((tm, tn), lambda i, j: (i, j))),
        compiler_params=pltpu.CompilerParams(
            dimension_semantics=("parallel", "parallel")),
    )(x, w_t, b)


# ---------------------------------------------------------------------------
# Shared LSTM cell math. Hp is a multiple of 128 -> each gate slice is a clean
# lane-aligned slab; h is carried in f32, cast to bf16 only at the MXU.
# ---------------------------------------------------------------------------
def _lstm_step(xg, h, c, whh_bf16):
    hp = h.shape[-1]
    gates = xg + jnp.dot(h.astype(jnp.bfloat16), whh_bf16,
                         preferred_element_type=jnp.float32)
    i = jax.nn.sigmoid(gates[:, 0 * hp:1 * hp])
    f = jax.nn.sigmoid(gates[:, 1 * hp:2 * hp])
    g = jnp.tanh(gates[:, 2 * hp:3 * hp])
    o = jax.nn.sigmoid(gates[:, 3 * hp:4 * hp])
    c_new = f * c + i * g
    h_new = o * jnp.tanh(c_new)
    return h_new, c_new


# ---------------------------------------------------------------------------
# Kernel 2: encoder sweep.  grid = (batch blocks [parallel], time blocks [arbitrary]);
# each grid step runs an unrolled fori_loop over T timesteps with (h, c) carried;
# W_hh^T stays resident (single-buffered). Final (hx, cx) written at the last block.
# ---------------------------------------------------------------------------
def _encoder_kernel(xg_ref, whh_ref, h_out_ref, c_out_ref, h_sc, c_sc):
    t = pl.program_id(1)

    @pl.when(t == 0)
    def _():
        h_sc[...] = jnp.zeros_like(h_sc)
        c_sc[...] = jnp.zeros_like(c_sc)

    whh = whh_ref[...]                      # one VMEM load per time block

    def step(i, carry):
        h, c = carry
        return _lstm_step(xg_ref[i], h, c, whh)

    h, c = jax.lax.fori_loop(0, xg_ref.shape[0], step,
                             (h_sc[...], c_sc[...]), unroll=True)
    h_sc[...] = h
    c_sc[...] = c

    @pl.when(t == pl.num_programs(1) - 1)
    def _():
        h_out_ref[...] = h
        c_out_ref[...] = c


def lstm_sweep_encoder(xg, whh_t):
    s, bp, g = xg.shape
    hp = whh_t.shape[0]
    bb = bp            # v7x: use bp // 2 (with bp >= 16) to shard batch across both TCs
    tb = _pick_time_block(s)
    return pl.pallas_call(
        _encoder_kernel,
        out_shape=(jax.ShapeDtypeStruct((bp, hp), jnp.float32),
                   jax.ShapeDtypeStruct((bp, hp), jnp.float32)),
        grid_spec=pltpu.PrefetchScalarGridSpec(
            num_scalar_prefetch=0,
            grid=(bp // bb, s // tb),
            in_specs=[pl.BlockSpec((tb, bb, g), lambda b, t: (t, b, 0)),
                      _resident_spec((hp, g), lambda b, t: (0, 0))],
            out_specs=(pl.BlockSpec((bb, hp), lambda b, t: (b, 0)),
                       pl.BlockSpec((bb, hp), lambda b, t: (b, 0))),
            scratch_shapes=[pltpu.VMEM((bb, hp), jnp.float32),
                            pltpu.VMEM((bb, hp), jnp.float32)]),
        compiler_params=pltpu.CompilerParams(
            dimension_semantics=("parallel", "arbitrary")),   # time is serial
    )(xg, whh_t)


# ---------------------------------------------------------------------------
# Kernel 3: decoder sweep (teacher forcing).  Same structure; exports every h_t.
# The output projection + cross-entropy is NOT in this serial loop anymore.
# ---------------------------------------------------------------------------
def _decoder_kernel(xg_ref, h0_ref, c0_ref, whh_ref, h_out_ref, h_sc, c_sc):
    t = pl.program_id(1)

    @pl.when(t == 0)
    def _():
        h_sc[...] = h0_ref[...]
        c_sc[...] = c0_ref[...]

    whh = whh_ref[...]

    def step(i, carry):
        h, c = carry
        h, c = _lstm_step(xg_ref[i], h, c, whh)
        h_out_ref[i] = h
        return (h, c)

    h, c = jax.lax.fori_loop(0, xg_ref.shape[0], step,
                             (h_sc[...], c_sc[...]), unroll=True)
    h_sc[...] = h
    c_sc[...] = c


def lstm_sweep_decoder(xg, h0, c0, whh_t):
    s, bp, g = xg.shape
    hp = whh_t.shape[0]
    bb = bp            # v7x: bp // 2 batch blocks across the two TensorCores
    tb = _pick_time_block(s)
    return pl.pallas_call(
        _decoder_kernel,
        out_shape=jax.ShapeDtypeStruct((s, bp, hp), jnp.float32),
        grid_spec=pltpu.PrefetchScalarGridSpec(
            num_scalar_prefetch=0,
            grid=(bp // bb, s // tb),
            in_specs=[pl.BlockSpec((tb, bb, g), lambda b, t: (t, b, 0)),
                      _resident_spec((bb, hp), lambda b, t: (b, 0)),
                      _resident_spec((bb, hp), lambda b, t: (b, 0)),
                      _resident_spec((hp, g), lambda b, t: (0, 0))],
            out_specs=pl.BlockSpec((tb, bb, hp), lambda b, t: (t, b, 0)),
            scratch_shapes=[pltpu.VMEM((bb, hp), jnp.float32),
                            pltpu.VMEM((bb, hp), jnp.float32)]),
        compiler_params=pltpu.CompilerParams(
            dimension_semantics=("parallel", "arbitrary")),
    )(xg, h0, c0, whh_t)


# ---------------------------------------------------------------------------
# Kernel 4: output projection + per-row NLL with an ONLINE logsumexp over vocab
# tiles.  grid = (row tiles [parallel], vocab tiles [arbitrary/reduction]);
# h rows stay resident across the vocab sweep, out_W is streamed tile by tile,
# so it never needs to be fully resident (scales to real V on v7x's 64 MiB).
# Per-row NLLs are reduced to the torch-style per-step-mean loss outside (tiny).
# ---------------------------------------------------------------------------
def _ce_kernel(h_ref, tgt_ref, w_ref, b_ref, nll_ref, m_sc, l_sc, tl_sc):
    j = pl.program_id(1)

    @pl.when(j == 0)
    def _():
        m_sc[...] = jnp.full_like(m_sc, -jnp.inf)
        l_sc[...] = jnp.zeros_like(l_sc)
        tl_sc[...] = jnp.zeros_like(tl_sc)

    logits = (jnp.dot(h_ref[...].astype(jnp.bfloat16), w_ref[...],
                      preferred_element_type=jnp.float32) + b_ref[...])   # (TR, TV) f32
    tv = logits.shape[1]

    m_prev = m_sc[...]
    m_new = jnp.maximum(m_prev, jnp.max(logits, axis=-1, keepdims=True))
    l_sc[...] = (l_sc[...] * jnp.exp(m_prev - m_new)
                 + jnp.sum(jnp.exp(logits - m_new), axis=-1, keepdims=True))
    m_sc[...] = m_new

    col = jax.lax.broadcasted_iota(jnp.int32, logits.shape, 1) + j * tv
    tl_sc[...] += jnp.sum(jnp.where(col == tgt_ref[...], logits, 0.0),
                          axis=-1, keepdims=True)

    @pl.when(j == pl.num_programs(1) - 1)
    def _():
        nll_ref[...] = (m_sc[...] + jnp.log(l_sc[...])) - tl_sc[...]


def ce_nll(h_rows, tgt_rows, wout_t, bout):
    rows, hp = h_rows.shape
    vp = wout_t.shape[1]
    tr = _pick_row_tile(rows)
    tv = _pick_col_tile(vp)
    return pl.pallas_call(
        _ce_kernel,
        out_shape=jax.ShapeDtypeStruct((rows, 1), jnp.float32),
        grid_spec=pltpu.PrefetchScalarGridSpec(
            num_scalar_prefetch=0,
            grid=(rows // tr, vp // tv),
            in_specs=[pl.BlockSpec((tr, hp), lambda i, j: (i, 0)),   # resident over j
                      pl.BlockSpec((tr, 1), lambda i, j: (i, 0)),
                      pl.BlockSpec((hp, tv), lambda i, j: (0, j)),
                      pl.BlockSpec((1, tv), lambda i, j: (0, j))],
            out_specs=pl.BlockSpec((tr, 1), lambda i, j: (i, 0)),
            scratch_shapes=[pltpu.VMEM((tr, 1), jnp.float32),
                            pltpu.VMEM((tr, 1), jnp.float32),
                            pltpu.VMEM((tr, 1), jnp.float32)]),
        compiler_params=pltpu.CompilerParams(
            dimension_semantics=("parallel", "arbitrary")),
    )(h_rows, tgt_rows, wout_t, bout)


# ---------------------------------------------------------------------------
# Parameters (deterministic synthetic init at the module's LOGICAL shapes),
# plus zero-preserving padding to TPU-friendly shapes.  Weights are stored bf16
# (MXU-native); biases, embeddings and activations stay f32.
# ---------------------------------------------------------------------------
def init_params(key, source_size, target_size, H):
    ks = jax.random.split(key, 10)
    s = 1.0 / jnp.sqrt(jnp.float32(H))
    u = lambda k, shp: jax.random.uniform(k, shp, jnp.float32, -s, s)
    return dict(
        enc_emb=0.1 * jax.random.normal(ks[0], (source_size, H), jnp.float32),
        enc_wih_t=u(ks[1], (H, 4 * H)),
        enc_whh_t=u(ks[2], (H, 4 * H)),
        enc_b=u(ks[3], (1, 4 * H)),          # b_ih + b_hh fused
        dec_emb=0.1 * jax.random.normal(ks[4], (target_size, H), jnp.float32),
        dec_wih_t=u(ks[5], (H, 4 * H)),
        dec_whh_t=u(ks[6], (H, 4 * H)),
        dec_b=u(ks[7], (1, 4 * H)),
        out_w_t=u(ks[8], (H, target_size)),  # decoder.linear, transposed
        out_b=u(ks[9], (1, target_size)),
    )


def pad_params(p, H, V):
    """Pad H -> Hp and V -> Vp (multiples of 128) without changing the math."""
    Hp = _round_up(H, 128)
    Vp = _round_up(V, 128)

    def pad_gate_mat(w):                      # (H, 4H) -> (Hp, 4Hp) per (i,f,g,o) block
        w4 = w.reshape(H, 4, H)
        w4 = jnp.pad(w4, ((0, Hp - H), (0, 0), (0, Hp - H)))
        return w4.reshape(Hp, 4 * Hp).astype(jnp.bfloat16)

    def pad_gate_bias(b):                     # (1, 4H) -> (1, 4Hp), f32
        b4 = b.reshape(1, 4, H)
        b4 = jnp.pad(b4, ((0, 0), (0, 0), (0, Hp - H)))
        return b4.reshape(1, 4 * Hp)

    return dict(
        enc_emb=jnp.pad(p["enc_emb"], ((0, 0), (0, Hp - H))),
        enc_wih_t=pad_gate_mat(p["enc_wih_t"]),
        enc_whh_t=pad_gate_mat(p["enc_whh_t"]),
        enc_b=pad_gate_bias(p["enc_b"]),
        dec_emb=jnp.pad(p["dec_emb"], ((0, 0), (0, Hp - H))),
        dec_wih_t=pad_gate_mat(p["dec_wih_t"]),
        dec_whh_t=pad_gate_mat(p["dec_whh_t"]),
        dec_b=pad_gate_bias(p["dec_b"]),
        out_w_t=jnp.pad(p["out_w_t"],
                        ((0, Hp - H), (0, Vp - V))).astype(jnp.bfloat16),
        out_b=jnp.pad(p["out_b"], ((0, 0), (0, Vp - V)), constant_values=_NEG),
    )


# ---------------------------------------------------------------------------
# EncoderDecoder.forward(train=True)  — Pallas path (uses padded params)
# ---------------------------------------------------------------------------
def encoder_decoder_train(pp, article_docs, summary_docs):
    B, S_enc = article_docs.shape
    Hp = pp["enc_whh_t"].shape[0]
    Bp = _round_up(B, 8)
    # Pad batch to a full f32 sublane group; padded rows carry target 0
    # (= ignore_index) so they never touch the loss.
    art = jnp.pad(article_docs, ((0, Bp - B), (0, 0)))
    summ = jnp.pad(summary_docs, ((0, Bp - B), (0, 0)))
    S_dec = summ.shape[1]

    # ---- Encoder: transpose the small id matrix (not the big gates tensor),
    # hoist the input projection into one big matmul, then one fused time sweep.
    x_emb = jnp.take(pp["enc_emb"], art.T, axis=0)                   # (S_enc, Bp, Hp)
    xg_enc = matmul_bias(x_emb.reshape(S_enc * Bp, Hp),
                         pp["enc_wih_t"], pp["enc_b"]
                         ).reshape(S_enc, Bp, 4 * Hp)
    hx, cx = lstm_sweep_encoder(xg_enc, pp["enc_whh_t"])

    # ---- Decoder (teacher forcing): fused LSTM sweep exporting all h_t.
    dec_in_t = summ[:, :S_dec - 1].T                                 # (S-1, Bp) words_f
    tgt_t = summ[:, 1:].T.astype(jnp.int32)                          # (S-1, Bp) words_t
    d_emb = jnp.take(pp["dec_emb"], dec_in_t, axis=0)                # (S-1, Bp, Hp)
    xg_dec = matmul_bias(d_emb.reshape((S_dec - 1) * Bp, Hp),
                         pp["dec_wih_t"], pp["dec_b"]
                         ).reshape(S_dec - 1, Bp, 4 * Hp)
    h_all = lstm_sweep_decoder(xg_dec, hx, cx, pp["dec_whh_t"])      # (S-1, Bp, Hp)

    # ---- Output projection + masked cross-entropy: parallel, vocab-tiled kernel.
    rows = (S_dec - 1) * Bp
    nll = ce_nll(h_all.reshape(rows, Hp), tgt_t.reshape(rows, 1),
                 pp["out_w_t"], pp["out_b"]).reshape(S_dec - 1, Bp)

    mask = (tgt_t != 0).astype(jnp.float32)                          # ignore_index=0
    step_sum = jnp.sum(nll * mask, axis=1)
    step_cnt = jnp.sum(mask, axis=1)
    # Per-step mean over non-ignored targets, summed over steps (matches torch;
    # a step with every target ignored yields NaN exactly like torch).
    return jnp.sum(step_sum / step_cnt)


# ---------------------------------------------------------------------------
# Pure-JAX reference (unpadded params, same bf16-operand / f32-accumulate math)
# ---------------------------------------------------------------------------
def _bf16_dot(a, b):
    return jnp.dot(a.astype(jnp.bfloat16), b.astype(jnp.bfloat16),
                   preferred_element_type=jnp.float32)


def _ref_cell(x, h, c, wih_t, whh_t, b):
    gates = _bf16_dot(x, wih_t) + _bf16_dot(h, whh_t) + b
    H = h.shape[1]
    i = jax.nn.sigmoid(gates[:, :H])
    f = jax.nn.sigmoid(gates[:, H:2 * H])
    g = jnp.tanh(gates[:, 2 * H:3 * H])
    o = jax.nn.sigmoid(gates[:, 3 * H:])
    c2 = f * c + i * g
    return o * jnp.tanh(c2), c2


def ref_forward(params, article_docs, summary_docs):
    B, S_enc = article_docs.shape
    H = params["enc_emb"].shape[1]
    hx = jnp.zeros((B, H), jnp.float32)
    cx = jnp.zeros((B, H), jnp.float32)
    for t in range(S_enc):
        x = jnp.take(params["enc_emb"], article_docs[:, t], axis=0)
        hx, cx = _ref_cell(x, hx, cx, params["enc_wih_t"],
                           params["enc_whh_t"], params["enc_b"])
    summary_t = summary_docs.T
    loss = jnp.float32(0.0)
    for t in range(summary_t.shape[0] - 1):
        x = jnp.take(params["dec_emb"], summary_t[t], axis=0)
        hx, cx = _ref_cell(x, hx, cx, params["dec_wih_t"],
                           params["dec_whh_t"], params["dec_b"])
        logits = _bf16_dot(hx, params["out_w_t"]) + params["out_b"]
        tgt = summary_t[t + 1]
        lse = jax.scipy.special.logsumexp(logits, axis=-1)
        nll = lse - jnp.take_along_axis(logits, tgt[:, None], axis=-1)[:, 0]
        mask = (tgt != 0).astype(jnp.float32)
        loss = loss + jnp.sum(nll * mask) / jnp.sum(mask)
    return loss


# TODO(synk): the `generate` branch (greedy argmax decode with a host-side Python
# while loop over [START]/[STOP] tokens and data-dependent stopping) is host control
# flow and is not expressed as a Pallas kernel; only the train branch is implemented.

if __name__ == "__main__":
    SOURCE_SIZE, TARGET_SIZE = 50, 40
    B, S_ENC, S_DEC, HIDDEN = 2, 8, 8, 32

    key = jax.random.PRNGKey(0)
    k_p, k_a, k_s = jax.random.split(key, 3)
    params = init_params(k_p, SOURCE_SIZE, TARGET_SIZE, HIDDEN)
    pparams = pad_params(params, HIDDEN, TARGET_SIZE)

    article_docs = jax.random.randint(k_a, (B, S_ENC), 1, SOURCE_SIZE, jnp.int32)
    summary_docs = jax.random.randint(k_s, (B, S_DEC), 1, TARGET_SIZE, jnp.int32)
    summary_docs = summary_docs.at[1, 5].set(0)   # exercise ignore_index=0

    _single_buffer_ok()   # prime the pl.Buffered(1) probe outside of tracing

    loss = jax.jit(encoder_decoder_train)(pparams, article_docs, summary_docs)
    loss = jax.block_until_ready(loss)

    loss_ref = ref_forward(params, article_docs, summary_docs)
    assert jnp.isfinite(loss), "non-finite loss"
    # bf16 matmul operands make the recurrence mildly rounding-sensitive; 2e-2 still
    # catches any structural error (wrong step, missing mask, bad padding).
    assert jnp.allclose(loss, loss_ref, rtol=2e-2, atol=2e-2), (loss, loss_ref)

    print("KERNEL_OK")
</pallas_src>

<mosaic_0001>
module attributes {stable_mosaic.version = 11 : i64} {
  func.func @_k(%arg0: i32, %arg1: memref<8x128xf32, #tpu.memory_space<vmem>>, %arg2: memref<8x128xf32, #tpu.memory_space<vmem>>) attributes {dimension_semantics = [#tpu.dimension_semantics<arbitrary>], iteration_bounds = array<i64: 2>, scalar_prefetch = 0 : i64, scratch_operands = 0 : i64, tpu.core_type = #tpu.core_type<tc>, window_params = [{pipeline_mode = #tpu.pipeline_mode<synchronous>, transform_indices = @transform_0, window_bounds = array<i64: 8, 128>}, {pipeline_mode = #tpu.pipeline_mode<synchronous>, transform_indices = @transform_1, window_bounds = array<i64: 8, 128>}]} {
    %c0 = arith.constant 0 : index
    %c0_0 = arith.constant 0 : index
    %0 = vector.load %arg1[%c0, %c0_0] : memref<8x128xf32, #tpu.memory_space<vmem>>, vector<8x128xf32>
    %c0_1 = arith.constant 0 : index
    %c0_2 = arith.constant 0 : index
    %1 = vector.load %arg2[%c0_1, %c0_2] : memref<8x128xf32, #tpu.memory_space<vmem>>, vector<8x128xf32>
    tpu.vector_store %arg2[%c0_1, %c0_2], %0 {strides = array<i32>} : memref<8x128xf32, #tpu.memory_space<vmem>>, vector<8x128xf32>,
    return
  }
  func.func @transform_0(%arg0: i32) -> (i32, i32) {
    %c0_i32 = arith.constant 0 : i32
    %c0_i32_0 = arith.constant 0 : i32
    %c0_i32_1 = arith.constant 0 : i32
    return %c0_i32, %c0_i32_0 : i32, i32
  }
  func.func @transform_1(%arg0: i32) -> (i32, i32) {
    %c0_i32 = arith.constant 0 : i32
    %c0_i32_0 = arith.constant 0 : i32
    %c0_i32_1 = arith.constant 0 : i32
    return %c0_i32, %c0_i32_0 : i32, i32
  }
}

module attributes {stable_mosaic.version = 11 : i64} {
  func.func @_proj_kernel(%arg0: i32, %arg1: i32, %arg2: memref<56x128xf32, #tpu.memory_space<vmem>>, %arg3: memref<128x512xbf16, #tpu.memory_space<vmem>>, %arg4: memref<1x512xf32, #tpu.memory_space<vmem>>, %arg5: memref<56x512xf32, #tpu.memory_space<vmem>>) attributes {dimension_semantics = [#tpu.dimension_semantics<parallel>, #tpu.dimension_semantics<parallel>], iteration_bounds = array<i64: 1, 1>, scalar_prefetch = 0 : i64, scratch_operands = 0 : i64, tpu.core_type = #tpu.core_type<tc>, window_params = [{transform_indices = @transform_0, window_bounds = array<i64: 56, 128>}, {transform_indices = @transform_1, window_bounds = array<i64: 128, 512>}, {transform_indices = @transform_2, window_bounds = array<i64: 1, 512>}, {transform_indices = @transform_3, window_bounds = array<i64: 56, 512>}]} {
    %c0 = arith.constant 0 : index
    %c0_0 = arith.constant 0 : index
    %0 = vector.load %arg2[%c0, %c0_0] : memref<56x128xf32, #tpu.memory_space<vmem>>, vector<56x128xf32>
    %1 = arith.truncf %0 : vector<56x128xf32> to vector<56x128xbf16>
    %c0_1 = arith.constant 0 : index
    %c0_2 = arith.constant 0 : index
    %2 = vector.load %arg3[%c0_1, %c0_2] : memref<128x512xbf16, #tpu.memory_space<vmem>>, vector<128x512xbf16>
    %cst = arith.constant dense<0.000000e+00> : vector<56x512xf32>
    %3 = tpu.matmul %1, %2, %cst {dimension_numbers = #tpu.dot_dimension_numbers<[1], [0], [0], [1], [0, 0, 1, 1], [], []>} : vector<56x128xbf16>, vector<128x512xbf16>, vector<56x512xf32> -> vector<56x512xf32>
    %c0_3 = arith.constant 0 : index
    %c0_4 = arith.constant 0 : index
    %4 = vector.load %arg4[%c0_3, %c0_4] : memref<1x512xf32, #tpu.memory_space<vmem>>, vector<1x512xf32>
    %5 = vector.broadcast %4 : vector<1x512xf32> to vector<56x512xf32>
    %6 = arith.addf %3, %5 : vector<56x512xf32>
    %c0_5 = arith.constant 0 : index
    %c0_6 = arith.constant 0 : index
    %7 = vector.load %arg5[%c0_5, %c0_6] : memref<56x512xf32, #tpu.memory_space<vmem>>, vector<56x512xf32>
    tpu.vector_store %arg5[%c0_5, %c0_6], %6 {strides = array<i32>} : memref<56x512xf32, #tpu.memory_space<vmem>>, vector<56x512xf32>,
    return
  }
  func.func @transform_0(%arg0: i32, %arg1: i32) -> (i32, i32) {
    %c0_i32 = arith.constant 0 : i32
    %c0_i32_0 = arith.constant 0 : i32
    return %arg0, %c0_i32 : i32, i32
  }
  func.func @transform_1(%arg0: i32, %arg1: i32) -> (i32, i32) {
    %c0_i32 = arith.constant 0 : i32
    %c0_i32_0 = arith.constant 0 : i32
    return %c0_i32, %arg1 : i32, i32
  }
  func.func @transform_2(%arg0: i32, %arg1: i32) -> (i32, i32) {
    %c0_i32 = arith.constant 0 : i32
    %c0_i32_0 = arith.constant 0 : i32
    return %c0_i32, %arg1 : i32, i32
  }
  func.func @transform_3(%arg0: i32, %arg1: i32) -> (i32, i32) {
    %c0_i32 = arith.constant 0 : i32
    return %arg0, %arg1 : i32, i32
  }
}

module attributes {stable_mosaic.version = 11 : i64} {
  func.func @_proj_kernel(%arg0: i32, %arg1: i32, %arg2: memref<64x128xf32, #tpu.memory_space<vmem>>, %arg3: memref<128x512xbf16, #tpu.memory_space<vmem>>, %arg4: memref<1x512xf32, #tpu.memory_space<vmem>>, %arg5: memref<64x512xf32, #tpu.memory_space<vmem>>) attributes {dimension_semantics = [#tpu.dimension_semantics<parallel>, #tpu.dimension_semantics<parallel>], iteration_bounds = array<i64: 1, 1>, scalar_prefetch = 0 : i64, scratch_operands = 0 : i64, tpu.core_type = #tpu.core_type<tc>, window_params = [{transform_indices = @transform_0, window_bounds = array<i64: 64, 128>}, {transform_indices = @transform_1, window_bounds = array<i64: 128, 512>}, {transform_indices = @transform_2, window_bounds = array<i64: 1, 512>}, {transform_indices = @transform_3, window_bounds = array<i64: 64, 512>}]} {
    %c0 = arith.constant 0 : index
    %c0_0 = arith.constant 0 : index
    %0 = vector.load %arg2[%c0, %c0_0] : memref<64x128xf32, #tpu.memory_space<vmem>>, vector<64x128xf32>
    %1 = arith.truncf %0 : vector<64x128xf32> to vector<64x128xbf16>
    %c0_1 = arith.constant 0 : index
    %c0_2 = arith.constant 0 : index
    %2 = vector.load %arg3[%c0_1, %c0_2] : memref<128x512xbf16, #tpu.memory_space<vmem>>, vector<128x512xbf16>
    %cst = arith.constant dense<0.000000e+00> : vector<64x512xf32>
    %3 = tpu.matmul %1, %2, %cst {dimension_numbers = #tpu.dot_dimension_numbers<[1], [0], [0], [1], [0, 0, 1, 1], [], []>} : vector<64x128xbf16>, vector<128x512xbf16>, vector<64x512xf32> -> vector<64x512xf32>
    %c0_3 = arith.constant 0 : index
    %c0_4 = arith.constant 0 : index
    %4 = vector.load %arg4[%c0_3, %c0_4] : memref<1x512xf32, #tpu.memory_space<vmem>>, vector<1x512xf32>
    %5 = vector.broadcast %4 : vector<1x512xf32> to vector<64x512xf32>
    %6 = arith.addf %3, %5 : vector<64x512xf32>
    %c0_5 = arith.constant 0 : index
    %c0_6 = arith.constant 0 : index
    %7 = vector.load %arg5[%c0_5, %c0_6] : memref<64x512xf32, #tpu.memory_space<vmem>>, vector<64x512xf32>
    tpu.vector_store %arg5[%c0_5, %c0_6], %6 {strides = array<i32>} : memref<64x512xf32, #tpu.memory_space<vmem>>, vector<64x512xf32>,
    return
  }
  func.func @transform_0(%arg0: i32, %arg1: i32) -> (i32, i32) {
    %c0_i32 = arith.constant 0 : i32
    %c0_i32_0 = arith.constant 0 : i32
    return %arg0, %c0_i32 : i32, i32
  }
  func.func @transform_1(%arg0: i32, %arg1: i32) -> (i32, i32) {
    %c0_i32 = arith.constant 0 : i32
    %c0_i32_0 = arith.constant 0 : i32
    return %c0_i32, %arg1 : i32, i32
  }
  func.func @transform_2(%arg0: i32, %arg1: i32) -> (i32, i32) {
    %c0_i32 = arith.constant 0 : i32
    %c0_i32_0 = arith.constant 0 : i32
    return %c0_i32, %arg1 : i32, i32
  }
  func.func @transform_3(%arg0: i32, %arg1: i32) -> (i32, i32) {
    %c0_i32 = arith.constant 0 : i32
    return %arg0, %arg1 : i32, i32
  }
}

module attributes {stable_mosaic.version = 11 : i64} {
  func.func @_encoder_kernel(%arg0: i32, %arg1: i32, %arg2: memref<8x8x512xf32, #tpu.memory_space<vmem>>, %arg3: memref<128x512xbf16, #tpu.memory_space<vmem>>, %arg4: memref<8x128xf32, #tpu.memory_space<vmem>>, %arg5: memref<8x128xf32, #tpu.memory_space<vmem>>, %arg6: memref<8x128xf32, #tpu.memory_space<vmem>>, %arg7: memref<8x128xf32, #tpu.memory_space<vmem>>) attributes {dimension_semantics = [#tpu.dimension_semantics<parallel>, #tpu.dimension_semantics<arbitrary>], iteration_bounds = array<i64: 1, 1>, scalar_prefetch = 0 : i64, scratch_operands = 2 : i64, tpu.core_type = #tpu.core_type<tc>, window_params = [{transform_indices = @transform_0, window_bounds = array<i64: 8, 8, 512>}, {pipeline_mode = #tpu.pipeline_mode<synchronous>, transform_indices = @transform_1, window_bounds = array<i64: 128, 512>}, {transform_indices = @transform_2, window_bounds = array<i64: 8, 128>}, {transform_indices = @transform_3, window_bounds = array<i64: 8, 128>}]} {
    %c0_i32 = arith.constant 0 : i32
    %0 = arith.cmpi eq, %arg1, %c0_i32 : i32
    %1 = arith.extui %0 : i1 to i32
    %c0_i32_0 = arith.constant 0 : i32
    %2 = arith.cmpi ne, %1, %c0_i32_0 : i32
    scf.if %2 {
      %cst_60 = arith.constant 0.000000e+00 : f32
      %259 = vector.broadcast %cst_60 : f32 to vector<8x128xf32>
      %c0_61 = arith.constant 0 : index
      %c0_62 = arith.constant 0 : index
      %260 = vector.load %arg6[%c0_61, %c0_62] : memref<8x128xf32, #tpu.memory_space<vmem>>, vector<8x128xf32>
      tpu.vector_store %arg6[%c0_61, %c0_62], %259 {strides = array<i32>} : memref<8x128xf32, #tpu.memory_space<vmem>>, vector<8x128xf32>,
      %cst_63 = arith.constant 0.000000e+00 : f32
      %261 = vector.broadcast %cst_63 : f32 to vector<8x128xf32>
      %c0_64 = arith.constant 0 : index
      %c0_65 = arith.constant 0 : index
      %262 = vector.load %arg7[%c0_64, %c0_65] : memref<8x128xf32, #tpu.memory_space<vmem>>, vector<8x128xf32>
      tpu.vector_store %arg7[%c0_64, %c0_65], %261 {strides = array<i32>} : memref<8x128xf32, #tpu.memory_space<vmem>>, vector<8x128xf32>,
    } else {
    }
    %c0 = arith.constant 0 : index
    %c0_1 = arith.constant 0 : index
    %3 = vector.load %arg3[%c0, %c0_1] : memref<128x512xbf16, #tpu.memory_space<vmem>>, vector<128x512xbf16>
    %c0_2 = arith.constant 0 : index
    %c0_3 = arith.constant 0 : index
    %4 = vector.load %arg6[%c0_2, %c0_3] : memref<8x128xf32, #tpu.memory_space<vmem>>, vector<8x128xf32>
    %c0_4 = arith.constant 0 : index
    %c0_5 = arith.constant 0 : index
    %5 = vector.load %arg7[%c0_4, %c0_5] : memref<8x128xf32, #tpu.memory_space<vmem>>, vector<8x128xf32>
    %c0_i32_6 = arith.constant 0 : i32
    %6 = arith.index_cast %c0_i32_6 : i32 to index
    %c0_7 = arith.constant 0 : index
    %c0_8 = arith.constant 0 : index
    %7 = vector.load %arg2[%6, %c0_7, %c0_8] : memref<8x8x512xf32, #tpu.memory_space<vmem>>, vector<1x8x512xf32>
    %8 = vector.shape_cast %7 : vector<1x8x512xf32> to vector<8x512xf32>
    %9 = arith.truncf %4 : vector<8x128xf32> to vector<8x128xbf16>
    %cst = arith.constant dense<0.000000e+00> : vector<8x512xf32>
    %10 = tpu.matmul %9, %3, %cst {dimension_numbers = #tpu.dot_dimension_numbers<[1], [0], [0], [1], [0, 0, 1, 1], [], []>} : vector<8x128xbf16>, vector<128x512xbf16>, vector<8x512xf32> -> vector<8x512xf32>
    %11 = arith.addf %8, %10 : vector<8x512xf32>
    %12 = vector.extract_strided_slice %11 {offsets = [0, 0], sizes = [8, 128], strides = [1, 1]} : vector<8x512xf32> to vector<8x128xf32>
    %13 = arith.negf %12 : vector<8x128xf32>
    %14 = math.exp %13 : vector<8x128xf32>
    %cst_9 = arith.constant 1.000000e+00 : f32
    %15 = vector.broadcast %cst_9 : f32 to vector<8x128xf32>
    %16 = arith.addf %15, %14 : vector<8x128xf32>
    %17 = arith.divf %15, %16 : vector<8x128xf32>
    %18 = vector.extract_strided_slice %11 {offsets = [0, 128], sizes = [8, 128], strides = [1, 1]} : vector<8x512xf32> to vector<8x128xf32>
    %19 = arith.negf %18 : vector<8x128xf32>
    %20 = math.exp %19 : vector<8x128xf32>
    %cst_10 = arith.constant 1.000000e+00 : f32
    %21 = vector.broadcast %cst_10 : f32 to vector<8x128xf32>
    %22 = arith.addf %21, %20 : vector<8x128xf32>
    %23 = arith.divf %21, %22 : vector<8x128xf32>
    %24 = vector.extract_strided_slice %11 {offsets = [0, 256], sizes = [8, 128], strides = [1, 1]} : vector<8x512xf32> to vector<8x128xf32>
    %25 = math.tanh %24 : vector<8x128xf32>
    %26 = vector.extract_strided_slice %11 {offsets = [0, 384], sizes = [8, 128], strides = [1, 1]} : vector<8x512xf32> to vector<8x128xf32>
    %27 = arith.negf %26 : vector<8x128xf32>
    %28 = math.exp %27 : vector<8x128xf32>
    %cst_11 = arith.constant 1.000000e+00 : f32
    %29 = vector.broadcast %cst_11 : f32 to vector<8x128xf32>
    %30 = arith.addf %29, %28 : vector<8x128xf32>
    %31 = arith.divf %29, %30 : vector<8x128xf32>
    %32 = arith.mulf %23, %5 : vector<8x128xf32>
    %33 = arith.mulf %17, %25 : vector<8x128xf32>
    %34 = arith.addf %32, %33 : vector<8x128xf32>
    %35 = math.tanh %34 : vector<8x128xf32>
    %36 = arith.mulf %31, %35 : vector<8x128xf32>
    %c1_i32 = arith.constant 1 : i32
    %37 = arith.index_cast %c1_i32 : i32 to index
    %c0_12 = arith.constant 0 : index
    %c0_13 = arith.constant 0 : index
    %38 = vector.load %arg2[%37, %c0_12, %c0_13] : memref<8x8x512xf32, #tpu.memory_space<vmem>>, vector<1x8x512xf32>
    %39 = vector.shape_cast %38 : vector<1x8x512xf32> to vector<8x512xf32>
    %40 = arith.truncf %36 : vector<8x128xf32> to vector<8x128xbf16>
    %cst_14 = arith.constant dense<0.000000e+00> : vector<8x512xf32>
    %41 = tpu.matmul %40, %3, %cst_14 {dimension_numbers = #tpu.dot_dimension_numbers<[1], [0], [0], [1], [0, 0, 1, 1], [], []>} : vector<8x128xbf16>, vector<128x512xbf16>, vector<8x512xf32> -> vector<8x512xf32>
    %42 = arith.addf %39, %41 : vector<8x512xf32>
    %43 = vector.extract_strided_slice %42 {offsets = [0, 0], sizes = [8, 128], strides = [1, 1]} : vector<8x512xf32> to vector<8x128xf32>
    %44 = arith.negf %43 : vector<8x128xf32>
    %45 = math.exp %44 : vector<8x128xf32>
    %cst_15 = arith.constant 1.000000e+00 : f32
    %46 = vector.broadcast %cst_15 : f32 to vector<8x128xf32>
    %47 = arith.addf %46, %45 : vector<8x128xf32>
    %48 = arith.divf %46, %47 : vector<8x128xf32>
    %49 = vector.extract_strided_slice %42 {offsets = [0, 128], sizes = [8, 128], strides = [1, 1]} : vector<8x512xf32> to vector<8x128xf32>
    %50 = arith.negf %49 : vector<8x128xf32>
    %51 = math.exp %50 : vector<8x128xf32>
    %cst_16 = arith.constant 1.000000e+00 : f32
    %52 = vector.broadcast %cst_16 : f32 to vector<8x128xf32>
    %53 = arith.addf %52, %51 : vector<8x128xf32>
    %54 = arith.divf %52, %53 : vector<8x128xf32>
    %55 = vector.extract_strided_slice %42 {offsets = [0, 256], sizes = [8, 128], strides = [1, 1]} : vector<8x512xf32> to vector<8x128xf32>
    %56 = math.tanh %55 : vector<8x128xf32>
    %57 = vector.extract_strided_slice %42 {offsets = [0, 384], sizes = [8, 128], strides = [1, 1]} : vector<8x512xf32> to vector<8x128xf32>
    %58 = arith.negf %57 : vector<8x128xf32>
    %59 = math.exp %58 : vector<8x128xf32>
    %cst_17 = arith.constant 1.000000e+00 : f32
    %60 = vector.broadcast %cst_17 : f32 to vector<8x128xf32>
    %61 = arith.addf %60, %59 : vector<8x128xf32>
    %62 = arith.divf %60, %61 : vector<8x128xf32>
    %63 = arith.mulf %54, %34 : vector<8x128xf32>
    %64 = arith.mulf %48, %56 : vector<8x128xf32>
    %65 = arith.addf %63, %64 : vector<8x128xf32>
    %66 = math.tanh %65 : vector<8x128xf32>
    %67 = arith.mulf %62, %66 : vector<8x128xf32>
    %c2_i32 = arith.constant 2 : i32
    %68 = arith.index_cast %c2_i32 : i32 to index
    %c0_18 = arith.constant 0 : index
    %c0_19 = arith.constant 0 : index
    %69 = vector.load %arg2[%68, %c0_18, %c0_19] : memref<8x8x512xf32, #tpu.memory_space<vmem>>, vector<1x8x512xf32>
    %70 = vector.shape_cast %69 : vector<1x8x512xf32> to vector<8x512xf32>
    %71 = arith.truncf %67 : vector<8x128xf32> to vector<8x128xbf16>
    %cst_20 = arith.constant dense<0.000000e+00> : vector<8x512xf32>
    %72 = tpu.matmul %71, %3, %cst_20 {dimension_numbers = #tpu.dot_dimension_numbers<[1], [0], [0], [1], [0, 0, 1, 1], [], []>} : vector<8x128xbf16>, vector<128x512xbf16>, vector<8x512xf32> -> vector<8x512xf32>
    %73 = arith.addf %70, %72 : vector<8x512xf32>
    %74 = vector.extract_strided_slice %73 {offsets = [0, 0], sizes = [8, 128], strides = [1, 1]} : vector<8x512xf32> to vector<8x128xf32>
    %75 = arith.negf %74 : vector<8x128xf32>
    %76 = math.exp %75 : vector<8x128xf32>
    %cst_21 = arith.constant 1.000000e+00 : f32
    %77 = vector.broadcast %cst_21 : f32 to vector<8x128xf32>
    %78 = arith.addf %77, %76 : vector<8x128xf32>
    %79 = arith.divf %77, %78 : vector<8x128xf32>
    %80 = vector.extract_strided_slice %73 {offsets = [0, 128], sizes = [8, 128], strides = [1, 1]} : vector<8x512xf32> to vector<8x128xf32>
    %81 = arith.negf %80 : vector<8x128xf32>
    %82 = math.exp %81 : vector<8x128xf32>
    %cst_22 = arith.constant 1.000000e+00 : f32
    %83 = vector.broadcast %cst_22 : f32 to vector<8x128xf32>
    %84 = arith.addf %83, %82 : vector<8x128xf32>
    %85 = arith.divf %83, %84 : vector<8x128xf32>
    %86 = vector.extract_strided_slice %73 {offsets = [0, 256], sizes = [8, 128], strides = [1, 1]} : vector<8x512xf32> to vector<8x128xf32>
    %87 = math.tanh %86 : vector<8x128xf32>
    %88 = vector.extract_strided_slice %73 {offsets = [0, 384], sizes = [8, 128], strides = [1, 1]} : vector<8x512xf32> to vector<8x128xf32>
    %89 = arith.negf %88 : vector<8x128xf32>
    %90 = math.exp %89 : vector<8x128xf32>
    %cst_23 = arith.constant 1.000000e+00 : f32
    %91 = vector.broadcast %cst_23 : f32 to vector<8x128xf32>
    %92 = arith.addf %91, %90 : vector<8x128xf32>
    %93 = arith.divf %91, %92 : vector<8x128xf32>
    %94 = arith.mulf %85, %65 : vector<8x128xf32>
    %95 = arith.mulf %79, %87 : vector<8x128xf32>
    %96 = arith.addf %94, %95 : vector<8x128xf32>
    %97 = math.tanh %96 : vector<8x128xf32>
    %98 = arith.mulf %93, %97 : vector<8x128xf32>
    %c3_i32 = arith.constant 3 : i32
    %99 = arith.index_cast %c3_i32 : i32 to index
    %c0_24 = arith.constant 0 : index
    %c0_25 = arith.constant 0 : index
    %100 = vector.load %arg2[%99, %c0_24, %c0_25] : memref<8x8x512xf32, #tpu.memory_space<vmem>>, vector<1x8x512xf32>
    %101 = vector.shape_cast %100 : vector<1x8x512xf32> to vector<8x512xf32>
    %102 = arith.truncf %98 : vector<8x128xf32> to vector<8x128xbf16>
    %cst_26 = arith.constant dense<0.000000e+00> : vector<8x512xf32>
    %103 = tpu.matmul %102, %3, %cst_26 {dimension_numbers = #tpu.dot_dimension_numbers<[1], [0], [0], [1], [0, 0, 1, 1], [], []>} : vector<8x128xbf16>, vector<128x512xbf16>, vector<8x512xf32> -> vector<8x512xf32>
    %104 = arith.addf %101, %103 : vector<8x512xf32>
    %105 = vector.extract_strided_slice %104 {offsets = [0, 0], sizes = [8, 128], strides = [1, 1]} : vector<8x512xf32> to vector<8x128xf32>
    %106 = arith.negf %105 : vector<8x128xf32>
    %107 = math.exp %106 : vector<8x128xf32>
    %cst_27 = arith.constant 1.000000e+00 : f32
    %108 = vector.broadcast %cst_27 : f32 to vector<8x128xf32>
    %109 = arith.addf %108, %107 : vector<8x128xf32>
    %110 = arith.divf %108, %109 : vector<8x128xf32>
    %111 = vector.extract_strided_slice %104 {offsets = [0, 128], sizes = [8, 128], strides = [1, 1]} : vector<8x512xf32> to vector<8x128xf32>
    %112 = arith.negf %111 : vector<8x128xf32>
    %113 = math.exp %112 : vector<8x128xf32>
    %cst_28 = arith.constant 1.000000e+00 : f32
    %114 = vector.broadcast %cst_28 : f32 to vector<8x128xf32>
    %115 = arith.addf %114, %113 : vector<8x128xf32>
    %116 = arith.divf %114, %115 : vector<8x128xf32>
    %117 = vector.extract_strided_slice %104 {offsets = [0, 256], sizes = [8, 128], strides = [1, 1]} : vector<8x512xf32> to vector<8x128xf32>
    %118 = math.tanh %117 : vector<8x128xf32>
    %119 = vector.extract_strided_slice %104 {offsets = [0, 384], sizes = [8, 128], strides = [1, 1]} : vector<8x512xf32> to vector<8x128xf32>
    %120 = arith.negf %119 : vector<8x128xf32>
    %121 = math.exp %120 : vector<8x128xf32>
    %cst_29 = arith.constant 1.000000e+00 : f32
    %122 = vector.broadcast %cst_29 : f32 to vector<8x128xf32>
    %123 = arith.addf %122, %121 : vector<8x128xf32>
    %124 = arith.divf %122, %123 : vector<8x128xf32>
    %125 = arith.mulf %116, %96 : vector<8x128xf32>
    %126 = arith.mulf %110, %118 : vector<8x128xf32>
    %127 = arith.addf %125, %126 : vector<8x128xf32>
    %128 = math.tanh %127 : vector<8x128xf32>
    %129 = arith.mulf %124, %128 : vector<8x128xf32>
    %c4_i32 = arith.constant 4 : i32
    %130 = arith.index_cast %c4_i32 : i32 to index
    %c0_30 = arith.constant 0 : index
    %c0_31 = arith.constant 0 : index
    %131 = vector.load %arg2[%130, %c0_30, %c0_31] : memref<8x8x512xf32, #tpu.memory_space<vmem>>, vector<1x8x512xf32>
    %132 = vector.shape_cast %131 : vector<1x8x512xf32> to vector<8x512xf32>
    %133 = arith.truncf %129 : vector<8x128xf32> to vector<8x128xbf16>
    %cst_32 = arith.constant dense<0.000000e+00> : vector<8x512xf32>
    %134 = tpu.matmul %133, %3, %cst_32 {dimension_numbers = #tpu.dot_dimension_numbers<[1], [0], [0], [1], [0, 0, 1, 1], [], []>} : vector<8x128xbf16>, vector<128x512xbf16>, vector<8x512xf32> -> vector<8x512xf32>
    %135 = arith.addf %132, %134 : vector<8x512xf32>
    %136 = vector.extract_strided_slice %135 {offsets = [0, 0], sizes = [8, 128], strides = [1, 1]} : vector<8x512xf32> to vector<8x128xf32>
    %137 = arith.negf %136 : vector<8x128xf32>
    %138 = math.exp %137 : vector<8x128xf32>
    %cst_33 = arith.constant 1.000000e+00 : f32
    %139 = vector.broadcast %cst_33 : f32 to vector<8x128xf32>
    %140 = arith.addf %139, %138 : vector<8x128xf32>
    %141 = arith.divf %139, %140 : vector<8x128xf32>
    %142 = vector.extract_strided_slice %135 {offsets = [0, 128], sizes = [8, 128], strides = [1, 1]} : vector<8x512xf32> to vector<8x128xf32>
    %143 = arith.negf %142 : vector<8x128xf32>
    %144 = math.exp %143 : vector<8x128xf32>
    %cst_34 = arith.constant 1.000000e+00 : f32
    %145 = vector.broadcast %cst_34 : f32 to vector<8x128xf32>
    %146 = arith.addf %145, %144 : vector<8x128xf32>
    %147 = arith.divf %145, %146 : vector<8x128xf32>
    %148 = vector.extract_strided_slice %135 {offsets = [0, 256], sizes = [8, 128], strides = [1, 1]} : vector<8x512xf32> to vector<8x128xf32>
    %149 = math.tanh %148 : vector<8x128xf32>
    %150 = vector.extract_strided_slice %135 {offsets = [0, 384], sizes = [8, 128], strides = [1, 1]} : vector<8x512xf32> to vector<8x128xf32>
    %151 = arith.negf %150 : vector<8x128xf32>
    %152 = math.exp %151 : vector<8x128xf32>
    %cst_35 = arith.constant 1.000000e+00 : f32
    %153 = vector.broadcast %cst_35 : f32 to vector<8x128xf32>
    %154 = arith.addf %153, %152 : vector<8x128xf32>
    %155 = arith.divf %153, %154 : vector<8x128xf32>
    %156 = arith.mulf %147, %127 : vector<8x128xf32>
    %157 = arith.mulf %141, %149 : vector<8x128xf32>
    %158 = arith.addf %156, %157 : vector<8x128xf32>
    %159 = math.tanh %158 : vector<8x128xf32>
    %160 = arith.mulf %155, %159 : vector<8x128xf32>
    %c5_i32 = arith.constant 5 : i32
    %161 = arith.index_cast %c5_i32 : i32 to index
    %c0_36 = arith.constant 0 : index
    %c0_37 = arith.constant 0 : index
    %162 = vector.load %arg2[%161, %c0_36, %c0_37] : memref<8x8x512xf32, #tpu.memory_space<vmem>>, vector<1x8x512xf32>
    %163 = vector.shape_cast %162 : vector<1x8x512xf32> to vector<8x512xf32>
    %164 = arith.truncf %160 : vector<8x128xf32> to vector<8x128xbf16>
    %cst_38 = arith.constant dense<0.000000e+00> : vector<8x512xf32>
    %165 = tpu.matmul %164, %3, %cst_38 {dimension_numbers = #tpu.dot_dimension_numbers<[1], [0], [0], [1], [0, 0, 1, 1], [], []>} : vector<8x128xbf16>, vector<128x512xbf16>, vector<8x512xf32> -> vector<8x512xf32>
    %166 = arith.addf %163, %165 : vector<8x512xf32>
    %167 = vector.extract_strided_slice %166 {offsets = [0, 0], sizes = [8, 128], strides = [1, 1]} : vector<8x512xf32> to vector<8x128xf32>
    %168 = arith.negf %167 : vector<8x128xf32>
    %169 = math.exp %168 : vector<8x128xf32>
    %cst_39 = arith.constant 1.000000e+00 : f32
    %170 = vector.broadcast %cst_39 : f32 to vector<8x128xf32>
    %171 = arith.addf %170, %169 : vector<8x128xf32>
    %172 = arith.divf %170, %171 : vector<8x128xf32>
    %173 = vector.extract_strided_slice %166 {offsets = [0, 128], sizes = [8, 128], strides = [1, 1]} : vector<8x512xf32> to vector<8x128xf32>
    %174 = arith.negf %173 : vector<8x128xf32>
    %175 = math.exp %174 : vector<8x128xf32>
    %cst_40 = arith.constant 1.000000e+00 : f32
    %176 = vector.broadcast %cst_40 : f32 to vector<8x128xf32>
    %177 = arith.addf %176, %175 : vector<8x128xf32>
    %178 = arith.divf %176, %177 : vector<8x128xf32>
    %179 = vector.extract_strided_slice %166 {offsets = [0, 256], sizes = [8, 128], strides = [1, 1]} : vector<8x512xf32> to vector<8x128xf32>
    %180 = math.tanh %179 : vector<8x128xf32>
    %181 = vector.extract_strided_slice %166 {offsets = [0, 384], sizes = [8, 128], strides = [1, 1]} : vector<8x512xf32> to vector<8x128xf32>
    %182 = arith.negf %181 : vector<8x128xf32>
    %183 = math.exp %182 : vector<8x128xf32>
    %cst_41 = arith.constant 1.000000e+00 : f32
    %184 = vector.broadcast %cst_41 : f32 to vector<8x128xf32>
    %185 = arith.addf %184, %183 : vector<8x128xf32>
    %186 = arith.divf %184, %185 : vector<8x128xf32>
    %187 = arith.mulf %178, %158 : vector<8x128xf32>
    %188 = arith.mulf %172, %180 : vector<8x128xf32>
    %189 = arith.addf %187, %188 : vector<8x128xf32>
    %190 = math.tanh %189 : vector<8x128xf32>
    %191 = arith.mulf %186, %190 : vector<8x128xf32>
    %c6_i32 = arith.constant 6 : i32
    %192 = arith.index_cast %c6_i32 : i32 to index
    %c0_42 = arith.constant 0 : index
    %c0_43 = arith.constant 0 : index
    %193 = vector.load %arg2[%192, %c0_42, %c0_43] : memref<8x8x512xf32, #tpu.memory_space<vmem>>, vector<1x8x512xf32>
    %194 = vector.shape_cast %193 : vector<1x8x512xf32> to vector<8x512xf32>
    %195 = arith.truncf %191 : vector<8x128xf32> to vector<8x128xbf16>
    %cst_44 = arith.constant dense<0.000000e+00> : vector<8x512xf32>
    %196 = tpu.matmul %195, %3, %cst_44 {dimension_numbers = #tpu.dot_dimension_numbers<[1], [0], [0], [1], [0, 0, 1, 1], [], []>} : vector<8x128xbf16>, vector<128x512xbf16>, vector<8x512xf32> -> vector<8x512xf32>
    %197 = arith.addf %194, %196 : vector<8x512xf32>
    %198 = vector.extract_strided_slice %197 {offsets = [0, 0], sizes = [8, 128], strides = [1, 1]} : vector<8x512xf32> to vector<8x128xf32>
    %199 = arith.negf %198 : vector<8x128xf32>
    %200 = math.exp %199 : vector<8x128xf32>
    %cst_45 = arith.constant 1.000000e+00 : f32
    %201 = vector.broadcast %cst_45 : f32 to vector<8x128xf32>
    %202 = arith.addf %201, %200 : vector<8x128xf32>
    %203 = arith.divf %201, %202 : vector<8x128xf32>
    %204 = vector.extract_strided_slice %197 {offsets = [0, 128], sizes = [8, 128], strides = [1, 1]} : vector<8x512xf32> to vector<8x128xf32>
    %205 = arith.negf %204 : vector<8x128xf32>
    %206 = math.exp %205 : vector<8x128xf32>
    %cst_46 = arith.constant 1.000000e+00 : f32
    %207 = vector.broadcast %cst_46 : f32 to vector<8x128xf32>
    %208 = arith.addf %207, %206 : vector<8x128xf32>
    %209 = arith.divf %207, %208 : vector<8x128xf32>
    %210 = vector.extract_strided_slice %197 {offsets = [0, 256], sizes = [8, 128], strides = [1, 1]} : vector<8x512xf32> to vector<8x128xf32>
    %211 = math.tanh %210 : vector<8x128xf32>
    %212 = vector.extract_strided_slice %197 {offsets = [0, 384], sizes = [8, 128], strides = [1, 1]} : vector<8x512xf32> to vector<8x128xf32>
    %213 = arith.negf %212 : vector<8x128xf32>
    %214 = math.exp %213 : vector<8x128xf32>
    %cst_47 = arith.constant 1.000000e+00 : f32
    %215 = vector.broadcast %cst_47 : f32 to vector<8x128xf32>
    %216 = arith.addf %215, %214 : vector<8x128xf32>
    %217 = arith.divf %215, %216 : vector<8x128xf32>
    %218 = arith.mulf %209, %189 : vector<8x128xf32>
    %219 = arith.mulf %203, %211 : vector<8x128xf32>
    %220 = arith.addf %218, %219 : vector<8x128xf32>
    %221 = math.tanh %220 : vector<8x128xf32>
    %222 = arith.mulf %217, %221 : vector<8x128xf32>
    %c7_i32 = arith.constant 7 : i32
    %223 = arith.index_cast %c7_i32 : i32 to index
    %c0_48 = arith.constant 0 : index
    %c0_49 = arith.constant 0 : index
    %224 = vector.load %arg2[%223, %c0_48, %c0_49] : memref<8x8x512xf32, #tpu.memory_space<vmem>>, vector<1x8x512xf32>
    %225 = vector.shape_cast %224 : vector<1x8x512xf32> to vector<8x512xf32>
    %226 = arith.truncf %222 : vector<8x128xf32> to vector<8x128xbf16>
    %cst_50 = arith.constant dense<0.000000e+00> : vector<8x512xf32>
    %227 = tpu.matmul %226, %3, %cst_50 {dimension_numbers = #tpu.dot_dimension_numbers<[1], [0], [0], [1], [0, 0, 1, 1], [], []>} : vector<8x128xbf16>, vector<128x512xbf16>, vector<8x512xf32> -> vector<8x512xf32>
    %228 = arith.addf %225, %227 : vector<8x512xf32>
    %229 = vector.extract_strided_slice %228 {offsets = [0, 0], sizes = [8, 128], strides = [1, 1]} : vector<8x512xf32> to vector<8x128xf32>
    %230 = arith.negf %229 : vector<8x128xf32>
    %231 = math.exp %230 : vector<8x128xf32>
    %cst_51 = arith.constant 1.000000e+00 : f32
    %232 = vector.broadcast %cst_51 : f32 to vector<8x128xf32>
    %233 = arith.addf %232, %231 : vector<8x128xf32>
    %234 = arith.divf %232, %233 : vector<8x128xf32>
    %235 = vector.extract_strided_slice %228 {offsets = [0, 128], sizes = [8, 128], strides = [1, 1]} : vector<8x512xf32> to vector<8x128xf32>
    %236 = arith.negf %235 : vector<8x128xf32>
    %237 = math.exp %236 : vector<8x128xf32>
    %cst_52 = arith.constant 1.000000e+00 : f32
    %238 = vector.broadcast %cst_52 : f32 to vector<8x128xf32>
    %239 = arith.addf %238, %237 : vector<8x128xf32>
    %240 = arith.divf %238, %239 : vector<8x128xf32>
    %241 = vector.extract_strided_slice %228 {offsets = [0, 256], sizes = [8, 128], strides = [1, 1]} : vector<8x512xf32> to vector<8x128xf32>
    %242 = math.tanh %241 : vector<8x128xf32>
    %243 = vector.extract_strided_slice %228 {offsets = [0, 384], sizes = [8, 128], strides = [1, 1]} : vector<8x512xf32> to vector<8x128xf32>
    %244 = arith.negf %243 : vector<8x128xf32>
    %245 = math.exp %244 : vector<8x128xf32>
    %cst_53 = arith.constant 1.000000e+00 : f32
    %246 = vector.broadcast %cst_53 : f32 to vector<8x128xf32>
    %247 = arith.addf %246, %245 : vector<8x128xf32>
    %248 = arith.divf %246, %247 : vector<8x128xf32>
    %249 = arith.mulf %240, %220 : vector<8x128xf32>
    %250 = arith.mulf %234, %242 : vector<8x128xf32>
    %251 = arith.addf %249, %250 : vector<8x128xf32>
    %252 = math.tanh %251 : vector<8x128xf32>
    %253 = arith.mulf %248, %252 : vector<8x128xf32>
    %c8_i32 = arith.constant 8 : i32
    %c0_54 = arith.constant 0 : index
    %c0_55 = arith.constant 0 : index
    %254 = vector.load %arg6[%c0_54, %c0_55] : memref<8x128xf32, #tpu.memory_space<vmem>>, vector<8x128xf32>
    tpu.vector_store %arg6[%c0_54, %c0_55], %253 {strides = array<i32>} : memref<8x128xf32, #tpu.memory_space<vmem>>, vector<8x128xf32>,
    %c0_56 = arith.constant 0 : index
    %c0_57 = arith.constant 0 : index
    %255 = vector.load %arg7[%c0_56, %c0_57] : memref<8x128xf32, #tpu.memory_space<vmem>>, vector<8x128xf32>
    tpu.vector_store %arg7[%c0_56, %c0_57], %251 {strides = array<i32>} : memref<8x128xf32, #tpu.memory_space<vmem>>, vector<8x128xf32>,
    %c0_i32_58 = arith.constant 0 : i32
    %256 = arith.cmpi eq, %arg1, %c0_i32_58 : i32
    %257 = arith.extui %256 : i1 to i32
    %c0_i32_59 = arith.constant 0 : i32
    %258 = arith.cmpi ne, %257, %c0_i32_59 : i32
    scf.if %258 {
      %c0_60 = arith.constant 0 : index
      %c0_61 = arith.constant 0 : index
      %259 = vector.load %arg4[%c0_60, %c0_61] : memref<8x128xf32, #tpu.memory_space<vmem>>, vector<8x128xf32>
      tpu.vector_store %arg4[%c0_60, %c0_61], %253 {strides = array<i32>} : memref<8x128xf32, #tpu.memory_space<vmem>>, vector<8x128xf32>,
      %c0_62 = arith.constant 0 : index
      %c0_63 = arith.constant 0 : index
      %260 = vector.load %arg5[%c0_62, %c0_63] : memref<8x128xf32, #tpu.memory_space<vmem>>, vector<8x128xf32>
      tpu.vector_store %arg5[%c0_62, %c0_63], %251 {strides = array<i32>} : memref<8x128xf32, #tpu.memory_space<vmem>>, vector<8x128xf32>,
    } else {
    }
    return
  }
  func.func @transform_0(%arg0: i32, %arg1: i32) -> (i32, i32, i32) {
    %c0_i32 = arith.constant 0 : i32
    %c0_i32_0 = arith.constant 0 : i32
    return %arg1, %arg0, %c0_i32 : i32, i32, i32
  }
  func.func @transform_1(%arg0: i32, %arg1: i32) -> (i32, i32) {
    %c0_i32 = arith.constant 0 : i32
    %c0_i32_0 = arith.constant 0 : i32
    %c0_i32_1 = arith.constant 0 : i32
    return %c0_i32, %c0_i32_0 : i32, i32
  }
  func.func @transform_2(%arg0: i32, %arg1: i32) -> (i32, i32) {
    %c0_i32 = arith.constant 0 : i32
    %c0_i32_0 = arith.constant 0 : i32
    return %arg0, %c0_i32 : i32, i32
  }
  func.func @transform_3(%arg0: i32, %arg1: i32) -> (i32, i32) {
    %c0_i32 = arith.constant 0 : i32
    %c0_i32_0 = arith.constant 0 : i32
    return %arg0, %c0_i32 : i32, i32
  }
}

module attributes {stable_mosaic.version = 11 : i64} {
  func.func @_decoder_kernel(%arg0: i32, %arg1: i32, %arg2: memref<7x8x512xf32, #tpu.memory_space<vmem>>, %arg3: memref<8x128xf32, #tpu.memory_space<vmem>>, %arg4: memref<8x128xf32, #tpu.memory_space<vmem>>, %arg5: memref<128x512xbf16, #tpu.memory_space<vmem>>, %arg6: memref<7x8x128xf32, #tpu.memory_space<vmem>>, %arg7: memref<8x128xf32, #tpu.memory_space<vmem>>, %arg8: memref<8x128xf32, #tpu.memory_space<vmem>>) attributes {dimension_semantics = [#tpu.dimension_semantics<parallel>, #tpu.dimension_semantics<arbitrary>], iteration_bounds = array<i64: 1, 1>, scalar_prefetch = 0 : i64, scratch_operands = 2 : i64, tpu.core_type = #tpu.core_type<tc>, window_params = [{transform_indices = @transform_0, window_bounds = array<i64: 7, 8, 512>}, {transform_indices = @transform_1, window_bounds = array<i64: 8, 128>}, {transform_indices = @transform_2, window_bounds = array<i64: 8, 128>}, {pipeline_mode = #tpu.pipeline_mode<synchronous>, transform_indices = @transform_3, window_bounds = array<i64: 128, 512>}, {transform_indices = @transform_4, window_bounds = array<i64: 7, 8, 128>}]} {
    %c0_i32 = arith.constant 0 : i32
    %0 = arith.cmpi eq, %arg1, %c0_i32 : i32
    %1 = arith.extui %0 : i1 to i32
    %c0_i32_0 = arith.constant 0 : i32
    %2 = arith.cmpi ne, %1, %c0_i32_0 : i32
    scf.if %2 {
      %c0_66 = arith.constant 0 : index
      %c0_67 = arith.constant 0 : index
      %253 = vector.load %arg3[%c0_66, %c0_67] : memref<8x128xf32, #tpu.memory_space<vmem>>, vector<8x128xf32>
      %c0_68 = arith.constant 0 : index
      %c0_69 = arith.constant 0 : index
      %254 = vector.load %arg7[%c0_68, %c0_69] : memref<8x128xf32, #tpu.memory_space<vmem>>, vector<8x128xf32>
      tpu.vector_store %arg7[%c0_68, %c0_69], %253 {strides = array<i32>} : memref<8x128xf32, #tpu.memory_space<vmem>>, vector<8x128xf32>,
      %c0_70 = arith.constant 0 : index
      %c0_71 = arith.constant 0 : index
      %255 = vector.load %arg4[%c0_70, %c0_71] : memref<8x128xf32, #tpu.memory_space<vmem>>, vector<8x128xf32>
      %c0_72 = arith.constant 0 : index
      %c0_73 = arith.constant 0 : index
      %256 = vector.load %arg8[%c0_72, %c0_73] : memref<8x128xf32, #tpu.memory_space<vmem>>, vector<8x128xf32>
      tpu.vector_store %arg8[%c0_72, %c0_73], %255 {strides = array<i32>} : memref<8x128xf32, #tpu.memory_space<vmem>>, vector<8x128xf32>,
    } else {
    }
    %c0 = arith.constant 0 : index
    %c0_1 = arith.constant 0 : index
    %3 = vector.load %arg5[%c0, %c0_1] : memref<128x512xbf16, #tpu.memory_space<vmem>>, vector<128x512xbf16>
    %c0_2 = arith.constant 0 : index
    %c0_3 = arith.constant 0 : index
    %4 = vector.load %arg7[%c0_2, %c0_3] : memref<8x128xf32, #tpu.memory_space<vmem>>, vector<8x128xf32>
    %c0_4 = arith.constant 0 : index
    %c0_5 = arith.constant 0 : index
    %5 = vector.load %arg8[%c0_4, %c0_5] : memref<8x128xf32, #tpu.memory_space<vmem>>, vector<8x128xf32>
    %c0_i32_6 = arith.constant 0 : i32
    %6 = arith.index_cast %c0_i32_6 : i32 to index
    %c0_7 = arith.constant 0 : index
    %c0_8 = arith.constant 0 : index
    %7 = vector.load %arg2[%6, %c0_7, %c0_8] : memref<7x8x512xf32, #tpu.memory_space<vmem>>, vector<1x8x512xf32>
    %8 = vector.shape_cast %7 : vector<1x8x512xf32> to vector<8x512xf32>
    %9 = arith.truncf %4 : vector<8x128xf32> to vector<8x128xbf16>
    %cst = arith.constant dense<0.000000e+00> : vector<8x512xf32>
    %10 = tpu.matmul %9, %3, %cst {dimension_numbers = #tpu.dot_dimension_numbers<[1], [0], [0], [1], [0, 0, 1, 1], [], []>} : vector<8x128xbf16>, vector<128x512xbf16>, vector<8x512xf32> -> vector<8x512xf32>
    %11 = arith.addf %8, %10 : vector<8x512xf32>
    %12 = vector.extract_strided_slice %11 {offsets = [0, 0], sizes = [8, 128], strides = [1, 1]} : vector<8x512xf32> to vector<8x128xf32>
    %13 = arith.negf %12 : vector<8x128xf32>
    %14 = math.exp %13 : vector<8x128xf32>
    %cst_9 = arith.constant 1.000000e+00 : f32
    %15 = vector.broadcast %cst_9 : f32 to vector<8x128xf32>
    %16 = arith.addf %15, %14 : vector<8x128xf32>
    %17 = arith.divf %15, %16 : vector<8x128xf32>
    %18 = vector.extract_strided_slice %11 {offsets = [0, 128], sizes = [8, 128], strides = [1, 1]} : vector<8x512xf32> to vector<8x128xf32>
    %19 = arith.negf %18 : vector<8x128xf32>
    %20 = math.exp %19 : vector<8x128xf32>
    %cst_10 = arith.constant 1.000000e+00 : f32
    %21 = vector.broadcast %cst_10 : f32 to vector<8x128xf32>
    %22 = arith.addf %21, %20 : vector<8x128xf32>
    %23 = arith.divf %21, %22 : vector<8x128xf32>
    %24 = vector.extract_strided_slice %11 {offsets = [0, 256], sizes = [8, 128], strides = [1, 1]} : vector<8x512xf32> to vector<8x128xf32>
    %25 = math.tanh %24 : vector<8x128xf32>
    %26 = vector.extract_strided_slice %11 {offsets = [0, 384], sizes = [8, 128], strides = [1, 1]} : vector<8x512xf32> to vector<8x128xf32>
    %27 = arith.negf %26 : vector<8x128xf32>
    %28 = math.exp %27 : vector<8x128xf32>
    %cst_11 = arith.constant 1.000000e+00 : f32
    %29 = vector.broadcast %cst_11 : f32 to vector<8x128xf32>
    %30 = arith.addf %29, %28 : vector<8x128xf32>
    %31 = arith.divf %29, %30 : vector<8x128xf32>
    %32 = arith.mulf %23, %5 : vector<8x128xf32>
    %33 = arith.mulf %17, %25 : vector<8x128xf32>
    %34 = arith.addf %32, %33 : vector<8x128xf32>
    %35 = math.tanh %34 : vector<8x128xf32>
    %36 = arith.mulf %31, %35 : vector<8x128xf32>
    %37 = arith.index_cast %c0_i32_6 : i32 to index
    %c0_12 = arith.constant 0 : index
    %c0_13 = arith.constant 0 : index
    %38 = vector.load %arg6[%37, %c0_12, %c0_13] : memref<7x8x128xf32, #tpu.memory_space<vmem>>, vector<1x8x128xf32>
    %39 = vector.shape_cast %38 : vector<1x8x128xf32> to vector<8x128xf32>
    %40 = vector.shape_cast %36 : vector<8x128xf32> to vector<1x8x128xf32>
    tpu.vector_store %arg6[%37, %c0_12, %c0_13], %40 {strides = array<i32>} : memref<7x8x128xf32, #tpu.memory_space<vmem>>, vector<1x8x128xf32>,
    %c1_i32 = arith.constant 1 : i32
    %41 = arith.index_cast %c1_i32 : i32 to index
    %c0_14 = arith.constant 0 : index
    %c0_15 = arith.constant 0 : index
    %42 = vector.load %arg2[%41, %c0_14, %c0_15] : memref<7x8x512xf32, #tpu.memory_space<vmem>>, vector<1x8x512xf32>
    %43 = vector.shape_cast %42 : vector<1x8x512xf32> to vector<8x512xf32>
    %44 = arith.truncf %36 : vector<8x128xf32> to vector<8x128xbf16>
    %cst_16 = arith.constant dense<0.000000e+00> : vector<8x512xf32>
    %45 = tpu.matmul %44, %3, %cst_16 {dimension_numbers = #tpu.dot_dimension_numbers<[1], [0], [0], [1], [0, 0, 1, 1], [], []>} : vector<8x128xbf16>, vector<128x512xbf16>, vector<8x512xf32> -> vector<8x512xf32>
    %46 = arith.addf %43, %45 : vector<8x512xf32>
    %47 = vector.extract_strided_slice %46 {offsets = [0, 0], sizes = [8, 128], strides = [1, 1]} : vector<8x512xf32> to vector<8x128xf32>
    %48 = arith.negf %47 : vector<8x128xf32>
    %49 = math.exp %48 : vector<8x128xf32>
    %cst_17 = arith.constant 1.000000e+00 : f32
    %50 = vector.broadcast %cst_17 : f32 to vector<8x128xf32>
    %51 = arith.addf %50, %49 : vector<8x128xf32>
    %52 = arith.divf %50, %51 : vector<8x128xf32>
    %53 = vector.extract_strided_slice %46 {offsets = [0, 128], sizes = [8, 128], strides = [1, 1]} : vector<8x512xf32> to vector<8x128xf32>
    %54 = arith.negf %53 : vector<8x128xf32>
    %55 = math.exp %54 : vector<8x128xf32>
    %cst_18 = arith.constant 1.000000e+00 : f32
    %56 = vector.broadcast %cst_18 : f32 to vector<8x128xf32>
    %57 = arith.addf %56, %55 : vector<8x128xf32>
    %58 = arith.divf %56, %57 : vector<8x128xf32>
    %59 = vector.extract_strided_slice %46 {offsets = [0, 256], sizes = [8, 128], strides = [1, 1]} : vector<8x512xf32> to vector<8x128xf32>
    %60 = math.tanh %59 : vector<8x128xf32>
    %61 = vector.extract_strided_slice %46 {offsets = [0, 384], sizes = [8, 128], strides = [1, 1]} : vector<8x512xf32> to vector<8x128xf32>
    %62 = arith.negf %61 : vector<8x128xf32>
    %63 = math.exp %62 : vector<8x128xf32>
    %cst_19 = arith.constant 1.000000e+00 : f32
    %64 = vector.broadcast %cst_19 : f32 to vector<8x128xf32>
    %65 = arith.addf %64, %63 : vector<8x128xf32>
    %66 = arith.divf %64, %65 : vector<8x128xf32>
    %67 = arith.mulf %58, %34 : vector<8x128xf32>
    %68 = arith.mulf %52, %60 : vector<8x128xf32>
    %69 = arith.addf %67, %68 : vector<8x128xf32>
    %70 = math.tanh %69 : vector<8x128xf32>
    %71 = arith.mulf %66, %70 : vector<8x128xf32>
    %72 = arith.index_cast %c1_i32 : i32 to index
    %c0_20 = arith.constant 0 : index
    %c0_21 = arith.constant 0 : index
    %73 = vector.load %arg6[%72, %c0_20, %c0_21] : memref<7x8x128xf32, #tpu.memory_space<vmem>>, vector<1x8x128xf32>
    %74 = vector.shape_cast %73 : vector<1x8x128xf32> to vector<8x128xf32>
    %75 = vector.shape_cast %71 : vector<8x128xf32> to vector<1x8x128xf32>
    tpu.vector_store %arg6[%72, %c0_20, %c0_21], %75 {strides = array<i32>} : memref<7x8x128xf32, #tpu.memory_space<vmem>>, vector<1x8x128xf32>,
    %c2_i32 = arith.constant 2 : i32
    %76 = arith.index_cast %c2_i32 : i32 to index
    %c0_22 = arith.constant 0 : index
    %c0_23 = arith.constant 0 : index
    %77 = vector.load %arg2[%76, %c0_22, %c0_23] : memref<7x8x512xf32, #tpu.memory_space<vmem>>, vector<1x8x512xf32>
    %78 = vector.shape_cast %77 : vector<1x8x512xf32> to vector<8x512xf32>
    %79 = arith.truncf %71 : vector<8x128xf32> to vector<8x128xbf16>
    %cst_24 = arith.constant dense<0.000000e+00> : vector<8x512xf32>
    %80 = tpu.matmul %79, %3, %cst_24 {dimension_numbers = #tpu.dot_dimension_numbers<[1], [0], [0], [1], [0, 0, 1, 1], [], []>} : vector<8x128xbf16>, vector<128x512xbf16>, vector<8x512xf32> -> vector<8x512xf32>
    %81 = arith.addf %78, %80 : vector<8x512xf32>
    %82 = vector.extract_strided_slice %81 {offsets = [0, 0], sizes = [8, 128], strides = [1, 1]} : vector<8x512xf32> to vector<8x128xf32>
    %83 = arith.negf %82 : vector<8x128xf32>
    %84 = math.exp %83 : vector<8x128xf32>
    %cst_25 = arith.constant 1.000000e+00 : f32
    %85 = vector.broadcast %cst_25 : f32 to vector<8x128xf32>
    %86 = arith.addf %85, %84 : vector<8x128xf32>
    %87 = arith.divf %85, %86 : vector<8x128xf32>
    %88 = vector.extract_strided_slice %81 {offsets = [0, 128], sizes = [8, 128], strides = [1, 1]} : vector<8x512xf32> to vector<8x128xf32>
    %89 = arith.negf %88 : vector<8x128xf32>
    %90 = math.exp %89 : vector<8x128xf32>
    %cst_26 = arith.constant 1.000000e+00 : f32
    %91 = vector.broadcast %cst_26 : f32 to vector<8x128xf32>
    %92 = arith.addf %91, %90 : vector<8x128xf32>
    %93 = arith.divf %91, %92 : vector<8x128xf32>
    %94 = vector.extract_strided_slice %81 {offsets = [0, 256], sizes = [8, 128], strides = [1, 1]} : vector<8x512xf32> to vector<8x128xf32>
    %95 = math.tanh %94 : vector<8x128xf32>
    %96 = vector.extract_strided_slice %81 {offsets = [0, 384], sizes = [8, 128], strides = [1, 1]} : vector<8x512xf32> to vector<8x128xf32>
    %97 = arith.negf %96 : vector<8x128xf32>
    %98 = math.exp %97 : vector<8x128xf32>
    %cst_27 = arith.constant 1.000000e+00 : f32
    %99 = vector.broadcast %cst_27 : f32 to vector<8x128xf32>
    %100 = arith.addf %99, %98 : vector<8x128xf32>
    %101 = arith.divf %99, %100 : vector<8x128xf32>
    %102 = arith.mulf %93, %69 : vector<8x128xf32>
    %103 = arith.mulf %87, %95 : vector<8x128xf32>
    %104 = arith.addf %102, %103 : vector<8x128xf32>
    %105 = math.tanh %104 : vector<8x128xf32>
    %106 = arith.mulf %101, %105 : vector<8x128xf32>
    %107 = arith.index_cast %c2_i32 : i32 to index
    %c0_28 = arith.constant 0 : index
    %c0_29 = arith.constant 0 : index
    %108 = vector.load %arg6[%107, %c0_28, %c0_29] : memref<7x8x128xf32, #tpu.memory_space<vmem>>, vector<1x8x128xf32>
    %109 = vector.shape_cast %108 : vector<1x8x128xf32> to vector<8x128xf32>
    %110 = vector.shape_cast %106 : vector<8x128xf32> to vector<1x8x128xf32>
    tpu.vector_store %arg6[%107, %c0_28, %c0_29], %110 {strides = array<i32>} : memref<7x8x128xf32, #tpu.memory_space<vmem>>, vector<1x8x128xf32>,
    %c3_i32 = arith.constant 3 : i32
    %111 = arith.index_cast %c3_i32 : i32 to index
    %c0_30 = arith.constant 0 : index
    %c0_31 = arith.constant 0 : index
    %112 = vector.load %arg2[%111, %c0_30, %c0_31] : memref<7x8x512xf32, #tpu.memory_space<vmem>>, vector<1x8x512xf32>
    %113 = vector.shape_cast %112 : vector<1x8x512xf32> to vector<8x512xf32>
    %114 = arith.truncf %106 : vector<8x128xf32> to vector<8x128xbf16>
    %cst_32 = arith.constant dense<0.000000e+00> : vector<8x512xf32>
    %115 = tpu.matmul %114, %3, %cst_32 {dimension_numbers = #tpu.dot_dimension_numbers<[1], [0], [0], [1], [0, 0, 1, 1], [], []>} : vector<8x128xbf16>, vector<128x512xbf16>, vector<8x512xf32> -> vector<8x512xf32>
    %116 = arith.addf %113, %115 : vector<8x512xf32>
    %117 = vector.extract_strided_slice %116 {offsets = [0, 0], sizes = [8, 128], strides = [1, 1]} : vector<8x512xf32> to vector<8x128xf32>
    %118 = arith.negf %117 : vector<8x128xf32>
    %119 = math.exp %118 : vector<8x128xf32>
    %cst_33 = arith.constant 1.000000e+00 : f32
    %120 = vector.broadcast %cst_33 : f32 to vector<8x128xf32>
    %121 = arith.addf %120, %119 : vector<8x128xf32>
    %122 = arith.divf %120, %121 : vector<8x128xf32>
    %123 = vector.extract_strided_slice %116 {offsets = [0, 128], sizes = [8, 128], strides = [1, 1]} : vector<8x512xf32> to vector<8x128xf32>
    %124 = arith.negf %123 : vector<8x128xf32>
    %125 = math.exp %124 : vector<8x128xf32>
    %cst_34 = arith.constant 1.000000e+00 : f32
    %126 = vector.broadcast %cst_34 : f32 to vector<8x128xf32>
    %127 = arith.addf %126, %125 : vector<8x128xf32>
    %128 = arith.divf %126, %127 : vector<8x128xf32>
    %129 = vector.extract_strided_slice %116 {offsets = [0, 256], sizes = [8, 128], strides = [1, 1]} : vector<8x512xf32> to vector<8x128xf32>
    %130 = math.tanh %129 : vector<8x128xf32>
    %131 = vector.extract_strided_slice %116 {offsets = [0, 384], sizes = [8, 128], strides = [1, 1]} : vector<8x512xf32> to vector<8x128xf32>
    %132 = arith.negf %131 : vector<8x128xf32>
    %133 = math.exp %132 : vector<8x128xf32>
    %cst_35 = arith.constant 1.000000e+00 : f32
    %134 = vector.broadcast %cst_35 : f32 to vector<8x128xf32>
    %135 = arith.addf %134, %133 : vector<8x128xf32>
    %136 = arith.divf %134, %135 : vector<8x128xf32>
    %137 = arith.mulf %128, %104 : vector<8x128xf32>
    %138 = arith.mulf %122, %130 : vector<8x128xf32>
    %139 = arith.addf %137, %138 : vector<8x128xf32>
    %140 = math.tanh %139 : vector<8x128xf32>
    %141 = arith.mulf %136, %140 : vector<8x128xf32>
    %142 = arith.index_cast %c3_i32 : i32 to index
    %c0_36 = arith.constant 0 : index
    %c0_37 = arith.constant 0 : index
    %143 = vector.load %arg6[%142, %c0_36, %c0_37] : memref<7x8x128xf32, #tpu.memory_space<vmem>>, vector<1x8x128xf32>
    %144 = vector.shape_cast %143 : vector<1x8x128xf32> to vector<8x128xf32>
    %145 = vector.shape_cast %141 : vector<8x128xf32> to vector<1x8x128xf32>
    tpu.vector_store %arg6[%142, %c0_36, %c0_37], %145 {strides = array<i32>} : memref<7x8x128xf32, #tpu.memory_space<vmem>>, vector<1x8x128xf32>,
    %c4_i32 = arith.constant 4 : i32
    %146 = arith.index_cast %c4_i32 : i32 to index
    %c0_38 = arith.constant 0 : index
    %c0_39 = arith.constant 0 : index
    %147 = vector.load %arg2[%146, %c0_38, %c0_39] : memref<7x8x512xf32, #tpu.memory_space<vmem>>, vector<1x8x512xf32>
    %148 = vector.shape_cast %147 : vector<1x8x512xf32> to vector<8x512xf32>
    %149 = arith.truncf %141 : vector<8x128xf32> to vector<8x128xbf16>
    %cst_40 = arith.constant dense<0.000000e+00> : vector<8x512xf32>
    %150 = tpu.matmul %149, %3, %cst_40 {dimension_numbers = #tpu.dot_dimension_numbers<[1], [0], [0], [1], [0, 0, 1, 1], [], []>} : vector<8x128xbf16>, vector<128x512xbf16>, vector<8x512xf32> -> vector<8x512xf32>
    %151 = arith.addf %148, %150 : vector<8x512xf32>
    %152 = vector.extract_strided_slice %151 {offsets = [0, 0], sizes = [8, 128], strides = [1, 1]} : vector<8x512xf32> to vector<8x128xf32>
    %153 = arith.negf %152 : vector<8x128xf32>
    %154 = math.exp %153 : vector<8x128xf32>
    %cst_41 = arith.constant 1.000000e+00 : f32
    %155 = vector.broadcast %cst_41 : f32 to vector<8x128xf32>
    %156 = arith.addf %155, %154 : vector<8x128xf32>
    %157 = arith.divf %155, %156 : vector<8x128xf32>
    %158 = vector.extract_strided_slice %151 {offsets = [0, 128], sizes = [8, 128], strides = [1, 1]} : vector<8x512xf32> to vector<8x128xf32>
    %159 = arith.negf %158 : vector<8x128xf32>
    %160 = math.exp %159 : vector<8x128xf32>
    %cst_42 = arith.constant 1.000000e+00 : f32
    %161 = vector.broadcast %cst_42 : f32 to vector<8x128xf32>
    %162 = arith.addf %161, %160 : vector<8x128xf32>
    %163 = arith.divf %161, %162 : vector<8x128xf32>
    %164 = vector.extract_strided_slice %151 {offsets = [0, 256], sizes = [8, 128], strides = [1, 1]} : vector<8x512xf32> to vector<8x128xf32>
    %165 = math.tanh %164 : vector<8x128xf32>
    %166 = vector.extract_strided_slice %151 {offsets = [0, 384], sizes = [8, 128], strides = [1, 1]} : vector<8x512xf32> to vector<8x128xf32>
    %167 = arith.negf %166 : vector<8x128xf32>
    %168 = math.exp %167 : vector<8x128xf32>
    %cst_43 = arith.constant 1.000000e+00 : f32
    %169 = vector.broadcast %cst_43 : f32 to vector<8x128xf32>
    %170 = arith.addf %169, %168 : vector<8x128xf32>
    %171 = arith.divf %169, %170 : vector<8x128xf32>
    %172 = arith.mulf %163, %139 : vector<8x128xf32>
    %173 = arith.mulf %157, %165 : vector<8x128xf32>
    %174 = arith.addf %172, %173 : vector<8x128xf32>
    %175 = math.tanh %174 : vector<8x128xf32>
    %176 = arith.mulf %171, %175 : vector<8x128xf32>
    %177 = arith.index_cast %c4_i32 : i32 to index
    %c0_44 = arith.constant 0 : index
    %c0_45 = arith.constant 0 : index
    %178 = vector.load %arg6[%177, %c0_44, %c0_45] : memref<7x8x128xf32, #tpu.memory_space<vmem>>, vector<1x8x128xf32>
    %179 = vector.shape_cast %178 : vector<1x8x128xf32> to vector<8x128xf32>
    %180 = vector.shape_cast %176 : vector<8x128xf32> to vector<1x8x128xf32>
    tpu.vector_store %arg6[%177, %c0_44, %c0_45], %180 {strides = array<i32>} : memref<7x8x128xf32, #tpu.memory_space<vmem>>, vector<1x8x128xf32>,
    %c5_i32 = arith.constant 5 : i32
    %181 = arith.index_cast %c5_i32 : i32 to index
    %c0_46 = arith.constant 0 : index
    %c0_47 = arith.constant 0 : index
    %182 = vector.load %arg2[%181, %c0_46, %c0_47] : memref<7x8x512xf32, #tpu.memory_space<vmem>>, vector<1x8x512xf32>
    %183 = vector.shape_cast %182 : vector<1x8x512xf32> to vector<8x512xf32>
    %184 = arith.truncf %176 : vector<8x128xf32> to vector<8x128xbf16>
    %cst_48 = arith.constant dense<0.000000e+00> : vector<8x512xf32>
    %185 = tpu.matmul %184, %3, %cst_48 {dimension_numbers = #tpu.dot_dimension_numbers<[1], [0], [0], [1], [0, 0, 1, 1], [], []>} : vector<8x128xbf16>, vector<128x512xbf16>, vector<8x512xf32> -> vector<8x512xf32>
    %186 = arith.addf %183, %185 : vector<8x512xf32>
    %187 = vector.extract_strided_slice %186 {offsets = [0, 0], sizes = [8, 128], strides = [1, 1]} : vector<8x512xf32> to vector<8x128xf32>
    %188 = arith.negf %187 : vector<8x128xf32>
    %189 = math.exp %188 : vector<8x128xf32>
    %cst_49 = arith.constant 1.000000e+00 : f32
    %190 = vector.broadcast %cst_49 : f32 to vector<8x128xf32>
    %191 = arith.addf %190, %189 : vector<8x128xf32>
    %192 = arith.divf %190, %191 : vector<8x128xf32>
    %193 = vector.extract_strided_slice %186 {offsets = [0, 128], sizes = [8, 128], strides = [1, 1]} : vector<8x512xf32> to vector<8x128xf32>
    %194 = arith.negf %193 : vector<8x128xf32>
    %195 = math.exp %194 : vector<8x128xf32>
    %cst_50 = arith.constant 1.000000e+00 : f32
    %196 = vector.broadcast %cst_50 : f32 to vector<8x128xf32>
    %197 = arith.addf %196, %195 : vector<8x128xf32>
    %198 = arith.divf %196, %197 : vector<8x128xf32>
    %199 = vector.extract_strided_slice %186 {offsets = [0, 256], sizes = [8, 128], strides = [1, 1]} : vector<8x512xf32> to vector<8x128xf32>
    %200 = math.tanh %199 : vector<8x128xf32>
    %201 = vector.extract_strided_slice %186 {offsets = [0, 384], sizes = [8, 128], strides = [1, 1]} : vector<8x512xf32> to vector<8x128xf32>
    %202 = arith.negf %201 : vector<8x128xf32>
    %203 = math.exp %202 : vector<8x128xf32>
    %cst_51 = arith.constant 1.000000e+00 : f32
    %204 = vector.broadcast %cst_51 : f32 to vector<8x128xf32>
    %205 = arith.addf %204, %203 : vector<8x128xf32>
    %206 = arith.divf %204, %205 : vector<8x128xf32>
    %207 = arith.mulf %198, %174 : vector<8x128xf32>
    %208 = arith.mulf %192, %200 : vector<8x128xf32>
    %209 = arith.addf %207, %208 : vector<8x128xf32>
    %210 = math.tanh %209 : vector<8x128xf32>
    %211 = arith.mulf %206, %210 : vector<8x128xf32>
    %212 = arith.index_cast %c5_i32 : i32 to index
    %c0_52 = arith.constant 0 : index
    %c0_53 = arith.constant 0 : index
    %213 = vector.load %arg6[%212, %c0_52, %c0_53] : memref<7x8x128xf32, #tpu.memory_space<vmem>>, vector<1x8x128xf32>
    %214 = vector.shape_cast %213 : vector<1x8x128xf32> to vector<8x128xf32>
    %215 = vector.shape_cast %211 : vector<8x128xf32> to vector<1x8x128xf32>
    tpu.vector_store %arg6[%212, %c0_52, %c0_53], %215 {strides = array<i32>} : memref<7x8x128xf32, #tpu.memory_space<vmem>>, vector<1x8x128xf32>,
    %c6_i32 = arith.constant 6 : i32
    %216 = arith.index_cast %c6_i32 : i32 to index
    %c0_54 = arith.constant 0 : index
    %c0_55 = arith.constant 0 : index
    %217 = vector.load %arg2[%216, %c0_54, %c0_55] : memref<7x8x512xf32, #tpu.memory_space<vmem>>, vector<1x8x512xf32>
    %218 = vector.shape_cast %217 : vector<1x8x512xf32> to vector<8x512xf32>
    %219 = arith.truncf %211 : vector<8x128xf32> to vector<8x128xbf16>
    %cst_56 = arith.constant dense<0.000000e+00> : vector<8x512xf32>
    %220 = tpu.matmul %219, %3, %cst_56 {dimension_numbers = #tpu.dot_dimension_numbers<[1], [0], [0], [1], [0, 0, 1, 1], [], []>} : vector<8x128xbf16>, vector<128x512xbf16>, vector<8x512xf32> -> vector<8x512xf32>
    %221 = arith.addf %218, %220 : vector<8x512xf32>
    %222 = vector.extract_strided_slice %221 {offsets = [0, 0], sizes = [8, 128], strides = [1, 1]} : vector<8x512xf32> to vector<8x128xf32>
    %223 = arith.negf %222 : vector<8x128xf32>
    %224 = math.exp %223 : vector<8x128xf32>
    %cst_57 = arith.constant 1.000000e+00 : f32
    %225 = vector.broadcast %cst_57 : f32 to vector<8x128xf32>
    %226 = arith.addf %225, %224 : vector<8x128xf32>
    %227 = arith.divf %225, %226 : vector<8x128xf32>
    %228 = vector.extract_strided_slice %221 {offsets = [0, 128], sizes = [8, 128], strides = [1, 1]} : vector<8x512xf32> to vector<8x128xf32>
    %229 = arith.negf %228 : vector<8x128xf32>
    %230 = math.exp %229 : vector<8x128xf32>
    %cst_58 = arith.constant 1.000000e+00 : f32
    %231 = vector.broadcast %cst_58 : f32 to vector<8x128xf32>
    %232 = arith.addf %231, %230 : vector<8x128xf32>
    %233 = arith.divf %231, %232 : vector<8x128xf32>
    %234 = vector.extract_strided_slice %221 {offsets = [0, 256], sizes = [8, 128], strides = [1, 1]} : vector<8x512xf32> to vector<8x128xf32>
    %235 = math.tanh %234 : vector<8x128xf32>
    %236 = vector.extract_strided_slice %221 {offsets = [0, 384], sizes = [8, 128], strides = [1, 1]} : vector<8x512xf32> to vector<8x128xf32>
    %237 = arith.negf %236 : vector<8x128xf32>
    %238 = math.exp %237 : vector<8x128xf32>
    %cst_59 = arith.constant 1.000000e+00 : f32
    %239 = vector.broadcast %cst_59 : f32 to vector<8x128xf32>
    %240 = arith.addf %239, %238 : vector<8x128xf32>
    %241 = arith.divf %239, %240 : vector<8x128xf32>
    %242 = arith.mulf %233, %209 : vector<8x128xf32>
    %243 = arith.mulf %227, %235 : vector<8x128xf32>
    %244 = arith.addf %242, %243 : vector<8x128xf32>
    %245 = math.tanh %244 : vector<8x128xf32>
    %246 = arith.mulf %241, %245 : vector<8x128xf32>
    %247 = arith.index_cast %c6_i32 : i32 to index
    %c0_60 = arith.constant 0 : index
    %c0_61 = arith.constant 0 : index
    %248 = vector.load %arg6[%247, %c0_60, %c0_61] : memref<7x8x128xf32, #tpu.memory_space<vmem>>, vector<1x8x128xf32>
    %249 = vector.shape_cast %248 : vector<1x8x128xf32> to vector<8x128xf32>
    %250 = vector.shape_cast %246 : vector<8x128xf32> to vector<1x8x128xf32>
    tpu.vector_store %arg6[%247, %c0_60, %c0_61], %250 {strides = array<i32>} : memref<7x8x128xf32, #tpu.memory_space<vmem>>, vector<1x8x128xf32>,
    %c7_i32 = arith.constant 7 : i32
    %c0_62 = arith.constant 0 : index
    %c0_63 = arith.constant 0 : index
    %251 = vector.load %arg7[%c0_62, %c0_63] : memref<8x128xf32, #tpu.memory_space<vmem>>, vector<8x128xf32>
    tpu.vector_store %arg7[%c0_62, %c0_63], %246 {strides = array<i32>} : memref<8x128xf32, #tpu.memory_space<vmem>>, vector<8x128xf32>,
    %c0_64 = arith.constant 0 : index
    %c0_65 = arith.constant 0 : index
    %252 = vector.load %arg8[%c0_64, %c0_65] : memref<8x128xf32, #tpu.memory_space<vmem>>, vector<8x128xf32>
    tpu.vector_store %arg8[%c0_64, %c0_65], %244 {strides = array<i32>} : memref<8x128xf32, #tpu.memory_space<vmem>>, vector<8x128xf32>,
    return
  }
  func.func @transform_0(%arg0: i32, %arg1: i32) -> (i32, i32, i32) {
    %c0_i32 = arith.constant 0 : i32
    %c0_i32_0 = arith.constant 0 : i32
    return %arg1, %arg0, %c0_i32 : i32, i32, i32
  }
  func.func @transform_1(%arg0: i32, %arg1: i32) -> (i32, i32) {
    %c0_i32 = arith.constant 0 : i32
    %c0_i32_0 = arith.constant 0 : i32
    return %arg0, %c0_i32 : i32, i32
  }
  func.func @transform_2(%arg0: i32, %arg1: i32) -> (i32, i32) {
    %c0_i32 = arith.constant 0 : i32
    %c0_i32_0 = arith.constant 0 : i32
    return %arg0, %c0_i32 : i32, i32
  }
  func.func @transform_3(%arg0: i32, %arg1: i32) -> (i32, i32) {
    %c0_i32 = arith.constant 0 : i32
    %c0_i32_0 = arith.constant 0 : i32
    %c0_i32_1 = arith.constant 0 : i32
    return %c0_i32, %c0_i32_0 : i32, i32
  }
  func.func @transform_4(%arg0: i32, %arg1: i32) -> (i32, i32, i32) {
    %c0_i32 = arith.constant 0 : i32
    %c0_i32_0 = arith.constant 0 : i32
    return %arg1, %arg0, %c0_i32 : i32, i32, i32
  }
}

module attributes {stable_mosaic.version = 11 : i64} {
  func.func @_ce_kernel(%arg0: i32, %arg1: i32, %arg2: memref<56x128xf32, #tpu.memory_space<vmem>>, %arg3: memref<56x1xi32, #tpu.memory_space<vmem>>, %arg4: memref<128x128xbf16, #tpu.memory_space<vmem>>, %arg5: memref<1x128xf32, #tpu.memory_space<vmem>>, %arg6: memref<56x1xf32, #tpu.memory_space<vmem>>, %arg7: memref<56x1xf32, #tpu.memory_space<vmem>>, %arg8: memref<56x1xf32, #tpu.memory_space<vmem>>, %arg9: memref<56x1xf32, #tpu.memory_space<vmem>>) attributes {dimension_semantics = [#tpu.dimension_semantics<parallel>, #tpu.dimension_semantics<arbitrary>], iteration_bounds = array<i64: 1, 1>, scalar_prefetch = 0 : i64, scratch_operands = 3 : i64, tpu.core_type = #tpu.core_type<tc>, window_params = [{transform_indices = @transform_0, window_bounds = array<i64: 56, 128>}, {transform_indices = @transform_1, window_bounds = array<i64: 56, 1>}, {transform_indices = @transform_2, window_bounds = array<i64: 128, 128>}, {transform_indices = @transform_3, window_bounds = array<i64: 1, 128>}, {transform_indices = @transform_4, window_bounds = array<i64: 56, 1>}]} {
    %c0_i32 = arith.constant 0 : i32
    %0 = arith.cmpi eq, %arg1, %c0_i32 : i32
    %1 = arith.extui %0 : i1 to i32
    %c0_i32_0 = arith.constant 0 : i32
    %2 = arith.cmpi ne, %1, %c0_i32_0 : i32
    scf.if %2 {
      %cst_26 = arith.constant 0xFF800000 : f32
      %43 = vector.broadcast %cst_26 : f32 to vector<56x1xf32>
      %c0_27 = arith.constant 0 : index
      %c0_28 = arith.constant 0 : index
      %44 = vector.load %arg7[%c0_27, %c0_28] : memref<56x1xf32, #tpu.memory_space<vmem>>, vector<56x1xf32>
      tpu.vector_store %arg7[%c0_27, %c0_28], %43 {strides = array<i32>} : memref<56x1xf32, #tpu.memory_space<vmem>>, vector<56x1xf32>,
      %cst_29 = arith.constant 0.000000e+00 : f32
      %45 = vector.broadcast %cst_29 : f32 to vector<56x1xf32>
      %c0_30 = arith.constant 0 : index
      %c0_31 = arith.constant 0 : index
      %46 = vector.load %arg8[%c0_30, %c0_31] : memref<56x1xf32, #tpu.memory_space<vmem>>, vector<56x1xf32>
      tpu.vector_store %arg8[%c0_30, %c0_31], %45 {strides = array<i32>} : memref<56x1xf32, #tpu.memory_space<vmem>>, vector<56x1xf32>,
      %cst_32 = arith.constant 0.000000e+00 : f32
      %47 = vector.broadcast %cst_32 : f32 to vector<56x1xf32>
      %c0_33 = arith.constant 0 : index
      %c0_34 = arith.constant 0 : index
      %48 = vector.load %arg9[%c0_33, %c0_34] : memref<56x1xf32, #tpu.memory_space<vmem>>, vector<56x1xf32>
      tpu.vector_store %arg9[%c0_33, %c0_34], %47 {strides = array<i32>} : memref<56x1xf32, #tpu.memory_space<vmem>>, vector<56x1xf32>,
    } else {
    }
    %c0 = arith.constant 0 : index
    %c0_1 = arith.constant 0 : index
    %3 = vector.load %arg2[%c0, %c0_1] : memref<56x128xf32, #tpu.memory_space<vmem>>, vector<56x128xf32>
    %4 = arith.truncf %3 : vector<56x128xf32> to vector<56x128xbf16>
    %c0_2 = arith.constant 0 : index
    %c0_3 = arith.constant 0 : index
    %5 = vector.load %arg4[%c0_2, %c0_3] : memref<128x128xbf16, #tpu.memory_space<vmem>>, vector<128x128xbf16>
    %cst = arith.constant dense<0.000000e+00> : vector<56x128xf32>
    %6 = tpu.matmul %4, %5, %cst {dimension_numbers = #tpu.dot_dimension_numbers<[1], [0], [0], [1], [0, 0, 1, 1], [], []>} : vector<56x128xbf16>, vector<128x128xbf16>, vector<56x128xf32> -> vector<56x128xf32>
    %c0_4 = arith.constant 0 : index
    %c0_5 = arith.constant 0 : index
    %7 = vector.load %arg5[%c0_4, %c0_5] : memref<1x128xf32, #tpu.memory_space<vmem>>, vector<1x128xf32>
    %8 = vector.broadcast %7 : vector<1x128xf32> to vector<56x128xf32>
    %9 = arith.addf %6, %8 : vector<56x128xf32>
    %c0_6 = arith.constant 0 : index
    %c0_7 = arith.constant 0 : index
    %10 = vector.load %arg7[%c0_6, %c0_7] : memref<56x1xf32, #tpu.memory_space<vmem>>, vector<56x1xf32>
    %cst_8 = arith.constant dense<0xFF800000> : vector<56xf32>
    %11 = vector.multi_reduction <maximumf>, %9, %cst_8 [1] : vector<56x128xf32> to vector<56xf32>
    %12 = vector.shape_cast %11 : vector<56xf32> to vector<56x1xf32>
    %13 = arith.maximumf %10, %12 : vector<56x1xf32>
    %c0_9 = arith.constant 0 : index
    %c0_10 = arith.constant 0 : index
    %14 = vector.load %arg8[%c0_9, %c0_10] : memref<56x1xf32, #tpu.memory_space<vmem>>, vector<56x1xf32>
    %15 = arith.subf %10, %13 : vector<56x1xf32>
    %16 = math.exp %15 : vector<56x1xf32>
    %17 = arith.mulf %14, %16 : vector<56x1xf32>
    %18 = vector.broadcast %13 : vector<56x1xf32> to vector<56x128xf32>
    %19 = arith.subf %9, %18 : vector<56x128xf32>
    %20 = math.exp %19 : vector<56x128xf32>
    %cst_11 = arith.constant dense<0.000000e+00> : vector<56xf32>
    %21 = vector.multi_reduction <add>, %20, %cst_11 [1] : vector<56x128xf32> to vector<56xf32>
    %22 = vector.shape_cast %21 : vector<56xf32> to vector<56x1xf32>
    %23 = arith.addf %17, %22 : vector<56x1xf32>
    %c0_12 = arith.constant 0 : index
    %c0_13 = arith.constant 0 : index
    %24 = vector.load %arg8[%c0_12, %c0_13] : memref<56x1xf32, #tpu.memory_space<vmem>>, vector<56x1xf32>
    tpu.vector_store %arg8[%c0_12, %c0_13], %23 {strides = array<i32>} : memref<56x1xf32, #tpu.memory_space<vmem>>, vector<56x1xf32>,
    %c0_14 = arith.constant 0 : index
    %c0_15 = arith.constant 0 : index
    %25 = vector.load %arg7[%c0_14, %c0_15] : memref<56x1xf32, #tpu.memory_space<vmem>>, vector<56x1xf32>
    tpu.vector_store %arg7[%c0_14, %c0_15], %13 {strides = array<i32>} : memref<56x1xf32, #tpu.memory_space<vmem>>, vector<56x1xf32>,
    %26 = tpu.iota {dimensions = array<i32: 1>} : vector<56x128xi32>
    %c128_i32 = arith.constant 128 : i32
    %27 = arith.muli %arg1, %c128_i32 : i32
    %28 = vector.broadcast %27 : i32 to vector<56x128xi32>
    %29 = arith.addi %26, %28 : vector<56x128xi32>
    %c0_16 = arith.constant 0 : index
    %c0_17 = arith.constant 0 : index
    %30 = vector.load %arg9[%c0_16, %c0_17] : memref<56x1xf32, #tpu.memory_space<vmem>>, vector<56x1xf32>
    %c0_18 = arith.constant 0 : index
    %c0_19 = arith.constant 0 : index
    %31 = vector.load %arg3[%c0_18, %c0_19] : memref<56x1xi32, #tpu.memory_space<vmem>>, vector<56x1xi32>
    %32 = vector.broadcast %31 : vector<56x1xi32> to vector<56x128xi32>
    %33 = arith.cmpi eq, %29, %32 : vector<56x128xi32>
    %cst_20 = arith.constant 0.000000e+00 : f32
    %34 = vector.broadcast %cst_20 : f32 to vector<56x128xf32>
    %35 = arith.select %33, %9, %34 : vector<56x128xi1>, vector<56x128xf32>
    %cst_21 = arith.constant dense<0.000000e+00> : vector<56xf32>
    %36 = vector.multi_reduction <add>, %35, %cst_21 [1] : vector<56x128xf32> to vector<56xf32>
    %37 = vector.shape_cast %36 : vector<56xf32> to vector<56x1xf32>
    %38 = arith.addf %30, %37 : vector<56x1xf32>
    %c0_22 = arith.constant 0 : index
    %c0_23 = arith.constant 0 : index
    %39 = vector.load %arg9[%c0_22, %c0_23] : memref<56x1xf32, #tpu.memory_space<vmem>>, vector<56x1xf32>
    tpu.vector_store %arg9[%c0_22, %c0_23], %38 {strides = array<i32>} : memref<56x1xf32, #tpu.memory_space<vmem>>, vector<56x1xf32>,
    %c0_i32_24 = arith.constant 0 : i32
    %40 = arith.cmpi eq, %arg1, %c0_i32_24 : i32
    %41 = arith.extui %40 : i1 to i32
    %c0_i32_25 = arith.constant 0 : i32
    %42 = arith.cmpi ne, %41, %c0_i32_25 : i32
    scf.if %42 {
      %c0_26 = arith.constant 0 : index
      %c0_27 = arith.constant 0 : index
      %43 = vector.load %arg7[%c0_26, %c0_27] : memref<56x1xf32, #tpu.memory_space<vmem>>, vector<56x1xf32>
      %c0_28 = arith.constant 0 : index
      %c0_29 = arith.constant 0 : index
      %44 = vector.load %arg8[%c0_28, %c0_29] : memref<56x1xf32, #tpu.memory_space<vmem>>, vector<56x1xf32>
      %45 = math.log %44 : vector<56x1xf32>
      %46 = arith.addf %43, %45 : vector<56x1xf32>
      %c0_30 = arith.constant 0 : index
      %c0_31 = arith.constant 0 : index
      %47 = vector.load %arg9[%c0_30, %c0_31] : memref<56x1xf32, #tpu.memory_space<vmem>>, vector<56x1xf32>
      %48 = arith.subf %46, %47 : vector<56x1xf32>
      %c0_32 = arith.constant 0 : index
      %c0_33 = arith.constant 0 : index
      %49 = vector.load %arg6[%c0_32, %c0_33] : memref<56x1xf32, #tpu.memory_space<vmem>>, vector<56x1xf32>
      tpu.vector_store %arg6[%c0_32, %c0_33], %48 {strides = array<i32>} : memref<56x1xf32, #tpu.memory_space<vmem>>, vector<56x1xf32>,
    } else {
    }
    return
  }
  func.func @transform_0(%arg0: i32, %arg1: i32) -> (i32, i32) {
    %c0_i32 = arith.constant 0 : i32
    %c0_i32_0 = arith.constant 0 : i32
    return %arg0, %c0_i32 : i32, i32
  }
  func.func @transform_1(%arg0: i32, %arg1: i32) -> (i32, i32) {
    %c0_i32 = arith.constant 0 : i32
    %c0_i32_0 = arith.constant 0 : i32
    return %arg0, %c0_i32 : i32, i32
  }
  func.func @transform_2(%arg0: i32, %arg1: i32) -> (i32, i32) {
    %c0_i32 = arith.constant 0 : i32
    %c0_i32_0 = arith.constant 0 : i32
    return %c0_i32, %arg1 : i32, i32
  }
  func.func @transform_3(%arg0: i32, %arg1: i32) -> (i32, i32) {
    %c0_i32 = arith.constant 0 : i32
    %c0_i32_0 = arith.constant 0 : i32
    return %c0_i32, %arg1 : i32, i32
  }
  func.func @transform_4(%arg0: i32, %arg1: i32) -> (i32, i32) {
    %c0_i32 = arith.constant 0 : i32
    %c0_i32_0 = arith.constant 0 : i32
    return %arg0, %c0_i32 : i32, i32
  }
}

</mosaic_0001>

<bundles_post_ra>
// kernel: tpu_custom_call.1
= control target key start
LH: loop header
LB: loop body
LE: loop exit
PB: predicated region body
PF: predicated region fallthrough
CT: control target
= control target key end

     0   :  { %6 = vsyncpa [#allocation3], 0  ;;  %s340_s0 = inlined_call_operand.hbm [shape: f32[8,128], index: 0, kind: input, shape index: {}]   ;;  %s341_s1 = inlined_call_operand.hbm [shape: f32[8,128], index: 1, kind: output, shape index: {}]  }
   0x1   :  { %7 = vsyncpa [#allocation4], 0  ;;  %s261_s6 = smov 0  }
   0x2 LB: > { %s144_s7 = sadd.s32 4294967295, %s247_s6   ;;  %p145_p0 = scmp.ge.s32.totalorder %s247_s6, 1  ;;  %s247_s6 = sphi %s261_s6, %s13_s6  }
   0x3   : > { %p60_p1 = scmp.lt.s32.totalorder %s247_s6, 3  ;;  %p275_p3 = scmp.eq.s32.totalorder %s144_s7, 0 }
   0x4   : > { %s249_s10 = smov [#allocation2]   ;;  %s179_s15 = scalar_lea.hbm %s340_s0, 128 }
   0x5   : > { %p269_p2 = pnand %p145_p0, %p60_p1  ;;  %s73_s11 = sshll.u32 %s249_s10, 4  ;;  %s74_s11 = int_to_ptr.vmem [resolvable:$true] %s73_s11 }
   0x6   : > { %s346_s9 = scalar_select %p275_p3, 1, 0 }
   0x7   : > { %s345_s8 = scalar_select %p269_p2, 1, 0 }
   0x8   : > { %p161_p4 = pneg %p269_p2  ;;  %p180_p6 = scmp.ne.s32.totalorder %s340_s0, %s179_s15 }
   0x9   : > { %p186_p10 = scmp.lt.u32.totalorder %s179_s15, %s340_s0 }
   0xa   : > { %p283_p5 = pnand %p275_p3, %p161_p4 }
   0xc   : > { %p181_p7 = pneg %p283_p5 }
   0xe   : > { %p182_p8 = pnand %p181_p7, %p180_p6 }
  0x10   : > { %p183_p9 = pneg %p182_p8 }
  0x12   : > { %p188_p11 = pnand %p186_p10, %p183_p9 }
  0x14   : > { %191 = shalt.err (!%p188_p11)
}
  0x15   : > { %s192_s20 = scalar_lea.vmem %s74_s11, 128  ;;  %p200_p1 = scmp.lt.s32.totalorder %s74_s11, %s74_s11 }
  0x16   : > { %p193_p12 = scmp.ne.s32.totalorder %s74_s11, %s192_s20  ;;  %p201_p4 = scmp.lt.s32.totalorder %s192_s20, %s192_s20 }
  0x18   : > { %p195_p13 = pnand %p193_p12, %p181_p7  ;;  %p202_p3 = por %p201_p4, %p200_p1 }
  0x1a   : > { %p196_p0 = pneg %p195_p13 }
  0x1c   : > { %p203_p2 = pnand %p202_p3, %p196_p0 }
  0x1e   : > { %206 = shalt.err (!%p203_p2)
}
  0x1f   : > { %164 = dma.hbm_to_vmem [thread:$0]  (!%p283_p5), %s340_s0, 128, %s74_s11, [#allocation3]  }
  0x20   : > { %p348_p6 = scmp.ne.s32.totalorder %s345_s8, 0 }
  0x21   : > { %p349_p8 = scmp.ne.s32.totalorder (!%p348_p6), %s346_s9, 0 }
  0x22   : > { %86 = sbr.rel (%p348_p6) target bundleno = 67 (0x43), region = 24 }
  0x29   : > { %238 = dma.done.wait (%p349_p8), [#allocation3], 128  }
  0x2a   : > { %240 = vsyncadd (%p349_p8), [#allocation3], 4294967168  ;;  %s250_s23 = smov [#allocation5]   ;;  %p311_p2 = scmp.eq.s32.totalorder %s144_s7, 1  ;;  %v96_v0 = vld [vmem:[#allocation2] sm:$0xff] }
  0x2b   : > { %s105_s24 = sshll.u32 %s250_s23, 4  ;;  %97 = vst [vmem:[#allocation5] sm:$0xff] %v96_v0  ;;  %s106_s24 = int_to_ptr.vmem [resolvable:$true] %s105_s24 }
  0x2c   : > { %s207_s26 = scalar_lea.vmem %s106_s24, 128  ;;  %p214_p9 = scmp.lt.s32.totalorder %s106_s24, %s106_s24 }
  0x2d   : > { %p208_p3 = scmp.ne.s32.totalorder %s106_s24, %s207_s26  ;;  %p215_p10 = scmp.lt.s32.totalorder %s207_s26, %s207_s26 }
  0x2f   : > { %p209_p5 = pnand %p208_p3, %p311_p2  ;;  %p216_p11 = por %p215_p10, %p214_p9 }
  0x31   : > { %p210_p7 = pneg %p209_p5 }
  0x33   : > { %p217_p12 = pnand %p216_p11, %p210_p7 }
  0x35   : > { %220 = shalt.err (!%p217_p12)
}
  0x36   : > { %s221_s29 = scalar_lea.hbm %s341_s1, 128 }
  0x37   : > { %p222_p13 = scmp.ne.s32.totalorder %s341_s1, %s221_s29  ;;  %p227_p4 = scmp.lt.u32.totalorder %s221_s29, %s341_s1 }
  0x39   : > { %p223_p0 = pnand %p222_p13, %p311_p2 }
  0x3b   : > { %p224_p1 = pneg %p223_p0 }
  0x3d   : > { %p229_p6 = pnand %p227_p4, %p224_p1 }
  0x3f   : > { %232 = shalt.err (!%p229_p6)
}
  0x40   : > { %158 = dma.vmem_to_hbm [thread:$0]  (%p311_p2), %s106_s24, 128, %s341_s1, [#allocation4]  }
  0x41   : > { %242 = dma.done.wait (%p311_p2), [#allocation4], 128  }
  0x42   : > { %244 = vsyncadd (%p311_p2), [#allocation4], 4294967168 }
  0x43 PF: > { %s13_s6 = sadd.s32 1, %s247_s6  }
  0x44   : > { %p10_p8 = scmp.ge.s32.totalorder %s13_s6, 4  }
  0x46   :  { %12 = sbr.rel (!%p10_p8) target bundleno = 2 (0x2), region = 53 }
  0x4d   :  { %118 = vsyncpa [#allocation3], 1 }
  0x4e   :  { %120 = vsyncpa [#allocation3 + $0x1], 1 }
  0x4f   :  { %121 = vsyncpa [#allocation4], 1 }
  0x50   :  { %123 = vsyncpa [#allocation4 + $0x1], 1 }

// kernel: encoder_decoder_train.7
= control target key start
LH: loop header
LB: loop body
LE: loop exit
PB: predicated region body
PF: predicated region fallthrough
CT: control target
= control target key end

     0   :  { %v495_v1 = vmov 0   ;;  %v60_v44 = vlaneseq  ;;  %s764_s1 = inlined_call_operand.vmem [shape: bf16[128,512], index: 1, kind: input, shape index: {}]   ;;  %s765_s0 = inlined_call_operand.vmem [shape: f32[56,128], index: 0, kind: input, shape index: {}]   ;;  %s766_s2 = inlined_call_operand.vmem [shape: f32[1,512], index: 2, kind: input, shape index: {}]   ;;  %s767_s3 = inlined_call_operand.vmem [shape: f32[56,512], index: 3, kind: output, shape index: {}]  }
   0x1   :  { %v447_v0 = vld [vmem:[%s764_s1 + $0x4] ss:$16 sps:$4 sm:$0xff]   ;;  %272 = vmatprep.mubr.bf16.mxu0 %v495_v1  ;;  %343 = vmatprep.mubr.bf16.mxu1 %v495_v1  ;;  %v449_v2 = vld [vmem:[%s764_s1 + $0xc] ss:$16 sps:$4 sm:$0xff]   ;;  %v451_v3 = vld [vmem:[%s764_s1] ss:$16 sps:$4 sm:$0xff]  }
   0x2   :  { %240 = vmatprep.subr.bf16.mxu0 %v447_v0  ;;  %v452_v4 = vld [vmem:[%s764_s1 + $0x8] ss:$16 sps:$4 sm:$0xff]   ;;  %311 = vmatprep.subr.bf16.mxu1 %v449_v2  ;;  %v453_v5 = vld [vmem:[%s764_s1 + $0x24] ss:$16 sps:$4 sm:$0xff]   ;;  %v455_v6 = vld [vmem:[%s764_s1 + $0x2c] ss:$16 sps:$4 sm:$0xff]  }
   0x3   :  { %241 = vmatpush1.bf16.msra.mxu0 %v451_v3  ;;  %312 = vmatpush1.bf16.msra.mxu1 %v452_v4  ;;  %v457_v7 = vld [vmem:[%s764_s1 + $0x20] ss:$16 sps:$4 sm:$0xff]   ;;  %v458_v8 = vld [vmem:[%s764_s1 + $0x28] ss:$16 sps:$4 sm:$0xff]   ;;  %v459_v9 = vld [vmem:[%s764_s1 + $0x44] ss:$16 sps:$4 sm:$0xff]  }
   0x4   :  { %242 = vmatprep.subr.bf16.mxu0 %v453_v5  ;;  %313 = vmatprep.subr.bf16.mxu1 %v455_v6  ;;  %v461_v10 = vld [vmem:[%s764_s1 + $0x4c] ss:$16 sps:$4 sm:$0xff]   ;;  %v463_v11 = vld [vmem:[%s764_s1 + $0x40] ss:$16 sps:$4 sm:$0xff]   ;;  %v464_v12 = vld [vmem:[%s764_s1 + $0x48] ss:$16 sps:$4 sm:$0xff]  }
   0x5   :  { %v465_v13 = vld [vmem:[%s764_s1 + $0x64] ss:$16 sps:$4 sm:$0xff]   ;;  %v467_v14 = vld [vmem:[%s764_s1 + $0x6c] ss:$16 sps:$4 sm:$0xff]   ;;  %v469_v15 = vld [vmem:[%s764_s1 + $0x60] ss:$16 sps:$4 sm:$0xff]  }
   0x6   :  { %v470_v16 = vld [vmem:[%s764_s1 + $0x68] ss:$16 sps:$4 sm:$0xff]   ;;  %v471_v17 = vld [vmem:[%s764_s1 + $0x84] ss:$16 sps:$4 sm:$0xff]   ;;  %v473_v18 = vld [vmem:[%s764_s1 + $0x8c] ss:$16 sps:$4 sm:$0xff]  }
   0x7   :  { %243 = vmatpush1.bf16.msra.mxu0 %v457_v7  ;;  %314 = vmatpush1.bf16.msra.mxu1 %v458_v8  ;;  %v475_v19 = vld [vmem:[%s764_s1 + $0x80] ss:$16 sps:$4 sm:$0xff]   ;;  %v476_v20 = vld [vmem:[%s764_s1 + $0x88] ss:$16 sps:$4 sm:$0xff]   ;;  %v477_v21 = vld [vmem:[%s764_s1 + $0xa4] ss:$16 sps:$4 sm:$0xff]  }
   0x8   :  { %244 = vmatprep.subr.bf16.mxu0 %v459_v9  ;;  %315 = vmatprep.subr.bf16.mxu1 %v461_v10  ;;  %v479_v22 = vld [vmem:[%s764_s1 + $0xac] ss:$16 sps:$4 sm:$0xff]   ;;  %v481_v23 = vld [vmem:[%s764_s1 + $0xa0] ss:$16 sps:$4 sm:$0xff]   ;;  %v482_v24 = vld [vmem:[%s764_s1 + $0xa8] ss:$16 sps:$4 sm:$0xff]  }
   0x9   :  { %v483_v25 = vld [vmem:[%s764_s1 + $0xc4] ss:$16 sps:$4 sm:$0xff]   ;;  %v485_v26 = vld [vmem:[%s764_s1 + $0xcc] ss:$16 sps:$4 sm:$0xff]   ;;  %v487_v27 = vld [vmem:[%s764_s1 + $0xc0] ss:$16 sps:$4 sm:$0xff]  }
   0xa   :  { %v488_v28 = vld [vmem:[%s764_s1 + $0xc8] ss:$16 sps:$4 sm:$0xff]   ;;  %v489_v29 = vld [vmem:[%s764_s1 + $0xe4] ss:$16 sps:$4 sm:$0xff]   ;;  %v491_v30 = vld [vmem:[%s764_s1 + $0xec] ss:$16 sps:$4 sm:$0xff]  }
   0xb   :  { %245 = vmatpush1.bf16.msra.mxu0 %v463_v11  ;;  %316 = vmatpush1.bf16.msra.mxu1 %v464_v12  ;;  %v493_v31 = vld [vmem:[%s764_s1 + $0xe0] ss:$16 sps:$4 sm:$0xff]   ;;  %v494_v32 = vld [vmem:[%s764_s1 + $0xe8] ss:$16 sps:$4 sm:$0xff]   ;;  %v61_v45 = vshrl.u32 %v60_v44, 7 }
   0xc   :  { %246 = vmatprep.subr.bf16.mxu0 %v465_v13  ;;  %317 = vmatprep.subr.bf16.mxu1 %v467_v14  ;;  %v15_v33 = vld [vmem:[%s765_s0] sm:$0xff]  ;;  %v16_v34 = vld [vmem:[%s765_s0 + $0x8] sm:$0xff]  ;;  %v17_v36 = vld [vmem:[%s765_s0 + $0x10] sm:$0xff] }
   0xd   :  { %v22_v35 = vpack.c.bf16 %v16_v34, %v15_v33  ;;  %v18_v37 = vld [vmem:[%s765_s0 + $0x18] sm:$0xff]  ;;  %v19_v39 = vld [vmem:[%s765_s0 + $0x20] sm:$0xff]  ;;  %v20_v40 = vld [vmem:[%s765_s0 + $0x28] sm:$0xff]  ;;  %v62_v46 = vsub.s32 0, %v61_v45  ;;  %v70_v47 = vsub.s32 2, %v61_v45  ;;  %v66_v49 = vsub.s32 1, %v61_v45 }
   0xe   :  { %v23_v38 = vpack.c.bf16 %v18_v37, %v17_v36  ;;  %v24_v41 = vpack.c.bf16 %v20_v40, %v19_v39  ;;  %v21_v42 = vld [vmem:[%s765_s0 + $0x30] sm:$0xff]  ;;  %v58_v48 = vld [vmem:[%s766_s2] sm:$0xf]  ;;  %v74_v50 = vsub.s32 3, %v61_v45 }
   0xf   :  { %247 = vmatpush1.bf16.msra.mxu0 %v469_v15  ;;  %318 = vmatpush1.bf16.msra.mxu1 %v470_v16  ;;  %v25_v43 = vpack.c.bf16 %v21_v42, %v21_v42  ;;  %v644_v51 = vrot.slane %v58_v48, %v62_v46  ;;  %v646_v52 = vrot.slane %v58_v48, %v70_v47 }
  0x10   :  { %248 = vmatprep.subr.bf16.mxu0 %v471_v17  ;;  %319 = vmatprep.subr.bf16.mxu1 %v473_v18  ;;  %v648_v53 = vrot.slane %v58_v48, %v66_v49  ;;  %v650_v54 = vrot.slane %v58_v48, %v74_v50 }
  0x13   :  { %249 = vmatpush1.bf16.msra.mxu0 %v475_v19  ;;  %320 = vmatpush1.bf16.msra.mxu1 %v476_v20 }
  0x14   :  { %250 = vmatprep.subr.bf16.mxu0 %v477_v21  ;;  %321 = vmatprep.subr.bf16.mxu1 %v479_v22 }
  0x17   :  { %251 = vmatpush1.bf16.msra.mxu0 %v481_v23  ;;  %322 = vmatpush1.bf16.msra.mxu1 %v482_v24 }
  0x18   :  { %252 = vmatprep.subr.bf16.mxu0 %v483_v25  ;;  %323 = vmatprep.subr.bf16.mxu1 %v485_v26 }
  0x1b   :  { %253 = vmatpush1.bf16.msra.mxu0 %v487_v27  ;;  %324 = vmatpush1.bf16.msra.mxu1 %v488_v28 }
  0x1c   :  { %254 = vmatprep.subr.bf16.mxu0 %v489_v29  ;;  %325 = vmatprep.subr.bf16.mxu1 %v491_v30 }
  0x1f   :  { %255 = vmatpush1.bf16.msra.mxu0 %v493_v31  ;;  %326 = vmatpush1.bf16.msra.mxu1 %v494_v32 }
  0x22   :  { %273 = vmatmul.mubr.bf16.vlgmr.msra.gmra.mrb[0].mxu0 %v22_v35  ;;  %344 = vmatmul.mubr.bf16.vlgmr.msra.gmra.mrb[0].mxu1 %v22_v35 }
  0x23   :  { %282 = vmatprep.mubr.bf16.mxu0 %v495_v1  ;;  %353 = vmatprep.mubr.bf16.mxu1 %v495_v1 }
  0x2a   :  { %283 = vmatmul.mubr.bf16.gmra.mrb[4].mxu0 %v23_v38  ;;  %354 = vmatmul.mubr.bf16.gmra.mrb[4].mxu1 %v23_v38 }
  0x2b   :  { %292 = vmatprep.mubr.bf16.mxu0 %v495_v1  ;;  %363 = vmatprep.mubr.bf16.mxu1 %v495_v1 }
  0x32   :  { %293 = vmatmul.mubr.bf16.gmra.mrb[8].mxu0 %v24_v41  ;;  %364 = vmatmul.mubr.bf16.gmra.mrb[8].mxu1 %v24_v41 }
  0x33   :  { %302 = vmatprep.mubr.bf16.mxu0 %v495_v1  ;;  %373 = vmatprep.mubr.bf16.mxu1 %v495_v1 }
  0x3a   :  { %303 = vmatmul.mubr.bf16.gmra.mrb[12].mxu0 %v25_v43  ;;  %374 = vmatmul.mubr.bf16.gmra.mrb[12].mxu1 %v25_v43 }
  0xf5   :  { %v274_v55 = vpop.f32.mrb[0].mxu0  ;;  %v345_v56 = vpop.f32.mrb[0].mxu1 }
  0xf6   :  { %v275_v57 = vadd.f32 %v274_v55, %v644_v51  ;;  %v346_v58 = vadd.f32 %v345_v56, %v646_v52  ;;  %v276_v59 = vpop.f32.mrb[1].mxu0  ;;  %v347_v60 = vpop.f32.mrb[1].mxu1 }
  0xf7   :  { %v277_v61 = vadd.f32 %v276_v59, %v648_v53  ;;  %v348_v62 = vadd.f32 %v347_v60, %v650_v54  ;;  %v278_v63 = vpop.f32.mrb[2].mxu0  ;;  %v349_v0 = vpop.f32.mrb[2].mxu1 }
  0xf8   :  { %382 = vst [vmem:[%s767_s3] sm:$0xff] %v275_v57  ;;  %384 = vst [vmem:[%s767_s3 + $0x10] sm:$0xff] %v346_v58  ;;  %v279_v1 = vadd.f32 %v278_v63, %v644_v51  ;;  %v350_v2 = vadd.f32 %v349_v0, %v646_v52  ;;  %v280_v3 = vpop.f32.mrb[3].mxu0  ;;  %v351_v4 = vpop.f32.mrb[3].mxu1 }
  0xf9   :  { %383 = vst [vmem:[%s767_s3 + $0x8] sm:$0xff] %v277_v61  ;;  %385 = vst [vmem:[%s767_s3 + $0x18] sm:$0xff] %v348_v62  ;;  %v281_v5 = vadd.f32 %v280_v3, %v648_v53  ;;  %v352_v6 = vadd.f32 %v351_v4, %v650_v54 }
  0xfa   :  { %386 = vst [vmem:[%s767_s3 + $0x20] sm:$0xff] %v279_v1  ;;  %388 = vst [vmem:[%s767_s3 + $0x30] sm:$0xff] %v350_v2 }
  0xfb   :  { %387 = vst [vmem:[%s767_s3 + $0x28] sm:$0xff] %v281_v5  ;;  %389 = vst [vmem:[%s767_s3 + $0x38] sm:$0xff] %v352_v6 }
  0xfd   :  { %v284_v7 = vpop.f32.mrb[4].mxu0  ;;  %v355_v8 = vpop.f32.mrb[4].mxu1 }
  0xfe   :  { %v285_v9 = vadd.f32 %v284_v7, %v644_v51  ;;  %v356_v10 = vadd.f32 %v355_v8, %v646_v52  ;;  %v286_v11 = vpop.f32.mrb[5].mxu0  ;;  %v357_v12 = vpop.f32.mrb[5].mxu1 }
  0xff   :  { %v287_v13 = vadd.f32 %v286_v11, %v648_v53  ;;  %v358_v14 = vadd.f32 %v357_v12, %v650_v54  ;;  %v288_v15 = vpop.f32.mrb[6].mxu0  ;;  %v359_v16 = vpop.f32.mrb[6].mxu1 }
 0x100   :  { %390 = vst [vmem:[%s767_s3 + $0x40] sm:$0xff] %v285_v9  ;;  %392 = vst [vmem:[%s767_s3 + $0x50] sm:$0xff] %v356_v10  ;;  %v289_v17 = vadd.f32 %v288_v15, %v644_v51  ;;  %v360_v18 = vadd.f32 %v359_v16, %v646_v52  ;;  %v290_v19 = vpop.f32.mrb[7].mxu0  ;;  %v361_v20 = vpop.f32.mrb[7].mxu1 }
 0x101   :  { %391 = vst [vmem:[%s767_s3 + $0x48] sm:$0xff] %v287_v13  ;;  %393 = vst [vmem:[%s767_s3 + $0x58] sm:$0xff] %v358_v14  ;;  %v291_v21 = vadd.f32 %v290_v19, %v648_v53  ;;  %v362_v22 = vadd.f32 %v361_v20, %v650_v54 }
 0x102   :  { %394 = vst [vmem:[%s767_s3 + $0x60] sm:$0xff] %v289_v17  ;;  %396 = vst [vmem:[%s767_s3 + $0x70] sm:$0xff] %v360_v18 }
 0x103   :  { %395 = vst [vmem:[%s767_s3 + $0x68] sm:$0xff] %v291_v21  ;;  %397 = vst [vmem:[%s767_s3 + $0x78] sm:$0xff] %v362_v22 }
 0x105   :  { %v294_v23 = vpop.f32.mrb[8].mxu0  ;;  %v365_v24 = vpop.f32.mrb[8].mxu1 }
 0x106   :  { %v295_v25 = vadd.f32 %v294_v23, %v644_v51  ;;  %v366_v26 = vadd.f32 %v365_v24, %v646_v52  ;;  %v296_v27 = vpop.f32.mrb[9].mxu0  ;;  %v367_v28 = vpop.f32.mrb[9].mxu1 }
 0x107   :  { %v297_v29 = vadd.f32 %v296_v27, %v648_v53  ;;  %v368_v30 = vadd.f32 %v367_v28, %v650_v54  ;;  %v298_v31 = vpop.f32.mrb[10].mxu0  ;;  %v369_v32 = vpop.f32.mrb[10].mxu1 }
 0x108   :  { %398 = vst [vmem:[%s767_s3 + $0x80] sm:$0xff] %v295_v25  ;;  %400 = vst [vmem:[%s767_s3 + $0x90] sm:$0xff] %v366_v26  ;;  %v299_v33 = vadd.f32 %v298_v31, %v644_v51  ;;  %v370_v34 = vadd.f32 %v369_v32, %v646_v52  ;;  %v300_v35 = vpop.f32.mrb[11].mxu0  ;;  %v371_v36 = vpop.f32.mrb[11].mxu1 }
 0x109   :  { %399 = vst [vmem:[%s767_s3 + $0x88] sm:$0xff] %v297_v29  ;;  %401 = vst [vmem:[%s767_s3 + $0x98] sm:$0xff] %v368_v30  ;;  %v301_v37 = vadd.f32 %v300_v35, %v648_v53  ;;  %v372_v38 = vadd.f32 %v371_v36, %v650_v54 }
 0x10a   :  { %402 = vst [vmem:[%s767_s3 + $0xa0] sm:$0xff] %v299_v33  ;;  %404 = vst [vmem:[%s767_s3 + $0xb0] sm:$0xff] %v370_v34 }
 0x10b   :  { %403 = vst [vmem:[%s767_s3 + $0xa8] sm:$0xff] %v301_v37  ;;  %405 = vst [vmem:[%s767_s3 + $0xb8] sm:$0xff] %v372_v38 }
 0x10d   :  { %v304_v39 = vpop.f32.mrb[12].mxu0  ;;  %v375_v40 = vpop.f32.mrb[12].mxu1 }
 0x10e   :  { %v305_v41 = vadd.f32 %v304_v39, %v644_v51  ;;  %v376_v42 = vadd.f32 %v375_v40, %v646_v52  ;;  %v306_v43 = vpop.f32.mrb[13].mxu0  ;;  %v377_v44 = vpop.f32.mrb[13].mxu1 }
 0x10f   :  { %v307_v45 = vadd.f32 %v306_v43, %v648_v53  ;;  %v378_v46 = vadd.f32 %v377_v44, %v650_v54  ;;  %v308_v47 = vpop.f32.mrb[14].mxu0  ;;  %v379_v48 = vpop.f32.mrb[14].mxu1 }
 0x110   :  { %406 = vst [vmem:[%s767_s3 + $0xc0] sm:$0xff] %v305_v41  ;;  %408 = vst [vmem:[%s767_s3 + $0xd0] sm:$0xff] %v376_v42  ;;  %v309_v49 = vpop.f32.mrb[15].mxu0  ;;  %v380_v50 = vpop.f32.mrb[15].mxu1 }
 0x111   :  { %407 = vst [vmem:[%s767_s3 + $0xc8] sm:$0xff] %v307_v45  ;;  %409 = vst [vmem:[%s767_s3 + $0xd8] sm:$0xff] %v378_v46 }

// kernel: encoder_decoder_train.5
= control target key start
LH: loop header
LB: loop body
LE: loop exit
PB: predicated region body
PF: predicated region fallthrough
CT: control target
= control target key end

     0   :  { %v504_v1 = vmov 0   ;;  %v61_v45 = vlaneseq  ;;  %s792_s1 = inlined_call_operand.vmem [shape: bf16[128,512], index: 1, kind: input, shape index: {}]   ;;  %s793_s0 = inlined_call_operand.vmem [shape: f32[64,128], index: 0, kind: input, shape index: {}]   ;;  %s794_s2 = inlined_call_operand.vmem [shape: f32[1,512], index: 2, kind: input, shape index: {}]   ;;  %s795_s3 = inlined_call_operand.vmem [shape: f32[64,512], index: 3, kind: output, shape index: {}]  }
   0x1   :  { %v456_v0 = vld [vmem:[%s792_s1 + $0x4] ss:$16 sps:$4 sm:$0xff]   ;;  %273 = vmatprep.mubr.bf16.mxu0 %v504_v1  ;;  %346 = vmatprep.mubr.bf16.mxu1 %v504_v1  ;;  %v458_v2 = vld [vmem:[%s792_s1 + $0xc] ss:$16 sps:$4 sm:$0xff]   ;;  %v460_v3 = vld [vmem:[%s792_s1] ss:$16 sps:$4 sm:$0xff]  }
   0x2   :  { %241 = vmatprep.subr.bf16.mxu0 %v456_v0  ;;  %v461_v4 = vld [vmem:[%s792_s1 + $0x8] ss:$16 sps:$4 sm:$0xff]   ;;  %314 = vmatprep.subr.bf16.mxu1 %v458_v2  ;;  %v462_v5 = vld [vmem:[%s792_s1 + $0x24] ss:$16 sps:$4 sm:$0xff]   ;;  %v464_v6 = vld [vmem:[%s792_s1 + $0x2c] ss:$16 sps:$4 sm:$0xff]  }
   0x3   :  { %242 = vmatpush1.bf16.msra.mxu0 %v460_v3  ;;  %315 = vmatpush1.bf16.msra.mxu1 %v461_v4  ;;  %v466_v7 = vld [vmem:[%s792_s1 + $0x20] ss:$16 sps:$4 sm:$0xff]   ;;  %v467_v8 = vld [vmem:[%s792_s1 + $0x28] ss:$16 sps:$4 sm:$0xff]   ;;  %v468_v9 = vld [vmem:[%s792_s1 + $0x44] ss:$16 sps:$4 sm:$0xff]  }
   0x4   :  { %243 = vmatprep.subr.bf16.mxu0 %v462_v5  ;;  %316 = vmatprep.subr.bf16.mxu1 %v464_v6  ;;  %v470_v10 = vld [vmem:[%s792_s1 + $0x4c] ss:$16 sps:$4 sm:$0xff]   ;;  %v472_v11 = vld [vmem:[%s792_s1 + $0x40] ss:$16 sps:$4 sm:$0xff]   ;;  %v473_v12 = vld [vmem:[%s792_s1 + $0x48] ss:$16 sps:$4 sm:$0xff]  }
   0x5   :  { %v474_v13 = vld [vmem:[%s792_s1 + $0x64] ss:$16 sps:$4 sm:$0xff]   ;;  %v476_v14 = vld [vmem:[%s792_s1 + $0x6c] ss:$16 sps:$4 sm:$0xff]   ;;  %v478_v15 = vld [vmem:[%s792_s1 + $0x60] ss:$16 sps:$4 sm:$0xff]  }
   0x6   :  { %v479_v16 = vld [vmem:[%s792_s1 + $0x68] ss:$16 sps:$4 sm:$0xff]   ;;  %v480_v17 = vld [vmem:[%s792_s1 + $0x84] ss:$16 sps:$4 sm:$0xff]   ;;  %v482_v18 = vld [vmem:[%s792_s1 + $0x8c] ss:$16 sps:$4 sm:$0xff]  }
   0x7   :  { %244 = vmatpush1.bf16.msra.mxu0 %v466_v7  ;;  %317 = vmatpush1.bf16.msra.mxu1 %v467_v8  ;;  %v484_v19 = vld [vmem:[%s792_s1 + $0x80] ss:$16 sps:$4 sm:$0xff]   ;;  %v485_v20 = vld [vmem:[%s792_s1 + $0x88] ss:$16 sps:$4 sm:$0xff]   ;;  %v486_v21 = vld [vmem:[%s792_s1 + $0xa4] ss:$16 sps:$4 sm:$0xff]  }
   0x8   :  { %245 = vmatprep.subr.bf16.mxu0 %v468_v9  ;;  %318 = vmatprep.subr.bf16.mxu1 %v470_v10  ;;  %v488_v22 = vld [vmem:[%s792_s1 + $0xac] ss:$16 sps:$4 sm:$0xff]   ;;  %v490_v23 = vld [vmem:[%s792_s1 + $0xa0] ss:$16 sps:$4 sm:$0xff]   ;;  %v491_v24 = vld [vmem:[%s792_s1 + $0xa8] ss:$16 sps:$4 sm:$0xff]  }
   0x9   :  { %v492_v25 = vld [vmem:[%s792_s1 + $0xc4] ss:$16 sps:$4 sm:$0xff]   ;;  %v494_v26 = vld [vmem:[%s792_s1 + $0xcc] ss:$16 sps:$4 sm:$0xff]   ;;  %v496_v27 = vld [vmem:[%s792_s1 + $0xc0] ss:$16 sps:$4 sm:$0xff]  }
   0xa   :  { %v497_v28 = vld [vmem:[%s792_s1 + $0xc8] ss:$16 sps:$4 sm:$0xff]   ;;  %v498_v29 = vld [vmem:[%s792_s1 + $0xe4] ss:$16 sps:$4 sm:$0xff]   ;;  %v500_v30 = vld [vmem:[%s792_s1 + $0xec] ss:$16 sps:$4 sm:$0xff]  }
   0xb   :  { %246 = vmatpush1.bf16.msra.mxu0 %v472_v11  ;;  %319 = vmatpush1.bf16.msra.mxu1 %v473_v12  ;;  %v502_v31 = vld [vmem:[%s792_s1 + $0xe0] ss:$16 sps:$4 sm:$0xff]   ;;  %v503_v32 = vld [vmem:[%s792_s1 + $0xe8] ss:$16 sps:$4 sm:$0xff]   ;;  %v62_v46 = vshrl.u32 %v61_v45, 7 }
   0xc   :  { %247 = vmatprep.subr.bf16.mxu0 %v474_v13  ;;  %320 = vmatprep.subr.bf16.mxu1 %v476_v14  ;;  %v15_v33 = vld [vmem:[%s793_s0] sm:$0xff]  ;;  %v16_v34 = vld [vmem:[%s793_s0 + $0x8] sm:$0xff]  ;;  %v17_v36 = vld [vmem:[%s793_s0 + $0x10] sm:$0xff] }
   0xd   :  { %v23_v35 = vpack.c.bf16 %v16_v34, %v15_v33  ;;  %v18_v37 = vld [vmem:[%s793_s0 + $0x18] sm:$0xff]  ;;  %v19_v39 = vld [vmem:[%s793_s0 + $0x20] sm:$0xff]  ;;  %v20_v40 = vld [vmem:[%s793_s0 + $0x28] sm:$0xff]  ;;  %v63_v47 = vsub.s32 0, %v62_v46  ;;  %v71_v48 = vsub.s32 2, %v62_v46  ;;  %v67_v50 = vsub.s32 1, %v62_v46 }
   0xe   :  { %v24_v38 = vpack.c.bf16 %v18_v37, %v17_v36  ;;  %v25_v41 = vpack.c.bf16 %v20_v40, %v19_v39  ;;  %v21_v42 = vld [vmem:[%s793_s0 + $0x30] sm:$0xff]  ;;  %v22_v43 = vld [vmem:[%s793_s0 + $0x38] sm:$0xff]  ;;  %v59_v49 = vld [vmem:[%s794_s2] sm:$0xf]  ;;  %v75_v51 = vsub.s32 3, %v62_v46 }
   0xf   :  { %248 = vmatpush1.bf16.msra.mxu0 %v478_v15  ;;  %321 = vmatpush1.bf16.msra.mxu1 %v479_v16  ;;  %v26_v44 = vpack.c.bf16 %v22_v43, %v21_v42  ;;  %v656_v52 = vrot.slane %v59_v49, %v63_v47  ;;  %v658_v53 = vrot.slane %v59_v49, %v71_v48 }
  0x10   :  { %249 = vmatprep.subr.bf16.mxu0 %v480_v17  ;;  %322 = vmatprep.subr.bf16.mxu1 %v482_v18  ;;  %v660_v54 = vrot.slane %v59_v49, %v67_v50  ;;  %v662_v55 = vrot.slane %v59_v49, %v75_v51 }
  0x13   :  { %250 = vmatpush1.bf16.msra.mxu0 %v484_v19  ;;  %323 = vmatpush1.bf16.msra.mxu1 %v485_v20 }
  0x14   :  { %251 = vmatprep.subr.bf16.mxu0 %v486_v21  ;;  %324 = vmatprep.subr.bf16.mxu1 %v488_v22 }
  0x17   :  { %252 = vmatpush1.bf16.msra.mxu0 %v490_v23  ;;  %325 = vmatpush1.bf16.msra.mxu1 %v491_v24 }
  0x18   :  { %253 = vmatprep.subr.bf16.mxu0 %v492_v25  ;;  %326 = vmatprep.subr.bf16.mxu1 %v494_v26 }
  0x1b   :  { %254 = vmatpush1.bf16.msra.mxu0 %v496_v27  ;;  %327 = vmatpush1.bf16.msra.mxu1 %v497_v28 }
  0x1c   :  { %255 = vmatprep.subr.bf16.mxu0 %v498_v29  ;;  %328 = vmatprep.subr.bf16.mxu1 %v500_v30 }
  0x1f   :  { %256 = vmatpush1.bf16.msra.mxu0 %v502_v31  ;;  %329 = vmatpush1.bf16.msra.mxu1 %v503_v32 }
  0x22   :  { %274 = vmatmul.mubr.bf16.vlgmr.msra.gmra.mrb[0].mxu0 %v23_v35  ;;  %347 = vmatmul.mubr.bf16.vlgmr.msra.gmra.mrb[0].mxu1 %v23_v35 }
  0x23   :  { %283 = vmatprep.mubr.bf16.mxu0 %v504_v1  ;;  %356 = vmatprep.mubr.bf16.mxu1 %v504_v1 }
  0x2a   :  { %284 = vmatmul.mubr.bf16.gmra.mrb[4].mxu0 %v24_v38  ;;  %357 = vmatmul.mubr.bf16.gmra.mrb[4].mxu1 %v24_v38 }
  0x2b   :  { %293 = vmatprep.mubr.bf16.mxu0 %v504_v1  ;;  %366 = vmatprep.mubr.bf16.mxu1 %v504_v1 }
  0x32   :  { %294 = vmatmul.mubr.bf16.gmra.mrb[8].mxu0 %v25_v41  ;;  %367 = vmatmul.mubr.bf16.gmra.mrb[8].mxu1 %v25_v41 }
  0x33   :  { %303 = vmatprep.mubr.bf16.mxu0 %v504_v1  ;;  %376 = vmatprep.mubr.bf16.mxu1 %v504_v1 }
  0x3a   :  { %304 = vmatmul.mubr.bf16.gmra.mrb[12].mxu0 %v26_v44  ;;  %377 = vmatmul.mubr.bf16.gmra.mrb[12].mxu1 %v26_v44 }
  0xf5   :  { %v275_v56 = vpop.f32.mrb[0].mxu0  ;;  %v348_v57 = vpop.f32.mrb[0].mxu1 }
  0xf6   :  { %v276_v58 = vadd.f32 %v275_v56, %v656_v52  ;;  %v349_v59 = vadd.f32 %v348_v57, %v658_v53  ;;  %v277_v60 = vpop.f32.mrb[1].mxu0  ;;  %v350_v61 = vpop.f32.mrb[1].mxu1 }
  0xf7   :  { %v278_v62 = vadd.f32 %v277_v60, %v660_v54  ;;  %v351_v63 = vadd.f32 %v350_v61, %v662_v55  ;;  %v279_v0 = vpop.f32.mrb[2].mxu0  ;;  %v352_v1 = vpop.f32.mrb[2].mxu1 }
  0xf8   :  { %387 = vst [vmem:[%s795_s3] sm:$0xff] %v276_v58  ;;  %389 = vst [vmem:[%s795_s3 + $0x10] sm:$0xff] %v349_v59  ;;  %v280_v2 = vadd.f32 %v279_v0, %v656_v52  ;;  %v353_v3 = vadd.f32 %v352_v1, %v658_v53  ;;  %v281_v4 = vpop.f32.mrb[3].mxu0  ;;  %v354_v5 = vpop.f32.mrb[3].mxu1 }
  0xf9   :  { %388 = vst [vmem:[%s795_s3 + $0x8] sm:$0xff] %v278_v62  ;;  %390 = vst [vmem:[%s795_s3 + $0x18] sm:$0xff] %v351_v63  ;;  %v282_v6 = vadd.f32 %v281_v4, %v660_v54  ;;  %v355_v7 = vadd.f32 %v354_v5, %v662_v55 }
  0xfa   :  { %391 = vst [vmem:[%s795_s3 + $0x20] sm:$0xff] %v280_v2  ;;  %393 = vst [vmem:[%s795_s3 + $0x30] sm:$0xff] %v353_v3 }
  0xfb   :  { %392 = vst [vmem:[%s795_s3 + $0x28] sm:$0xff] %v282_v6  ;;  %394 = vst [vmem:[%s795_s3 + $0x38] sm:$0xff] %v355_v7 }
  0xfd   :  { %v285_v8 = vpop.f32.mrb[4].mxu0  ;;  %v358_v9 = vpop.f32.mrb[4].mxu1 }
  0xfe   :  { %v286_v10 = vadd.f32 %v285_v8, %v656_v52  ;;  %v359_v11 = vadd.f32 %v358_v9, %v658_v53  ;;  %v287_v12 = vpop.f32.mrb[5].mxu0  ;;  %v360_v13 = vpop.f32.mrb[5].mxu1 }
  0xff   :  { %v288_v14 = vadd.f32 %v287_v12, %v660_v54  ;;  %v361_v15 = vadd.f32 %v360_v13, %v662_v55  ;;  %v289_v16 = vpop.f32.mrb[6].mxu0  ;;  %v362_v17 = vpop.f32.mrb[6].mxu1 }
 0x100   :  { %395 = vst [vmem:[%s795_s3 + $0x40] sm:$0xff] %v286_v10  ;;  %397 = vst [vmem:[%s795_s3 + $0x50] sm:$0xff] %v359_v11  ;;  %v290_v18 = vadd.f32 %v289_v16, %v656_v52  ;;  %v363_v19 = vadd.f32 %v362_v17, %v658_v53  ;;  %v291_v20 = vpop.f32.mrb[7].mxu0  ;;  %v364_v21 = vpop.f32.mrb[7].mxu1 }
 0x101   :  { %396 = vst [vmem:[%s795_s3 + $0x48] sm:$0xff] %v288_v14  ;;  %398 = vst [vmem:[%s795_s3 + $0x58] sm:$0xff] %v361_v15  ;;  %v292_v22 = vadd.f32 %v291_v20, %v660_v54  ;;  %v365_v23 = vadd.f32 %v364_v21, %v662_v55 }
 0x102   :  { %399 = vst [vmem:[%s795_s3 + $0x60] sm:$0xff] %v290_v18  ;;  %401 = vst [vmem:[%s795_s3 + $0x70] sm:$0xff] %v363_v19 }
 0x103   :  { %400 = vst [vmem:[%s795_s3 + $0x68] sm:$0xff] %v292_v22  ;;  %402 = vst [vmem:[%s795_s3 + $0x78] sm:$0xff] %v365_v23 }
 0x105   :  { %v295_v24 = vpop.f32.mrb[8].mxu0  ;;  %v368_v25 = vpop.f32.mrb[8].mxu1 }
 0x106   :  { %v296_v26 = vadd.f32 %v295_v24, %v656_v52  ;;  %v369_v27 = vadd.f32 %v368_v25, %v658_v53  ;;  %v297_v28 = vpop.f32.mrb[9].mxu0  ;;  %v370_v29 = vpop.f32.mrb[9].mxu1 }
 0x107   :  { %v298_v30 = vadd.f32 %v297_v28, %v660_v54  ;;  %v371_v31 = vadd.f32 %v370_v29, %v662_v55  ;;  %v299_v32 = vpop.f32.mrb[10].mxu0  ;;  %v372_v33 = vpop.f32.mrb[10].mxu1 }
 0x108   :  { %403 = vst [vmem:[%s795_s3 + $0x80] sm:$0xff] %v296_v26  ;;  %405 = vst [vmem:[%s795_s3 + $0x90] sm:$0xff] %v369_v27  ;;  %v300_v34 = vadd.f32 %v299_v32, %v656_v52  ;;  %v373_v35 = vadd.f32 %v372_v33, %v658_v53  ;;  %v301_v36 = vpop.f32.mrb[11].mxu0  ;;  %v374_v37 = vpop.f32.mrb[11].mxu1 }
 0x109   :  { %404 = vst [vmem:[%s795_s3 + $0x88] sm:$0xff] %v298_v30  ;;  %406 = vst [vmem:[%s795_s3 + $0x98] sm:$0xff] %v371_v31  ;;  %v302_v38 = vadd.f32 %v301_v36, %v660_v54  ;;  %v375_v39 = vadd.f32 %v374_v37, %v662_v55 }
 0x10a   :  { %407 = vst [vmem:[%s795_s3 + $0xa0] sm:$0xff] %v300_v34  ;;  %409 = vst [vmem:[%s795_s3 + $0xb0] sm:$0xff] %v373_v35 }
 0x10b   :  { %408 = vst [vmem:[%s795_s3 + $0xa8] sm:$0xff] %v302_v38  ;;  %410 = vst [vmem:[%s795_s3 + $0xb8] sm:$0xff] %v375_v39 }
 0x10d   :  { %v305_v40 = vpop.f32.mrb[12].mxu0  ;;  %v378_v41 = vpop.f32.mrb[12].mxu1 }
 0x10e   :  { %v306_v42 = vadd.f32 %v305_v40, %v656_v52  ;;  %v379_v43 = vadd.f32 %v378_v41, %v658_v53  ;;  %v307_v44 = vpop.f32.mrb[13].mxu0  ;;  %v380_v45 = vpop.f32.mrb[13].mxu1 }
 0x10f   :  { %v308_v46 = vadd.f32 %v307_v44, %v660_v54  ;;  %v381_v47 = vadd.f32 %v380_v45, %v662_v55  ;;  %v309_v48 = vpop.f32.mrb[14].mxu0  ;;  %v382_v49 = vpop.f32.mrb[14].mxu1 }
 0x110   :  { %411 = vst [vmem:[%s795_s3 + $0xc0] sm:$0xff] %v306_v42  ;;  %413 = vst [vmem:[%s795_s3 + $0xd0] sm:$0xff] %v379_v43  ;;  %v310_v50 = vadd.f32 %v309_v48, %v656_v52  ;;  %v383_v51 = vadd.f32 %v382_v49, %v658_v53  ;;  %v311_v56 = vpop.f32.mrb[15].mxu0  ;;  %v384_v57 = vpop.f32.mrb[15].mxu1 }
 0x111   :  { %412 = vst [vmem:[%s795_s3 + $0xc8] sm:$0xff] %v308_v46  ;;  %414 = vst [vmem:[%s795_s3 + $0xd8] sm:$0xff] %v381_v47  ;;  %v312_v58 = vadd.f32 %v311_v56, %v660_v54  ;;  %v385_v59 = vadd.f32 %v384_v57, %v662_v55 }
 0x112   :  { %415 = vst [vmem:[%s795_s3 + $0xe0] sm:$0xff] %v310_v50  ;;  %417 = vst [vmem:[%s795_s3 + $0xf0] sm:$0xff] %v383_v51 }
 0x113   :  { %416 = vst [vmem:[%s795_s3 + $0xe8] sm:$0xff] %v312_v58  ;;  %418 = vst [vmem:[%s795_s3 + $0xf8] sm:$0xff] %v385_v59 }

// kernel: encoder_decoder_train.8
= control target key start
LH: loop header
LB: loop body
LE: loop exit
PB: predicated region body
PF: predicated region fallthrough
CT: control target
= control target key end

     0   :  { %v1294_v1 = vmov 0   ;;  %s1849_s3 = inlined_call_operand.vmem [shape: bf16[128,512], index: 3, kind: input, shape index: {}]   ;;  %s1850_s1 = inlined_call_operand.vmem [shape: f32[8,128], index: 1, kind: input, shape index: {}]   ;;  %s1851_s0 = inlined_call_operand.vmem [shape: f32[7,8,512], index: 0, kind: input, shape index: {}]   ;;  %s1852_s2 = inlined_call_operand.vmem [shape: f32[8,128], index: 2, kind: input, shape index: {}]   ;;  %s1853_s4 = inlined_call_operand.vmem [shape: f32[7,8,128], index: 4, kind: output, shape index: {}]  }
   0x1   :  { %v1323_v0 = vld [vmem:[%s1849_s3 + $0x4] ss:$16 sps:$4 sm:$0xff]   ;;  %257 = vmatprep.mubr.bf16.mxu0 %v1294_v1  ;;  %298 = vmatprep.mubr.bf16.mxu1 %v1294_v1  ;;  %v1330_v2 = vld [vmem:[%s1849_s3] ss:$16 sps:$4 sm:$0xff]   ;;  %v1353_v6 = vld [vmem:[%s1849_s3 + $0xc] ss:$16 sps:$4 sm:$0xff]  }
   0x2   :  { %225 = vmatprep.subr.bf16.mxu0 %v1323_v0  ;;  %v1336_v3 = vld [vmem:[%s1849_s3 + $0x24] ss:$16 sps:$4 sm:$0xff]   ;;  %v1342_v4 = vld [vmem:[%s1849_s3 + $0x20] ss:$16 sps:$4 sm:$0xff]   ;;  %v1358_v7 = vld [vmem:[%s1849_s3 + $0x8] ss:$16 sps:$4 sm:$0xff]   ;;  %266 = vmatprep.subr.bf16.mxu1 %v1353_v6 }
   0x3   :  { %226 = vmatpush1.bf16.msra.mxu0 %v1330_v2  ;;  %v1348_v5 = vld [vmem:[%s1849_s3 + $0x44] ss:$16 sps:$4 sm:$0xff]   ;;  %v1364_v8 = vld [vmem:[%s1849_s3 + $0x40] ss:$16 sps:$4 sm:$0xff]   ;;  %267 = vmatpush1.bf16.msra.mxu1 %v1358_v7  ;;  %v1377_v10 = vld [vmem:[%s1849_s3 + $0x2c] ss:$16 sps:$4 sm:$0xff]  }
   0x4   :  { %227 = vmatprep.subr.bf16.mxu0 %v1336_v3  ;;  %v1371_v9 = vld [vmem:[%s1849_s3 + $0x64] ss:$16 sps:$4 sm:$0xff]   ;;  %v1382_v11 = vld [vmem:[%s1849_s3 + $0x28] ss:$16 sps:$4 sm:$0xff]   ;;  %268 = vmatprep.subr.bf16.mxu1 %v1377_v10  ;;  %v1389_v12 = vld [vmem:[%s1849_s3 + $0x60] ss:$16 sps:$4 sm:$0xff]  }
   0x5   :  { %v1394_v13 = vld [vmem:[%s1849_s3 + $0x84] ss:$16 sps:$4 sm:$0xff]   ;;  %v1399_v14 = vld [vmem:[%s1849_s3 + $0x4c] ss:$16 sps:$4 sm:$0xff]   ;;  %v1406_v15 = vld [vmem:[%s1849_s3 + $0x48] ss:$16 sps:$4 sm:$0xff]  }
   0x6   :  { %v1412_v16 = vld [vmem:[%s1849_s3 + $0x6c] ss:$16 sps:$4 sm:$0xff]   ;;  %v1418_v17 = vld [vmem:[%s1849_s3 + $0x80] ss:$16 sps:$4 sm:$0xff]   ;;  %v1424_v18 = vld [vmem:[%s1849_s3 + $0xa4] ss:$16 sps:$4 sm:$0xff]  }
   0x7   :  { %228 = vmatpush1.bf16.msra.mxu0 %v1342_v4  ;;  %269 = vmatpush1.bf16.msra.mxu1 %v1382_v11  ;;  %v1430_v19 = vld [vmem:[%s1849_s3 + $0x68] ss:$16 sps:$4 sm:$0xff]   ;;  %v1436_v20 = vld [vmem:[%s1849_s3 + $0x8c] ss:$16 sps:$4 sm:$0xff]   ;;  %v1441_v21 = vld [vmem:[%s1849_s3 + $0xa0] ss:$16 sps:$4 sm:$0xff]  }
   0x8   :  { %229 = vmatprep.subr.bf16.mxu0 %v1348_v5  ;;  %270 = vmatprep.subr.bf16.mxu1 %v1399_v14  ;;  %v1447_v22 = vld [vmem:[%s1849_s3 + $0xc4] ss:$16 sps:$4 sm:$0xff]   ;;  %v1454_v23 = vld [vmem:[%s1849_s3 + $0x88] ss:$16 sps:$4 sm:$0xff]   ;;  %v1460_v24 = vld [vmem:[%s1849_s3 + $0xac] ss:$16 sps:$4 sm:$0xff]  }
   0x9   :  { %v1466_v25 = vld [vmem:[%s1849_s3 + $0xc0] ss:$16 sps:$4 sm:$0xff]   ;;  %v1472_v26 = vld [vmem:[%s1849_s3 + $0xe4] ss:$16 sps:$4 sm:$0xff]   ;;  %v1478_v27 = vld [vmem:[%s1849_s3 + $0xa8] ss:$16 sps:$4 sm:$0xff]  }
   0xa   :  { %v1484_v28 = vld [vmem:[%s1849_s3 + $0xcc] ss:$16 sps:$4 sm:$0xff]   ;;  %v1490_v29 = vld [vmem:[%s1849_s3 + $0xe0] ss:$16 sps:$4 sm:$0xff]   ;;  %v1500_v31 = vld [vmem:[%s1849_s3 + $0xc8] ss:$16 sps:$4 sm:$0xff]  }
   0xb   :  { %230 = vmatpush1.bf16.msra.mxu0 %v1364_v8  ;;  %271 = vmatpush1.bf16.msra.mxu1 %v1406_v15  ;;  %v22_v30 = vld [vmem:[%s1850_s1] sm:$0xff]  ;;  %v1506_v32 = vld [vmem:[%s1849_s3 + $0xec] ss:$16 sps:$4 sm:$0xff]   ;;  %v1513_v34 = vld [vmem:[%s1849_s3 + $0xe8] ss:$16 sps:$4 sm:$0xff]  }
   0xc   :  { %231 = vmatprep.subr.bf16.mxu0 %v1371_v9  ;;  %272 = vmatprep.subr.bf16.mxu1 %v1412_v16  ;;  %v64_v33 = vpack.c.bf16 %v22_v30, %v22_v30  ;;  %v60_v35 = vld [vmem:[%s1851_s0] sm:$0xff]  ;;  %v61_v36 = vld [vmem:[%s1851_s0 + $0x8] sm:$0xff]  ;;  %v63_v45 = vld [vmem:[%s1851_s0 + $0x18] sm:$0xff] }
   0xd   :  { %v62_v51 = vld [vmem:[%s1851_s0 + $0x10] sm:$0xff]  ;;  %v24_v60 = vld [vmem:[%s1852_s2] sm:$0xff] }
   0xf   :  { %232 = vmatpush1.bf16.msra.mxu0 %v1389_v12  ;;  %273 = vmatpush1.bf16.msra.mxu1 %v1430_v19 }
  0x10   :  { %233 = vmatprep.subr.bf16.mxu0 %v1394_v13  ;;  %274 = vmatprep.subr.bf16.mxu1 %v1436_v20 }
  0x13   :  { %234 = vmatpush1.bf16.msra.mxu0 %v1418_v17  ;;  %275 = vmatpush1.bf16.msra.mxu1 %v1454_v23 }
  0x14   :  { %235 = vmatprep.subr.bf16.mxu0 %v1424_v18  ;;  %276 = vmatprep.subr.bf16.mxu1 %v1460_v24 }
  0x17   :  { %236 = vmatpush1.bf16.msra.mxu0 %v1441_v21  ;;  %277 = vmatpush1.bf16.msra.mxu1 %v1478_v27 }
  0x18   :  { %237 = vmatprep.subr.bf16.mxu0 %v1447_v22  ;;  %278 = vmatprep.subr.bf16.mxu1 %v1484_v28 }
  0x1b   :  { %238 = vmatpush1.bf16.msra.mxu0 %v1466_v25  ;;  %279 = vmatpush1.bf16.msra.mxu1 %v1500_v31 }
  0x1c   :  { %239 = vmatprep.subr.bf16.mxu0 %v1472_v26  ;;  %280 = vmatprep.subr.bf16.mxu1 %v1506_v32 }
  0x1f   :  { %240 = vmatpush1.bf16.msra.mxu0 %v1490_v29  ;;  %281 = vmatpush1.bf16.msra.mxu1 %v1513_v34 }
  0x20   :  { %342 = vmatprep.subr.bf16.mxu0 %v1323_v0  ;;  %383 = vmatprep.subr.bf16.mxu1 %v1353_v6 }
  0x22   :  { %258 = vmatmul.mubr.bf16.vlgmr.msra.gmra.mrb[0].mxu0 %v64_v33  ;;  %299 = vmatmul.mubr.bf16.vlgmr.msra.gmra.mrb[0].mxu1 %v64_v33 }
  0x23   :  { %343 = vmatpush1.bf16.msra.mxu0 %v1330_v2  ;;  %374 = vmatprep.mubr.bf16.mxu0 %v1294_v1 }
  0x24   :  { %344 = vmatprep.subr.bf16.mxu0 %v1336_v3  ;;  %384 = vmatpush1.bf16.msra.mxu1 %v1358_v7 }
  0x25   :  { %385 = vmatprep.subr.bf16.mxu1 %v1377_v10  ;;  %415 = vmatprep.mubr.bf16.mxu1 %v1294_v1 }
  0x27   :  { %345 = vmatpush1.bf16.msra.mxu0 %v1342_v4 }
  0x28   :  { %346 = vmatprep.subr.bf16.mxu0 %v1348_v5  ;;  %386 = vmatpush1.bf16.msra.mxu1 %v1382_v11 }
  0x29   :  { %387 = vmatprep.subr.bf16.mxu1 %v1399_v14 }
  0x2b   :  { %347 = vmatpush1.bf16.msra.mxu0 %v1364_v8 }
  0x2c   :  { %348 = vmatprep.subr.bf16.mxu0 %v1371_v9  ;;  %388 = vmatpush1.bf16.msra.mxu1 %v1406_v15 }
  0x2d   :  { %389 = vmatprep.subr.bf16.mxu1 %v1412_v16 }
  0x2f   :  { %349 = vmatpush1.bf16.msra.mxu0 %v1389_v12 }
  0x30   :  { %350 = vmatprep.subr.bf16.mxu0 %v1394_v13  ;;  %390 = vmatpush1.bf16.msra.mxu1 %v1430_v19 }
  0x31   :  { %391 = vmatprep.subr.bf16.mxu1 %v1436_v20 }
  0x33   :  { %351 = vmatpush1.bf16.msra.mxu0 %v1418_v17 }
  0x34   :  { %352 = vmatprep.subr.bf16.mxu0 %v1424_v18  ;;  %392 = vmatpush1.bf16.msra.mxu1 %v1454_v23 }
  0x35   :  { %393 = vmatprep.subr.bf16.mxu1 %v1460_v24 }
  0x37   :  { %353 = vmatpush1.bf16.msra.mxu0 %v1441_v21 }
  0x38   :  { %354 = vmatprep.subr.bf16.mxu0 %v1447_v22  ;;  %394 = vmatpush1.bf16.msra.mxu1 %v1478_v27 }
  0x39   :  { %395 = vmatprep.subr.bf16.mxu1 %v1484_v28 }
  0x3b   :  { %355 = vmatpush1.bf16.msra.mxu0 %v1466_v25 }
  0x3c   :  { %356 = vmatprep.subr.bf16.mxu0 %v1472_v26  ;;  %396 = vmatpush1.bf16.msra.mxu1 %v1500_v31 }
  0x3d   :  { %397 = vmatprep.subr.bf16.mxu1 %v1506_v32 }
  0x3f   :  { %357 = vmatpush1.bf16.msra.mxu0 %v1490_v29 }
  0x40   :  { %460 = vmatprep.subr.bf16.mxu0 %v1323_v0  ;;  %398 = vmatpush1.bf16.msra.mxu1 %v1513_v34 }
  0x41   :  { %501 = vmatprep.subr.bf16.mxu1 %v1353_v6 }
  0xf5   :  { %v259_v37 = vpop.f32.mrb[0].mxu0  ;;  %v300_v46 = vpop.f32.mrb[0].mxu1 }
  0xf6   :  { %v307_v38 = vadd.f32 %v259_v37, %v60_v35  ;;  %v261_v39 = vpop.f32.mrb[1].mxu0  ;;  %v302_v47 = vpop.f32.mrb[1].mxu1  ;;  %v309_v53 = vadd.f32 %v300_v46, %v62_v51 }
  0xf7   :  { %v308_v40 = vadd.f32 %v261_v39, %v61_v36  ;;  %v263_v41 = vpop.f32.mrb[2].mxu0  ;;  %v310_v48 = vadd.f32 %v302_v47, %v63_v45  ;;  %v304_v49 = vpop.f32.mrb[2].mxu1 }
  0xf8   :  { %v1082_v42 = vmul.f32 -1.442695, %v307_v38  ;;  %v264_v43 = vpop.f32.mrb[3].mxu0  ;;  %v305_v50 = vpop.f32.mrb[3].mxu1  ;;  %v1086_v41 = vld [vmem:[%s1851_s0 + $0x28] sm:$0xff] }
  0xf9   :  { %v1083_v44 = vmul.f32 -1.442695, %v308_v40  ;;  %v1084_v52 = vmul.f32 -1.442695, %v310_v48  ;;  %v1085_v40 = vld [vmem:[%s1851_s0 + $0x20] sm:$0xff] }
  0xfa   :  { %1182 = vpow2.f32 %v1082_v42 }
  0xfb   :  { %1184 = vpow2.f32 %v1083_v44 }
  0xfc   :  { %1186 = vpow2.f32 %v1084_v52 }
  0xfd   :  { %1188 = vtanh.f32 %v309_v53 }
 0x104   :  { %v1183_v54 = vpop.eup %1182 }
 0x105   :  { %v1185_v55 = vpop.eup %1184  ;;  %v314_v56 = vadd.f32 1.0, %v1183_v54  ;;  %v1088_v54 = vld [vmem:[%s1851_s0 + $0x38] sm:$0xff] }
 0x106   :  { %v320_v57 = vadd.f32 1.0, %v1185_v55  ;;  %v1187_v58 = vpop.eup %1186 }
 0x107   :  { %1190 = vrcp.f32 %v314_v56  ;;  %v1189_v59 = vpop.eup %1188  ;;  %v327_v62 = vadd.f32 1.0, %v1187_v58  ;;  %v1087_v56 = vld [vmem:[%s1851_s0 + $0x30] sm:$0xff] }
 0x108   :  { %1192 = vrcp.f32 %v320_v57 }
 0x109   :  { %1194 = vrcp.f32 %v327_v62 }
 0x111   :  { %v1191_v61 = vpop.eup %1190 }
 0x112   :  { %v1193_v63 = vpop.eup %1192  ;;  %v331_v30 = vmul.f32 %v1191_v61, %v1189_v59 }
 0x113   :  { %v330_v33 = vmul.f32 %v1193_v63, %v24_v60  ;;  %v1195_v36 = vpop.eup %1194 }
 0x115   :  { %v1568_v35 = vadd.f32 %v331_v30, %v330_v33 }
 0x117   :  { %1196 = vtanh.f32 %v1568_v35 }
 0x121   :  { %v1197_v37 = vpop.eup %1196 }
 0x122   :  { %v334_v38 = vmul.f32 %v1197_v37, %v1195_v36 }
 0x124   :  { %335 = vst [vmem:[%s1853_s4] sm:$0xff] %v334_v38  ;;  %v341_v39 = vpack.c.bf16 %v334_v38, %v334_v38 }
 0x126   :  { %375 = vmatmul.mubr.bf16.vlgmr.msra.gmra.mrb[4].mxu0 %v341_v39  ;;  %416 = vmatmul.mubr.bf16.vlgmr.msra.gmra.mrb[4].mxu1 %v341_v39 }
 0x127   :  { %461 = vmatpush1.bf16.msra.mxu0 %v1330_v2  ;;  %502 = vmatpush1.bf16.msra.mxu1 %v1358_v7 }
 0x128   :  { %462 = vmatprep.subr.bf16.mxu0 %v1336_v3  ;;  %503 = vmatprep.subr.bf16.mxu1 %v1377_v10 }
 0x129   :  { %492 = vmatprep.mubr.bf16.mxu0 %v1294_v1  ;;  %533 = vmatprep.mubr.bf16.mxu1 %v1294_v1 }
 0x12b   :  { %463 = vmatpush1.bf16.msra.mxu0 %v1342_v4  ;;  %504 = vmatpush1.bf16.msra.mxu1 %v1382_v11 }
 0x12c   :  { %464 = vmatprep.subr.bf16.mxu0 %v1348_v5  ;;  %505 = vmatprep.subr.bf16.mxu1 %v1399_v14 }
 0x12f   :  { %465 = vmatpush1.bf16.msra.mxu0 %v1364_v8  ;;  %506 = vmatpush1.bf16.msra.mxu1 %v1406_v15 }
 0x130   :  { %466 = vmatprep.subr.bf16.mxu0 %v1371_v9  ;;  %507 = vmatprep.subr.bf16.mxu1 %v1412_v16 }
 0x133   :  { %467 = vmatpush1.bf16.msra.mxu0 %v1389_v12  ;;  %508 = vmatpush1.bf16.msra.mxu1 %v1430_v19 }
 0x134   :  { %468 = vmatprep.subr.bf16.mxu0 %v1394_v13  ;;  %509 = vmatprep.subr.bf16.mxu1 %v1436_v20 }
 0x137   :  { %469 = vmatpush1.bf16.msra.mxu0 %v1418_v17  ;;  %510 = vmatpush1.bf16.msra.mxu1 %v1454_v23 }
 0x138   :  { %470 = vmatprep.subr.bf16.mxu0 %v1424_v18  ;;  %511 = vmatprep.subr.bf16.mxu1 %v1460_v24 }
 0x13b   :  { %471 = vmatpush1.bf16.msra.mxu0 %v1441_v21  ;;  %512 = vmatpush1.bf16.msra.mxu1 %v1478_v27 }
 0x13c   :  { %472 = vmatprep.subr.bf16.mxu0 %v1447_v22  ;;  %513 = vmatprep.subr.bf16.mxu1 %v1484_v28 }
 0x13f   :  { %473 = vmatpush1.bf16.msra.mxu0 %v1466_v25  ;;  %514 = vmatpush1.bf16.msra.mxu1 %v1500_v31 }
 0x140   :  { %474 = vmatprep.subr.bf16.mxu0 %v1472_v26  ;;  %515 = vmatprep.subr.bf16.mxu1 %v1506_v32 }
 0x143   :  { %475 = vmatpush1.bf16.msra.mxu0 %v1490_v29  ;;  %516 = vmatpush1.bf16.msra.mxu1 %v1513_v34 }
 0x144   :  { %578 = vmatprep.subr.bf16.mxu0 %v1323_v0  ;;  %619 = vmatprep.subr.bf16.mxu1 %v1353_v6 }
 0x1f9   :  { %v376_v42 = vpop.f32.mrb[4].mxu0  ;;  %v417_v43 = vpop.f32.mrb[4].mxu1 }
 0x1fa   :  { %v424_v44 = vadd.f32 %v1085_v40, %v376_v42  ;;  %v378_v45 = vpop.f32.mrb[5].mxu0  ;;  %v419_v46 = vpop.f32.mrb[5].mxu1  ;;  %v426_v58 = vadd.f32 %v1087_v56, %v417_v43 }
 0x1fb   :  { %v425_v47 = vadd.f32 %v1086_v41, %v378_v45  ;;  %v380_v48 = vpop.f32.mrb[6].mxu0  ;;  %v421_v49 = vpop.f32.mrb[6].mxu1  ;;  %v427_v55 = vadd.f32 %v1088_v54, %v419_v46  ;;  %v1094_v45 = vld [vmem:[%s1851_s0 + $0x48] sm:$0xff] }
 0x1fc   :  { %v1089_v50 = vmul.f32 -1.442695, %v424_v44  ;;  %v381_v51 = vpop.f32.mrb[7].mxu0  ;;  %v422_v52 = vpop.f32.mrb[7].mxu1 }
 0x1fd   :  { %v1090_v53 = vmul.f32 -1.442695, %v425_v47  ;;  %v1091_v57 = vmul.f32 -1.442695, %v427_v55 }
 0x1fe   :  { %1198 = vpow2.f32 %v1089_v50 }
 0x1ff   :  { %1200 = vpow2.f32 %v1090_v53 }
 0x200   :  { %1202 = vpow2.f32 %v1091_v57 }
 0x201   :  { %1204 = vtanh.f32 %v426_v58  ;;  %v1096_v58 = vld [vmem:[%s1851_s0 + $0x58] sm:$0xff] }
 0x208   :  { %v1199_v59 = vpop.eup %1198 }
 0x209   :  { %v1201_v60 = vpop.eup %1200  ;;  %v431_v61 = vadd.f32 1.0, %v1199_v59 }
 0x20a   :  { %v437_v62 = vadd.f32 1.0, %v1201_v60  ;;  %v1203_v63 = vpop.eup %1202  ;;  %v1095_v60 = vld [vmem:[%s1851_s0 + $0x50] sm:$0xff] }
 0x20b   :  { %1206 = vrcp.f32 %v431_v61  ;;  %v1205_v30 = vpop.eup %1204  ;;  %v444_v38 = vadd.f32 1.0, %v1203_v63 }
 0x20c   :  { %1208 = vrcp.f32 %v437_v62 }
 0x20d   :  { %1210 = vrcp.f32 %v444_v38 }
 0x215   :  { %v1207_v33 = vpop.eup %1206 }
 0x216   :  { %v1209_v36 = vpop.eup %1208  ;;  %v448_v37 = vmul.f32 %v1207_v33, %v1205_v30 }
 0x217   :  { %v447_v39 = vmul.f32 %v1209_v36, %v1568_v35  ;;  %v1211_v41 = vpop.eup %1210  ;;  %v1093_v35 = vld [vmem:[%s1851_s0 + $0x40] sm:$0xff] }
 0x219   :  { %v1621_v40 = vadd.f32 %v448_v37, %v447_v39 }
 0x21b   :  { %1212 = vtanh.f32 %v1621_v40 }
 0x225   :  { %v1213_v42 = vpop.eup %1212 }
 0x226   :  { %v451_v43 = vmul.f32 %v1213_v42, %v1211_v41 }
 0x228   :  { %1092 = vst [vmem:[%s1853_s4 + $0x8] sm:$0xff] %v451_v43  ;;  %v459_v44 = vpack.c.bf16 %v451_v43, %v451_v43 }
 0x22a   :  { %493 = vmatmul.mubr.bf16.vlgmr.msra.gmra.mrb[8].mxu0 %v459_v44  ;;  %534 = vmatmul.mubr.bf16.vlgmr.msra.gmra.mrb[8].mxu1 %v459_v44 }
 0x22b   :  { %579 = vmatpush1.bf16.msra.mxu0 %v1330_v2  ;;  %620 = vmatpush1.bf16.msra.mxu1 %v1358_v7 }
 0x22c   :  { %580 = vmatprep.subr.bf16.mxu0 %v1336_v3  ;;  %621 = vmatprep.subr.bf16.mxu1 %v1377_v10 }
 0x22d   :  { %610 = vmatprep.mubr.bf16.mxu0 %v1294_v1  ;;  %651 = vmatprep.mubr.bf16.mxu1 %v1294_v1 }
 0x22f   :  { %581 = vmatpush1.bf16.msra.mxu0 %v1342_v4  ;;  %622 = vmatpush1.bf16.msra.mxu1 %v1382_v11 }
 0x230   :  { %582 = vmatprep.subr.bf16.mxu0 %v1348_v5  ;;  %623 = vmatprep.subr.bf16.mxu1 %v1399_v14 }
 0x233   :  { %583 = vmatpush1.bf16.msra.mxu0 %v1364_v8  ;;  %624 = vmatpush1.bf16.msra.mxu1 %v1406_v15 }
 0x234   :  { %584 = vmatprep.subr.bf16.mxu0 %v1371_v9  ;;  %625 = vmatprep.subr.bf16.mxu1 %v1412_v16 }
 0x237   :  { %585 = vmatpush1.bf16.msra.mxu0 %v1389_v12  ;;  %626 = vmatpush1.bf16.msra.mxu1 %v1430_v19 }
 0x238   :  { %586 = vmatprep.subr.bf16.mxu0 %v1394_v13  ;;  %627 = vmatprep.subr.bf16.mxu1 %v1436_v20 }
 0x23b   :  { %587 = vmatpush1.bf16.msra.mxu0 %v1418_v17  ;;  %628 = vmatpush1.bf16.msra.mxu1 %v1454_v23 }
 0x23c   :  { %588 = vmatprep.subr.bf16.mxu0 %v1424_v18  ;;  %629 = vmatprep.subr.bf16.mxu1 %v1460_v24 }
 0x23f   :  { %589 = vmatpush1.bf16.msra.mxu0 %v1441_v21  ;;  %630 = vmatpush1.bf16.msra.mxu1 %v1478_v27 }
 0x240   :  { %590 = vmatprep.subr.bf16.mxu0 %v1447_v22  ;;  %631 = vmatprep.subr.bf16.mxu1 %v1484_v28 }
 0x243   :  { %591 = vmatpush1.bf16.msra.mxu0 %v1466_v25  ;;  %632 = vmatpush1.bf16.msra.mxu1 %v1500_v31 }
 0x244   :  { %592 = vmatprep.subr.bf16.mxu0 %v1472_v26  ;;  %633 = vmatprep.subr.bf16.mxu1 %v1506_v32 }
 0x247   :  { %593 = vmatpush1.bf16.msra.mxu0 %v1490_v29  ;;  %634 = vmatpush1.bf16.msra.mxu1 %v1513_v34 }
 0x248   :  { %696 = vmatprep.subr.bf16.mxu0 %v1323_v0  ;;  %737 = vmatprep.subr.bf16.mxu1 %v1353_v6 }
 0x2fd   :  { %v494_v46 = vpop.f32.mrb[8].mxu0  ;;  %v535_v47 = vpop.f32.mrb[8].mxu1 }
 0x2fe   :  { %v542_v48 = vadd.f32 %v1093_v35, %v494_v46  ;;  %v496_v49 = vpop.f32.mrb[9].mxu0  ;;  %v537_v50 = vpop.f32.mrb[9].mxu1  ;;  %v544_v62 = vadd.f32 %v1095_v60, %v535_v47 }
 0x2ff   :  { %v543_v51 = vadd.f32 %v1094_v45, %v496_v49  ;;  %v498_v52 = vpop.f32.mrb[10].mxu0  ;;  %v539_v53 = vpop.f32.mrb[10].mxu1  ;;  %v545_v59 = vadd.f32 %v1096_v58, %v537_v50  ;;  %v1102_v49 = vld [vmem:[%s1851_s0 + $0x68] sm:$0xff] }
 0x300   :  { %v1097_v54 = vmul.f32 -1.442695, %v542_v48  ;;  %v499_v55 = vpop.f32.mrb[11].mxu0  ;;  %v540_v56 = vpop.f32.mrb[11].mxu1 }
 0x301   :  { %v1098_v57 = vmul.f32 -1.442695, %v543_v51  ;;  %v1099_v61 = vmul.f32 -1.442695, %v545_v59 }
 0x302   :  { %1214 = vpow2.f32 %v1097_v54 }
 0x303   :  { %1216 = vpow2.f32 %v1098_v57 }
 0x304   :  { %1218 = vpow2.f32 %v1099_v61 }
 0x305   :  { %1220 = vtanh.f32 %v544_v62  ;;  %v1104_v62 = vld [vmem:[%s1851_s0 + $0x78] sm:$0xff] }
 0x30c   :  { %v1215_v63 = vpop.eup %1214 }
 0x30d   :  { %v1217_v30 = vpop.eup %1216  ;;  %v549_v33 = vadd.f32 1.0, %v1215_v63 }
 0x30e   :  { %v555_v36 = vadd.f32 1.0, %v1217_v30  ;;  %v1219_v37 = vpop.eup %1218  ;;  %v1103_v30 = vld [vmem:[%s1851_s0 + $0x70] sm:$0xff] }
 0x30f   :  { %1222 = vrcp.f32 %v549_v33  ;;  %v1221_v38 = vpop.eup %1220  ;;  %v562_v43 = vadd.f32 1.0, %v1219_v37 }
 0x310   :  { %1224 = vrcp.f32 %v555_v36 }
 0x311   :  { %1226 = vrcp.f32 %v562_v43 }
 0x319   :  { %v1223_v39 = vpop.eup %1222 }
 0x31a   :  { %v1225_v41 = vpop.eup %1224  ;;  %v566_v42 = vmul.f32 %v1223_v39, %v1221_v38 }
 0x31b   :  { %v565_v44 = vmul.f32 %v1225_v41, %v1621_v40  ;;  %v1227_v45 = vpop.eup %1226  ;;  %v1101_v40 = vld [vmem:[%s1851_s0 + $0x60] sm:$0xff] }
 0x31d   :  { %v1674_v35 = vadd.f32 %v566_v42, %v565_v44 }
 0x31f   :  { %1228 = vtanh.f32 %v1674_v35 }
 0x329   :  { %v1229_v46 = vpop.eup %1228 }
 0x32a   :  { %v569_v47 = vmul.f32 %v1229_v46, %v1227_v45 }
 0x32c   :  { %1100 = vst [vmem:[%s1853_s4 + $0x10] sm:$0xff] %v569_v47  ;;  %v577_v48 = vpack.c.bf16 %v569_v47, %v569_v47 }
 0x32e   :  { %611 = vmatmul.mubr.bf16.vlgmr.msra.gmra.mrb[12].mxu0 %v577_v48  ;;  %652 = vmatmul.mubr.bf16.vlgmr.msra.gmra.mrb[12].mxu1 %v577_v48 }
 0x32f   :  { %697 = vmatpush1.bf16.msra.mxu0 %v1330_v2  ;;  %738 = vmatpush1.bf16.msra.mxu1 %v1358_v7 }
 0x330   :  { %698 = vmatprep.subr.bf16.mxu0 %v1336_v3  ;;  %739 = vmatprep.subr.bf16.mxu1 %v1377_v10 }
 0x331   :  { %728 = vmatprep.mubr.bf16.mxu0 %v1294_v1  ;;  %769 = vmatprep.mubr.bf16.mxu1 %v1294_v1 }
 0x333   :  { %699 = vmatpush1.bf16.msra.mxu0 %v1342_v4  ;;  %740 = vmatpush1.bf16.msra.mxu1 %v1382_v11 }
 0x334   :  { %700 = vmatprep.subr.bf16.mxu0 %v1348_v5  ;;  %741 = vmatprep.subr.bf16.mxu1 %v1399_v14 }
 0x337   :  { %701 = vmatpush1.bf16.msra.mxu0 %v1364_v8  ;;  %742 = vmatpush1.bf16.msra.mxu1 %v1406_v15 }
 0x338   :  { %702 = vmatprep.subr.bf16.mxu0 %v1371_v9  ;;  %743 = vmatprep.subr.bf16.mxu1 %v1412_v16 }
 0x33b   :  { %703 = vmatpush1.bf16.msra.mxu0 %v1389_v12  ;;  %744 = vmatpush1.bf16.msra.mxu1 %v1430_v19 }
 0x33c   :  { %704 = vmatprep.subr.bf16.mxu0 %v1394_v13  ;;  %745 = vmatprep.subr.bf16.mxu1 %v1436_v20 }
 0x33f   :  { %705 = vmatpush1.bf16.msra.mxu0 %v1418_v17  ;;  %746 = vmatpush1.bf16.msra.mxu1 %v1454_v23 }
 0x340   :  { %706 = vmatprep.subr.bf16.mxu0 %v1424_v18  ;;  %747 = vmatprep.subr.bf16.mxu1 %v1460_v24 }
 0x343   :  { %707 = vmatpush1.bf16.msra.mxu0 %v1441_v21  ;;  %748 = vmatpush1.bf16.msra.mxu1 %v1478_v27 }
 0x344   :  { %708 = vmatprep.subr.bf16.mxu0 %v1447_v22  ;;  %749 = vmatprep.subr.bf16.mxu1 %v1484_v28 }
 0x347   :  { %709 = vmatpush1.bf16.msra.mxu0 %v1466_v25  ;;  %750 = vmatpush1.bf16.msra.mxu1 %v1500_v31 }
 0x348   :  { %710 = vmatprep.subr.bf16.mxu0 %v1472_v26  ;;  %751 = vmatprep.subr.bf16.mxu1 %v1506_v32 }
 0x34b   :  { %711 = vmatpush1.bf16.msra.mxu0 %v1490_v29  ;;  %752 = vmatpush1.bf16.msra.mxu1 %v1513_v34 }
 0x34c   :  { %814 = vmatprep.subr.bf16.mxu0 %v1323_v0  ;;  %855 = vmatprep.subr.bf16.mxu1 %v1353_v6 }
 0x401   :  { %v612_v50 = vpop.f32.mrb[12].mxu0  ;;  %v653_v51 = vpop.f32.mrb[12].mxu1 }
 0x402   :  { %v660_v52 = vadd.f32 %v1101_v40, %v612_v50  ;;  %v614_v53 = vpop.f32.mrb[13].mxu0  ;;  %v655_v54 = vpop.f32.mrb[13].mxu1  ;;  %v662_v36 = vadd.f32 %v1103_v30, %v653_v51  ;;  %v1112_v30 = vld [vmem:[%s1851_s0 + $0x98] sm:$0xff] }
 0x403   :  { %v661_v55 = vadd.f32 %v1102_v49, %v614_v53  ;;  %v616_v56 = vpop.f32.mrb[14].mxu0  ;;  %v657_v57 = vpop.f32.mrb[14].mxu1  ;;  %v663_v63 = vadd.f32 %v1104_v62, %v655_v54  ;;  %v1110_v53 = vld [vmem:[%s1851_s0 + $0x88] sm:$0xff] }
 0x404   :  { %v1105_v58 = vmul.f32 -1.442695, %v660_v52  ;;  %v617_v59 = vpop.f32.mrb[15].mxu0  ;;  %v658_v60 = vpop.f32.mrb[15].mxu1 }
 0x405   :  { %v1106_v61 = vmul.f32 -1.442695, %v661_v55  ;;  %v1107_v33 = vmul.f32 -1.442695, %v663_v63 }
 0x406   :  { %1230 = vpow2.f32 %v1105_v58 }
 0x407   :  { %1232 = vpow2.f32 %v1106_v61 }
 0x408   :  { %1234 = vpow2.f32 %v1107_v33 }
 0x409   :  { %1236 = vtanh.f32 %v662_v36  ;;  %v1111_v36 = vld [vmem:[%s1851_s0 + $0x90] sm:$0xff] }
 0x410   :  { %v1231_v37 = vpop.eup %1230 }
 0x411   :  { %v1233_v38 = vpop.eup %1232  ;;  %v667_v39 = vadd.f32 1.0, %v1231_v37 }
 0x412   :  { %v673_v41 = vadd.f32 1.0, %v1233_v38  ;;  %v1235_v42 = vpop.eup %1234 }
 0x413   :  { %1238 = vrcp.f32 %v667_v39  ;;  %v1237_v43 = vpop.eup %1236  ;;  %v680_v47 = vadd.f32 1.0, %v1235_v42 }
 0x414   :  { %1240 = vrcp.f32 %v673_v41 }
 0x415   :  { %1242 = vrcp.f32 %v680_v47 }
 0x41d   :  { %v1239_v44 = vpop.eup %1238 }
 0x41e   :  { %v1241_v45 = vpop.eup %1240  ;;  %v684_v46 = vmul.f32 %v1239_v44, %v1237_v43 }
 0x41f   :  { %v683_v48 = vmul.f32 %v1241_v45, %v1674_v35  ;;  %v1243_v49 = vpop.eup %1242  ;;  %v1109_v35 = vld [vmem:[%s1851_s0 + $0x80] sm:$0xff] }
 0x421   :  { %v1727_v40 = vadd.f32 %v684_v46, %v683_v48 }
 0x423   :  { %1244 = vtanh.f32 %v1727_v40 }
 0x42d   :  { %v1245_v50 = vpop.eup %1244 }
 0x42e   :  { %v687_v51 = vmul.f32 %v1245_v50, %v1243_v49 }
 0x430   :  { %1108 = vst [vmem:[%s1853_s4 + $0x18] sm:$0xff] %v687_v51  ;;  %v695_v52 = vpack.c.bf16 %v687_v51, %v687_v51 }
 0x432   :  { %729 = vmatmul.mubr.bf16.vlgmr.msra.gmra.mrb[16].mxu0 %v695_v52  ;;  %770 = vmatmul.mubr.bf16.vlgmr.msra.gmra.mrb[16].mxu1 %v695_v52 }
 0x433   :  { %815 = vmatpush1.bf16.msra.mxu0 %v1330_v2  ;;  %856 = vmatpush1.bf16.msra.mxu1 %v1358_v7 }
 0x434   :  { %816 = vmatprep.subr.bf16.mxu0 %v1336_v3  ;;  %857 = vmatprep.subr.bf16.mxu1 %v1377_v10 }
 0x435   :  { %846 = vmatprep.mubr.bf16.mxu0 %v1294_v1  ;;  %887 = vmatprep.mubr.bf16.mxu1 %v1294_v1 }
 0x437   :  { %817 = vmatpush1.bf16.msra.mxu0 %v1342_v4  ;;  %858 = vmatpush1.bf16.msra.mxu1 %v1382_v11 }
 0x438   :  { %818 = vmatprep.subr.bf16.mxu0 %v1348_v5  ;;  %859 = vmatprep.subr.bf16.mxu1 %v1399_v14 }
 0x43b   :  { %819 = vmatpush1.bf16.msra.mxu0 %v1364_v8  ;;  %860 = vmatpush1.bf16.msra.mxu1 %v1406_v15 }
 0x43c   :  { %820 = vmatprep.subr.bf16.mxu0 %v1371_v9  ;;  %861 = vmatprep.subr.bf16.mxu1 %v1412_v16 }
 0x43f   :  { %821 = vmatpush1.bf16.msra.mxu0 %v1389_v12  ;;  %862 = vmatpush1.bf16.msra.mxu1 %v1430_v19 }
 0x440   :  { %822 = vmatprep.subr.bf16.mxu0 %v1394_v13  ;;  %863 = vmatprep.subr.bf16.mxu1 %v1436_v20 }
 0x443   :  { %823 = vmatpush1.bf16.msra.mxu0 %v1418_v17  ;;  %864 = vmatpush1.bf16.msra.mxu1 %v1454_v23 }
 0x444   :  { %824 = vmatprep.subr.bf16.mxu0 %v1424_v18  ;;  %865 = vmatprep.subr.bf16.mxu1 %v1460_v24 }
 0x447   :  { %825 = vmatpush1.bf16.msra.mxu0 %v1441_v21  ;;  %866 = vmatpush1.bf16.msra.mxu1 %v1478_v27 }
 0x448   :  { %826 = vmatprep.subr.bf16.mxu0 %v1447_v22  ;;  %867 = vmatprep.subr.bf16.mxu1 %v1484_v28 }
 0x44b   :  { %827 = vmatpush1.bf16.msra.mxu0 %v1466_v25  ;;  %868 = vmatpush1.bf16.msra.mxu1 %v1500_v31 }
 0x44c   :  { %828 = vmatprep.subr.bf16.mxu0 %v1472_v26  ;;  %869 = vmatprep.subr.bf16.mxu1 %v1506_v32 }
 0x44f   :  { %829 = vmatpush1.bf16.msra.mxu0 %v1490_v29  ;;  %870 = vmatpush1.bf16.msra.mxu1 %v1513_v34 }
 0x450   :  { %932 = vmatprep.subr.bf16.mxu0 %v1323_v0  ;;  %973 = vmatprep.subr.bf16.mxu1 %v1353_v6 }
 0x505   :  { %v730_v54 = vpop.f32.mrb[16].mxu0  ;;  %v771_v55 = vpop.f32.mrb[16].mxu1 }
 0x506   :  { %v778_v56 = vadd.f32 %v1109_v35, %v730_v54  ;;  %v732_v57 = vpop.f32.mrb[17].mxu0  ;;  %v773_v58 = vpop.f32.mrb[17].mxu1  ;;  %v780_v38 = vadd.f32 %v1111_v36, %v771_v55 }
 0x507   :  { %v779_v59 = vadd.f32 %v1110_v53, %v732_v57  ;;  %v734_v60 = vpop.f32.mrb[18].mxu0  ;;  %v775_v61 = vpop.f32.mrb[18].mxu1  ;;  %v781_v33 = vadd.f32 %v1112_v30, %v773_v58  ;;  %v1125_v58 = vld [vmem:[%s1851_s0 + $0xc0] sm:$0xff] }
 0x508   :  { %v1113_v62 = vmul.f32 -1.442695, %v778_v56  ;;  %v735_v0 = vpop.f32.mrb[19].mxu0  ;;  %v776_v63 = vpop.f32.mrb[19].mxu1 }
 0x509   :  { %v1114_v6 = vmul.f32 -1.442695, %v779_v59  ;;  %v1115_v37 = vmul.f32 -1.442695, %v781_v33  ;;  %v1126_v59 = vld [vmem:[%s1851_s0 + $0xc8] sm:$0xff] }
 0x50a   :  { %1246 = vpow2.f32 %v1113_v62 }
 0x50b   :  { %1248 = vpow2.f32 %v1114_v6 }
 0x50c   :  { %1250 = vpow2.f32 %v1115_v37 }
 0x50d   :  { %1252 = vtanh.f32 %v780_v38 }
 0x514   :  { %v1247_v39 = vpop.eup %1246 }
 0x515   :  { %v1249_v41 = vpop.eup %1248  ;;  %v785_v42 = vadd.f32 1.0, %v1247_v39 }
 0x516   :  { %v791_v43 = vadd.f32 1.0, %v1249_v41  ;;  %v1251_v44 = vpop.eup %1250  ;;  %v1128_v41 = vld [vmem:[%s1851_s0 + $0xd8] sm:$0xff] }
 0x517   :  { %1254 = vrcp.f32 %v785_v42  ;;  %v1253_v45 = vpop.eup %1252  ;;  %v798_v49 = vadd.f32 1.0, %v1251_v44 }
 0x518   :  { %1256 = vrcp.f32 %v791_v43  ;;  %v1127_v43 = vld [vmem:[%s1851_s0 + $0xd0] sm:$0xff] }
 0x519   :  { %1258 = vrcp.f32 %v798_v49 }
 0x521   :  { %v1255_v46 = vpop.eup %1254 }
 0x522   :  { %v1257_v47 = vpop.eup %1256  ;;  %v802_v48 = vmul.f32 %v1255_v46, %v1253_v45 }
 0x523   :  { %v801_v50 = vmul.f32 %v1257_v47, %v1727_v40  ;;  %v1259_v52 = vpop.eup %1258 }
 0x525   :  { %v1780_v51 = vadd.f32 %v802_v48, %v801_v50 }
 0x527   :  { %1260 = vtanh.f32 %v1780_v51 }
 0x531   :  { %v1261_v35 = vpop.eup %1260 }
 0x532   :  { %v805_v53 = vmul.f32 %v1261_v35, %v1259_v52 }
 0x534   :  { %1116 = vst [vmem:[%s1853_s4 + $0x20] sm:$0xff] %v805_v53  ;;  %v813_v54 = vpack.c.bf16 %v805_v53, %v805_v53 }
 0x536   :  { %847 = vmatmul.mubr.bf16.vlgmr.msra.gmra.mrb[20].mxu0 %v813_v54  ;;  %888 = vmatmul.mubr.bf16.vlgmr.msra.gmra.mrb[20].mxu1 %v813_v54 }
 0x537   :  { %933 = vmatpush1.bf16.msra.mxu0 %v1330_v2  ;;  %974 = vmatpush1.bf16.msra.mxu1 %v1358_v7  ;;  %v1118_v2 = vld [vmem:[%s1851_s0 + $0xa8] sm:$0xff] }
 0x538   :  { %934 = vmatprep.subr.bf16.mxu0 %v1336_v3  ;;  %975 = vmatprep.subr.bf16.mxu1 %v1377_v10 }
 0x539   :  { %964 = vmatprep.mubr.bf16.mxu0 %v1294_v1  ;;  %1005 = vmatprep.mubr.bf16.mxu1 %v1294_v1  ;;  %v1117_v1 = vld [vmem:[%s1851_s0 + $0xa0] sm:$0xff] }
 0x53b   :  { %935 = vmatpush1.bf16.msra.mxu0 %v1342_v4  ;;  %976 = vmatpush1.bf16.msra.mxu1 %v1382_v11 }
 0x53c   :  { %936 = vmatprep.subr.bf16.mxu0 %v1348_v5  ;;  %977 = vmatprep.subr.bf16.mxu1 %v1399_v14 }
 0x53f   :  { %937 = vmatpush1.bf16.msra.mxu0 %v1364_v8  ;;  %978 = vmatpush1.bf16.msra.mxu1 %v1406_v15 }
 0x540   :  { %938 = vmatprep.subr.bf16.mxu0 %v1371_v9  ;;  %979 = vmatprep.subr.bf16.mxu1 %v1412_v16  ;;  %v1120_v16 = vld [vmem:[%s1851_s0 + $0xb8] sm:$0xff] }
 0x543   :  { %939 = vmatpush1.bf16.msra.mxu0 %v1389_v12  ;;  %980 = vmatpush1.bf16.msra.mxu1 %v1430_v19 }
 0x544   :  { %940 = vmatprep.subr.bf16.mxu0 %v1394_v13  ;;  %981 = vmatprep.subr.bf16.mxu1 %v1436_v20 }
 0x547   :  { %941 = vmatpush1.bf16.msra.mxu0 %v1418_v17  ;;  %982 = vmatpush1.bf16.msra.mxu1 %v1454_v23 }
 0x548   :  { %942 = vmatprep.subr.bf16.mxu0 %v1424_v18  ;;  %983 = vmatprep.subr.bf16.mxu1 %v1460_v24  ;;  %v1119_v18 = vld [vmem:[%s1851_s0 + $0xb0] sm:$0xff] }
 0x54b   :  { %943 = vmatpush1.bf16.msra.mxu0 %v1441_v21  ;;  %984 = vmatpush1.bf16.msra.mxu1 %v1478_v27 }
 0x54c   :  { %944 = vmatprep.subr.bf16.mxu0 %v1447_v22  ;;  %985 = vmatprep.subr.bf16.mxu1 %v1484_v28 }
 0x54f   :  { %945 = vmatpush1.bf16.msra.mxu0 %v1466_v25  ;;  %986 = vmatpush1.bf16.msra.mxu1 %v1500_v31 }
 0x550   :  { %946 = vmatprep.subr.bf16.mxu0 %v1472_v26  ;;  %987 = vmatprep.subr.bf16.mxu1 %v1506_v32 }
 0x553   :  { %947 = vmatpush1.bf16.msra.mxu0 %v1490_v29  ;;  %988 = vmatpush1.bf16.msra.mxu1 %v1513_v34 }
 0x609   :  { %v848_v3 = vpop.f32.mrb[20].mxu0  ;;  %v889_v4 = vpop.f32.mrb[20].mxu1 }
 0x60a   :  { %v896_v5 = vadd.f32 %v1117_v1, %v848_v3  ;;  %v850_v7 = vpop.f32.mrb[21].mxu0  ;;  %v891_v8 = vpop.f32.mrb[21].mxu1  ;;  %v898_v20 = vadd.f32 %v1119_v18, %v889_v4 }
 0x60b   :  { %v897_v9 = vadd.f32 %v1118_v2, %v850_v7  ;;  %v852_v10 = vpop.f32.mrb[22].mxu0  ;;  %v893_v11 = vpop.f32.mrb[22].mxu1  ;;  %v899_v17 = vadd.f32 %v1120_v16, %v891_v8 }
 0x60c   :  { %v1121_v12 = vmul.f32 -1.442695, %v896_v5  ;;  %v853_v13 = vpop.f32.mrb[23].mxu0  ;;  %v894_v14 = vpop.f32.mrb[23].mxu1 }
 0x60d   :  { %v1122_v15 = vmul.f32 -1.442695, %v897_v9  ;;  %v1123_v19 = vmul.f32 -1.442695, %v899_v17 }
 0x60e   :  { %1262 = vpow2.f32 %v1121_v12 }
 0x60f   :  { %1264 = vpow2.f32 %v1122_v15 }
 0x610   :  { %1266 = vpow2.f32 %v1123_v19 }
 0x611   :  { %1268 = vtanh.f32 %v898_v20 }
 0x618   :  { %v1263_v21 = vpop.eup %1262 }
 0x619   :  { %v1265_v22 = vpop.eup %1264  ;;  %v903_v23 = vadd.f32 1.0, %v1263_v21 }
 0x61a   :  { %v909_v24 = vadd.f32 1.0, %v1265_v22  ;;  %v1267_v25 = vpop.eup %1266 }
 0x61b   :  { %1270 = vrcp.f32 %v903_v23  ;;  %v1269_v26 = vpop.eup %1268  ;;  %v916_v31 = vadd.f32 1.0, %v1267_v25 }
 0x61c   :  { %1272 = vrcp.f32 %v909_v24 }
 0x61d   :  { %1274 = vrcp.f32 %v916_v31 }
 0x625   :  { %v1271_v27 = vpop.eup %1270 }
 0x626   :  { %v1273_v28 = vpop.eup %1272  ;;  %v920_v29 = vmul.f32 %v1271_v27, %v1269_v26 }
 0x627   :  { %v919_v32 = vmul.f32 %v1273_v28, %v1780_v51  ;;  %v1275_v40 = vpop.eup %1274 }
 0x629   :  { %v921_v34 = vadd.f32 %v920_v29, %v919_v32 }
 0x62b   :  { %1276 = vtanh.f32 %v921_v34 }
 0x635   :  { %v1277_v55 = vpop.eup %1276 }
 0x636   :  { %v923_v56 = vmul.f32 %v1277_v55, %v1275_v40 }
 0x638   :  { %1124 = vst [vmem:[%s1853_s4 + $0x28] sm:$0xff] %v923_v56  ;;  %v931_v57 = vpack.c.bf16 %v923_v56, %v923_v56 }
 0x63a   :  { %965 = vmatmul.mubr.bf16.vlgmr.msra.gmra.mrb[24].mxu0 %v931_v57  ;;  %1006 = vmatmul.mubr.bf16.vlgmr.msra.gmra.mrb[24].mxu1 %v931_v57 }
 0x70d   :  { %v966_v60 = vpop.f32.mrb[24].mxu0  ;;  %v1007_v61 = vpop.f32.mrb[24].mxu1 }
 0x70e   :  { %v1014_v62 = vadd.f32 %v1125_v58, %v966_v60  ;;  %v968_v0 = vpop.f32.mrb[25].mxu0  ;;  %v1009_v63 = vpop.f32.mrb[25].mxu1  ;;  %v1016_v45 = vadd.f32 %v1127_v43, %v1007_v61 }
 0x70f   :  { %v1015_v6 = vadd.f32 %v1126_v59, %v968_v0  ;;  %v970_v30 = vpop.f32.mrb[26].mxu0  ;;  %v1011_v33 = vpop.f32.mrb[26].mxu1  ;;  %v1017_v42 = vadd.f32 %v1128_v41, %v1009_v63 }
 0x710   :  { %v1129_v36 = vmul.f32 -1.442695, %v1014_v62  ;;  %v971_v37 = vpop.f32.mrb[27].mxu0  ;;  %v1012_v38 = vpop.f32.mrb[27].mxu1 }
 0x711   :  { %v1130_v39 = vmul.f32 -1.442695, %v1015_v6  ;;  %v1131_v44 = vmul.f32 -1.442695, %v1017_v42 }
 0x712   :  { %1278 = vpow2.f32 %v1129_v36 }
 0x713   :  { %1280 = vpow2.f32 %v1130_v39 }
 0x714   :  { %1282 = vpow2.f32 %v1131_v44 }
 0x715   :  { %1284 = vtanh.f32 %v1016_v45 }
 0x71c   :  { %v1279_v46 = vpop.eup %1278 }
 0x71d   :  { %v1281_v47 = vpop.eup %1280  ;;  %v1021_v48 = vadd.f32 1.0, %v1279_v46 }
 0x71e   :  { %v1027_v49 = vadd.f32 1.0, %v1281_v47  ;;  %v1283_v50 = vpop.eup %1282 }
 0x71f   :  { %1286 = vrcp.f32 %v1021_v48  ;;  %v1285_v51 = vpop.eup %1284  ;;  %v1034_v54 = vadd.f32 1.0, %v1283_v50 }
 0x720   :  { %1288 = vrcp.f32 %v1027_v49 }
 0x721   :  { %1290 = vrcp.f32 %v1034_v54 }
 0x729   :  { %v1287_v52 = vpop.eup %1286 }
 0x72a   :  { %v1289_v35 = vpop.eup %1288  ;;  %v1038_v53 = vmul.f32 %v1287_v52, %v1285_v51 }
 0x72b   :  { %v1037_v1 = vmul.f32 %v1289_v35, %v921_v34  ;;  %v1291_v3 = vpop.eup %1290 }
 0x72d   :  { %v1039_v2 = vadd.f32 %v1038_v53, %v1037_v1 }
 0x72f   :  { %1292 = vtanh.f32 %v1039_v2 }
 0x739   :  { %v1293_v4 = vpop.eup %1292 }
 0x73a   :  { %v1041_v5 = vmul.f32 %v1293_v4, %v1291_v3 }
 0x73c   :  { %1132 = vst [vmem:[%s1853_s4 + $0x30] sm:$0xff] %v1041_v5 }

// kernel: encoder_decoder_train.9
= control target key start
LH: loop header
LB: loop body
LE: loop exit
PB: predicated region body
PF: predicated region fallthrough
CT: control target
= control target key end

     0   :  { %vm22_vm0 = vcmask 7168   ;;  %v606_v19 = vmov -inf   ;;  %v607_v36 = vmov 0   ;;  %v608_v37 = vmov 0.0   ;;  %s892_s2 = inlined_call_operand.vmem [shape: bf16[128,128], index: 2, kind: input, shape index: {}]   ;;  %s893_s0 = inlined_call_operand.vmem [shape: f32[56,128], index: 0, kind: input, shape index: {}]   ;;  %s894_s3 = inlined_call_operand.vmem [shape: f32[1,128], index: 3, kind: input, shape index: {}]   ;;  %s895_s1 = inlined_call_operand.vmem [shape: s32[56,1], index: 1, kind: input, shape index: {}]   ;;  %s896_s4 = inlined_call_operand.vmem [shape: f32[56,1], index: 4, kind: output, shape index: {}]  }
   0x1   :  { %v556_v0 = vld [vmem:[%s892_s2] sm:$0xff]   ;;  %v557_v1 = vld [vmem:[%s892_s2 + $0x8] sm:$0xff]   ;;  %v558_v2 = vld [vmem:[%s892_s2 + $0x10] sm:$0xff]   ;;  %25 = vst.msk [vmem:[#allocation2 + $0x10] sm:$0xff] %vm22_vm0, %v606_v19  ;;  %554 = vset.pattern.permute.xlu1 %v607_v36  ;;  %555 = vset.pattern.permute.xlu0 %v607_v36 }
   0x2   :  { %511 = vmatprep.subr.bf16.mxu0 %v556_v0  ;;  %535 = vmatprep.subr.bf16.mxu1 %v556_v0  ;;  %v559_v3 = vld [vmem:[%s892_s2 + $0x18] sm:$0xff]   ;;  %v44_v4 = vld [vmem:[%s893_s0] sm:$0xff]  ;;  %v45_v5 = vld [vmem:[%s893_s0 + $0x8] sm:$0xff]  ;;  %23 = vst.msk [vmem:[#allocation2] sm:$0xff] %vm22_vm0, %v606_v19 }
   0x3   :  { %512 = vmatpush3.bf16.msra.mxu0 %v556_v0  ;;  %543 = vmatpush3.bf16.msra.mxu1 %v556_v0  ;;  %v51_v6 = vpack.c.bf16 %v45_v5, %v44_v4  ;;  %v48_v7 = vld [vmem:[%s893_s0 + $0x20] sm:$0xff]  ;;  %v49_v8 = vld [vmem:[%s893_s0 + $0x28] sm:$0xff]  ;;  %v562_v12 = vld [vmem:[%s892_s2 + $0x30] sm:$0xff]   ;;  %24 = vst.msk [vmem:[#allocation2 + $0x8] sm:$0xff] %vm22_vm0, %v606_v19 }
   0x4   :  { %513 = vmatprep.subr.bf16.mxu0 %v557_v1  ;;  %536 = vmatprep.subr.bf16.mxu1 %v557_v1  ;;  %v53_v9 = vpack.c.bf16 %v49_v8, %v48_v7  ;;  %v560_v10 = vld [vmem:[%s892_s2 + $0x20] sm:$0xff]   ;;  %v561_v11 = vld [vmem:[%s892_s2 + $0x28] sm:$0xff]   ;;  %v563_v13 = vld [vmem:[%s892_s2 + $0x38] sm:$0xff]   ;;  %26 = vst.msk [vmem:[#allocation2 + $0x18] sm:$0xff] %vm22_vm0, %v606_v19 }
   0x5   :  { %527 = vmatprep.mubr.bf16.mxu0 %v51_v6  ;;  %v46_v14 = vld [vmem:[%s893_s0 + $0x10] sm:$0xff]  ;;  %v47_v15 = vld [vmem:[%s893_s0 + $0x18] sm:$0xff]  ;;  %27 = vst.msk [vmem:[#allocation2 + $0x20] sm:$0xff] %vm22_vm0, %v606_v19  ;;  %28 = vst.msk [vmem:[#allocation2 + $0x28] sm:$0xff] %vm22_vm0, %v606_v19 }
   0x6   :  { %531 = vmatprep.mubr.bf16.mxu1 %v53_v9  ;;  %v50_v16 = vld [vmem:[%s893_s0 + $0x30] sm:$0xff]  ;;  %v52_v17 = vpack.c.bf16 %v47_v15, %v46_v14  ;;  %29 = vst.msk [vmem:[#allocation2 + $0x30] sm:$0xff] %vm22_vm0, %v606_v19  ;;  %v490_v20 = vld [vmem:[%s894_s3] ss:$0 sm:$0xff]  ;;  %32 = vst.msk [vmem:[#allocation3 + $0x10] sm:$0xff] %vm22_vm0, %v608_v37 }
   0x7   :  { %514 = vmatpush3.bf16.msra.mxu0 %v557_v1  ;;  %544 = vmatpush3.bf16.msra.mxu1 %v557_v1  ;;  %v54_v18 = vpack.c.bf16 %v50_v16, %v50_v16  ;;  %30 = vst.msk [vmem:[#allocation3] sm:$0xff] %vm22_vm0, %v608_v37  ;;  %31 = vst.msk [vmem:[#allocation3 + $0x8] sm:$0xff] %vm22_vm0, %v608_v37  ;;  %v360_v0 = vld [vmem:[%s895_s1 + $0x18] sm:$0xff]  ;;  %v357_v4 = vld [vmem:[%s895_s1] sm:$0xff] }
   0x8   :  { %515 = vmatprep.subr.bf16.mxu0 %v558_v2  ;;  %537 = vmatprep.subr.bf16.mxu1 %v558_v2  ;;  %33 = vst.msk [vmem:[#allocation3 + $0x18] sm:$0xff] %vm22_vm0, %v608_v37  ;;  %34 = vst.msk [vmem:[#allocation3 + $0x20] sm:$0xff] %vm22_vm0, %v608_v37  ;;  %v724_v38 = vld [vmem:[#allocation2 + $0x10] sm:$0xff]  ;;  %v358_v5 = vld [vmem:[%s895_s1 + $0x8] sm:$0xff] }
   0x9   :  { %35 = vst.msk [vmem:[#allocation3 + $0x28] sm:$0xff] %vm22_vm0, %v608_v37  ;;  %36 = vst.msk [vmem:[#allocation3 + $0x30] sm:$0xff] %vm22_vm0, %v608_v37  ;;  %v726_v39 = vld [vmem:[#allocation2] sm:$0xff]  ;;  %v359_v6 = vld [vmem:[%s895_s1 + $0x10] sm:$0xff] }
   0xa   :  { %37 = vst.msk [vmem:[#allocation4] sm:$0xff] %vm22_vm0, %v608_v37  ;;  %38 = vst.msk [vmem:[#allocation4 + $0x8] sm:$0xff] %vm22_vm0, %v608_v37  ;;  %v759_v54 = vld [vmem:[#allocation2 + $0x8] sm:$0xff]  ;;  %v361_v7 = vld [vmem:[%s895_s1 + $0x20] sm:$0xff] }
   0xb   :  { %516 = vmatpush3.bf16.msra.mxu0 %v558_v2  ;;  %545 = vmatpush3.bf16.msra.mxu1 %v558_v2  ;;  %39 = vst.msk [vmem:[#allocation4 + $0x10] sm:$0xff] %vm22_vm0, %v608_v37  ;;  %40 = vst.msk [vmem:[#allocation4 + $0x18] sm:$0xff] %vm22_vm0, %v608_v37  ;;  %v734_v44 = vld [vmem:[#allocation2 + $0x18] sm:$0xff]  ;;  %v363_v8 = vld [vmem:[%s895_s1 + $0x30] sm:$0xff] }
   0xc   :  { %517 = vmatprep.subr.bf16.mxu0 %v559_v3  ;;  %538 = vmatprep.subr.bf16.mxu1 %v559_v3  ;;  %41 = vst.msk [vmem:[#allocation4 + $0x20] sm:$0xff] %vm22_vm0, %v608_v37  ;;  %42 = vst.msk [vmem:[#allocation4 + $0x28] sm:$0xff] %vm22_vm0, %v608_v37  ;;  %v740_v46 = vld [vmem:[#allocation2 + $0x20] sm:$0xff]  ;;  %v753_v52 = vld [vmem:[#allocation2 + $0x28] sm:$0xff] }
   0xd   :  { %43 = vst.msk [vmem:[#allocation4 + $0x30] sm:$0xff] %vm22_vm0, %v608_v37  ;;  %v776_v61 = vld [vmem:[#allocation2 + $0x30] sm:$0xff] }
   0xf   :  { %518 = vmatpush3.bf16.msra.mxu0 %v559_v3  ;;  %546 = vmatpush3.bf16.msra.mxu1 %v559_v3  ;;  %v362_v3 = vld [vmem:[%s895_s1 + $0x28] sm:$0xff] }
  0x10   :  { %519 = vmatprep.subr.bf16.mxu0 %v560_v10  ;;  %539 = vmatprep.subr.bf16.mxu1 %v560_v10 }
  0x13   :  { %520 = vmatpush3.bf16.msra.mxu0 %v560_v10  ;;  %547 = vmatpush3.bf16.msra.mxu1 %v560_v10 }
  0x14   :  { %521 = vmatprep.subr.bf16.mxu0 %v561_v11  ;;  %540 = vmatprep.subr.bf16.mxu1 %v561_v11 }
  0x17   :  { %522 = vmatpush3.bf16.msra.mxu0 %v561_v11  ;;  %548 = vmatpush3.bf16.msra.mxu1 %v561_v11 }
  0x18   :  { %523 = vmatprep.subr.bf16.mxu0 %v562_v12  ;;  %541 = vmatprep.subr.bf16.mxu1 %v562_v12 }
  0x1b   :  { %524 = vmatpush3.bf16.msra.mxu0 %v562_v12  ;;  %549 = vmatpush3.bf16.msra.mxu1 %v562_v12 }
  0x1c   :  { %525 = vmatprep.subr.bf16.mxu0 %v563_v13  ;;  %542 = vmatprep.subr.bf16.mxu1 %v563_v13 }
  0x1f   :  { %526 = vmatpush3.bf16.msra.mxu0 %v563_v13  ;;  %550 = vmatpush3.bf16.msra.mxu1 %v563_v13 }
  0x22   :  { %528 = vmatmul.mubr.bf16.vlgmr.msra.gmra.mrb[0].mxu0 %v52_v17  ;;  %532 = vmatmul.mubr.bf16.vlgmr.msra.gmra.mrb[0].mxu1 %v54_v18 }
  0xf5   :  { %v529_v21 = vpop.f32.mrb[0].mxu0  ;;  %v533_v22 = vpop.f32.mrb[0].mxu1 }
  0xf6   :  { %v689_v23 = vadd.f32 %v529_v21, %v490_v20  ;;  %v160_v24 = vpop.f32.mrb[1].mxu0  ;;  %v176_v25 = vpop.f32.mrb[1].mxu1  ;;  %v706_v35 = vadd.f32 %v533_v22, %v490_v20 }
  0xf7   :  { %v691_v26 = vadd.f32 %v490_v20, %v160_v24  ;;  %v530_v27 = vpop.f32.mrb[2].mxu0  ;;  %v534_v28 = vpop.f32.mrb[2].mxu1  ;;  %v695_v31 = vadd.f32 %v490_v20, %v176_v25 }
  0xf8   :  { %201 = vmax.xlane.f32.xlu1 %v689_v23  ;;  %v163_v29 = vpop.f32.mrb[3].mxu0  ;;  %v179_v30 = vpop.f32.mrb[3].mxu1  ;;  %v697_v32 = vadd.f32 %v530_v27, %v490_v20 }
  0xf9   :  { %197 = vmax.xlane.f32.xlu0 %v691_v26  ;;  %v700_v33 = vadd.f32 %v490_v20, %v179_v30  ;;  %v703_v34 = vadd.f32 %v490_v20, %v163_v29 }
  0xfc   :  { %203 = vmax.xlane.f32.xlu1 %v697_v32 }
  0xfd   :  { %205 = vmax.xlane.f32.xlu0 %v695_v31 }
 0x100   :  { %207 = vmax.xlane.f32.xlu1 %v700_v33 }
 0x101   :  { %199 = vmax.xlane.f32.xlu0 %v703_v34 }
 0x105   :  { %209 = vmax.xlane.f32.xlu0 %v706_v35 }
 0x185   :  { %v202_v40 = vpop.xlane.xlu1 %201 }
 0x186   :  { %v729_v41 = vmax.f32 %v724_v38, %v202_v40  ;;  %v198_v42 = vpop.xlane.xlu0 %197 }
 0x187   :  { %v732_v43 = vmax.f32 %v726_v39, %v198_v42 }
 0x188   :  { %v227_v45 = vsub.f32 %v724_v38, %v729_v41  ;;  %340 = vst.msk [vmem:[#allocation2 + $0x10] sm:$0xff] %vm22_vm0, %v729_v41 }
 0x189   :  { %v225_v47 = vsub.f32 %v726_v39, %v732_v43  ;;  %338 = vst.msk [vmem:[#allocation2] sm:$0xff] %vm22_vm0, %v732_v43  ;;  %v204_v48 = vpop.xlane.xlu1 %203  ;;  %255 = vperm.xlu1 %554, %v732_v43  }
 0x18a   :  { %v748_v49 = vmax.f32 %v734_v44, %v204_v48  ;;  %v206_v50 = vpop.xlane.xlu0 %205 }
 0x18b   :  { %v751_v51 = vmax.f32 %v740_v46, %v206_v50  ;;  %v345_v50 = vlaneseq }
 0x18c   :  { %v228_v53 = vsub.f32 %v734_v44, %v748_v49  ;;  %341 = vst.msk [vmem:[#allocation2 + $0x18] sm:$0xff] %vm22_vm0, %v748_v49 }
 0x18d   :  { %v229_v55 = vsub.f32 %v740_v46, %v751_v51  ;;  %342 = vst.msk [vmem:[#allocation2 + $0x20] sm:$0xff] %vm22_vm0, %v751_v51  ;;  %265 = vperm.xlu1 %554, %v729_v41   ;;  %v208_v56 = vpop.xlane.xlu1 %207  ;;  %v220_v41 = vld [vmem:[#allocation3 + $0x10] sm:$0xff] }
 0x18e   :  { %v200_v57 = vpop.xlane.xlu0 %199  ;;  %v767_v58 = vmax.f32 %v753_v52, %v208_v56 }
 0x18f   :  { %v770_v59 = vmax.f32 %v759_v54, %v200_v57 }
 0x190   :  { %v230_v60 = vsub.f32 %v753_v52, %v767_v58  ;;  %343 = vst.msk [vmem:[#allocation2 + $0x28] sm:$0xff] %vm22_vm0, %v767_v58 }
 0x191   :  { %v226_v62 = vsub.f32 %v759_v54, %v770_v59  ;;  %339 = vst.msk [vmem:[#allocation2 + $0x8] sm:$0xff] %vm22_vm0, %v770_v59  ;;  %270 = vperm.xlu1 %554, %v748_v49   ;;  %260 = vperm.xlu0 %555, %v770_v59  }
 0x192   :  { %v210_v63 = vpop.xlane.xlu0 %209 }
 0x193   :  { %v788_v1 = vmax.f32 %v776_v61, %v210_v63  ;;  %v234_v38 = vmul.f32 1.442695, %v226_v62 }
 0x195   :  { %v231_v2 = vsub.f32 %v776_v61, %v788_v1  ;;  %344 = vst.msk [vmem:[#allocation2 + $0x30] sm:$0xff] %vm22_vm0, %v788_v1  ;;  %275 = vperm.xlu1 %554, %v751_v51   ;;  %374 = vperm.xlu0 %555, %v360_v0   ;;  %v346_v0 = vand.u32 127, %v345_v50 }
 0x197   :  { %v244_v43 = vmul.f32 1.442695, %v231_v2 }
 0x199   :  { %280 = vperm.xlu1 %554, %v767_v58   ;;  %380 = vperm.xlu0 %555, %v362_v3   ;;  %v221_v58 = vld [vmem:[#allocation3 + $0x18] sm:$0xff] }
 0x19d   :  { %285 = vperm.xlu1 %554, %v788_v1  }
 0x1a1   :  { %365 = vperm.xlu1 %554, %v357_v4  }
 0x1a5   :  { %368 = vperm.xlu1 %554, %v358_v5  }
 0x1a9   :  { %371 = vperm.xlu1 %554, %v359_v6  }
 0x1ad   :  { %377 = vperm.xlu1 %554, %v361_v7  }
 0x1b1   :  { %383 = vperm.xlu1 %554, %v363_v8  }
 0x208   :  { %v256_v9 = vpop.permute.xlu1 %255 }
 0x209   :  { %v288_v11 = vsub.f32 %v691_v26, %v256_v9 }
 0x20b   :  { %v295_v15 = vmul.f32 1.442695, %v288_v11 }
 0x20c   :  { %v266_v10 = vpop.permute.xlu1 %265 }
 0x20d   :  { %v290_v12 = vsub.f32 %v689_v23, %v266_v10 }
 0x20f   :  { %v299_v13 = vmul.f32 1.442695, %v290_v12 }
 0x210   :  { %v271_v14 = vpop.permute.xlu1 %270  ;;  %v261_v17 = vpop.permute.xlu0 %260 }
 0x211   :  { %564 = vpow2.f32 %v299_v13  ;;  %v291_v16 = vsub.f32 %v697_v32, %v271_v14  ;;  %v289_v19 = vsub.f32 %v703_v34, %v261_v17  ;;  %v223_v17 = vld [vmem:[#allocation3 + $0x28] sm:$0xff] }
 0x212   :  { %566 = vpow2.f32 %v295_v15 }
 0x213   :  { %v301_v18 = vmul.f32 1.442695, %v291_v16  ;;  %v297_v24 = vmul.f32 1.442695, %v289_v19  ;;  %v219_v16 = vld [vmem:[#allocation3 + $0x8] sm:$0xff] }
 0x214   :  { %v276_v20 = vpop.permute.xlu1 %275  ;;  %v375_v6 = vpop.permute.xlu0 %374 }
 0x215   :  { %v292_v21 = vsub.f32 %v695_v31, %v276_v20  ;;  %568 = vpow2.f32 %v301_v18  ;;  %vm388_vm4 = vcmp.eq.s32.totalorder %v346_v0, %v375_v6 }
 0x216   :  { %v395_v14 = vsel %vm388_vm4, %v697_v32, 0.0  ;;  %v238_v32 = vmul.f32 1.442695, %v228_v53 }
 0x217   :  { %v303_v22 = vmul.f32 1.442695, %v292_v21 }
 0x218   :  { %v281_v25 = vpop.permute.xlu1 %280  ;;  %v381_v11 = vpop.permute.xlu0 %380 }
 0x219   :  { %570 = vpow2.f32 %v303_v22  ;;  %v293_v27 = vsub.f32 %v700_v33, %v281_v25  ;;  %vm390_vm6 = vcmp.eq.s32.totalorder %v346_v0, %v381_v11 }
 0x21a   :  { %572 = vpow2.f32 %v297_v24 }
 0x21b   :  { %v565_v28 = vpop.eup %564  ;;  %v305_v29 = vmul.f32 1.442695, %v293_v27 }
 0x21c   :  { %313 = vadd.xlane.f32.xlu0 %v565_v28  ;;  %v286_v30 = vpop.permute.xlu1 %285  ;;  %v567_v37 = vpop.eup %566  ;;  %v224_v28 = vld [vmem:[#allocation3 + $0x30] sm:$0xff] }
 0x21d   :  { %574 = vpow2.f32 %v305_v29  ;;  %v294_v36 = vsub.f32 %v706_v35, %v286_v30 }
 0x21f   :  { %v307_v40 = vmul.f32 1.442695, %v294_v36  ;;  %v569_v48 = vpop.eup %568 }
 0x220   :  { %309 = vadd.xlane.f32.xlu0 %v567_v37  ;;  %v366_v42 = vpop.permute.xlu1 %365  ;;  %v350_v37 = vld [vmem:[#allocation4] sm:$0xff] }
 0x221   :  { %576 = vpow2.f32 %v307_v40  ;;  %vm385_vm1 = vcmp.eq.s32.totalorder %v346_v0, %v366_v42 }
 0x222   :  { %v392_v7 = vsel %vm385_vm1, %v691_v26, 0.0 }
 0x223   :  { %v571_v56 = vpop.eup %570 }
 0x224   :  { %315 = vadd.xlane.f32.xlu0 %v569_v48  ;;  %317 = vadd.xlane.f32.xlu1 %v571_v56  ;;  %v369_v57 = vpop.permute.xlu1 %368  ;;  %v573_v63 = vpop.eup %572 }
 0x225   :  { %vm386_vm2 = vcmp.eq.s32.totalorder %v346_v0, %v369_v57  ;;  %v351_v57 = vld [vmem:[#allocation4 + $0x8] sm:$0xff] }
 0x226   :  { %v393_v10 = vsel %vm386_vm2, %v703_v34, 0.0  ;;  %v236_v34 = vmul.f32 1.442695, %v227_v45 }
 0x227   :  { %v575_v3 = vpop.eup %574 }
 0x228   :  { %319 = vadd.xlane.f32.xlu0 %v575_v3  ;;  %v372_v4 = vpop.permute.xlu1 %371  ;;  %311 = vadd.xlane.f32.xlu1 %v573_v63  ;;  %578 = vpow2.f32 %v236_v34  ;;  %v352_v3 = vld [vmem:[#allocation4 + $0x10] sm:$0xff] }
 0x229   :  { %vm387_vm3 = vcmp.eq.s32.totalorder %v346_v0, %v372_v4 }
 0x22a   :  { %v394_v9 = vsel %vm387_vm3, %v689_v23, 0.0  ;;  %v397_v23 = vsel %vm390_vm6, %v700_v33, 0.0  ;;  %v240_v33 = vmul.f32 1.442695, %v229_v55  ;;  %v222_v55 = vld [vmem:[#allocation3 + $0x20] sm:$0xff] }
 0x22b   :  { %v577_v5 = vpop.eup %576 }
 0x22c   :  { %399 = vadd.xlane.f32.xlu0 %v392_v7  ;;  %v378_v8 = vpop.permute.xlu1 %377  ;;  %321 = vadd.xlane.f32.xlu1 %v577_v5 }
 0x22d   :  { %vm389_vm5 = vcmp.eq.s32.totalorder %v346_v0, %v378_v8  ;;  %v353_v8 = vld [vmem:[#allocation4 + $0x18] sm:$0xff] }
 0x22e   :  { %v396_v13 = vsel %vm389_vm5, %v695_v31, 0.0  ;;  %v232_v31 = vmul.f32 1.442695, %v225_v47  ;;  %v218_v47 = vld [vmem:[#allocation3] sm:$0xff] }
 0x230   :  { %403 = vadd.xlane.f32.xlu0 %v394_v9  ;;  %401 = vadd.xlane.f32.xlu1 %v393_v10  ;;  %v384_v12 = vpop.permute.xlu1 %383  ;;  %580 = vpow2.f32 %v232_v31 }
 0x231   :  { %vm391_vm7 = vcmp.eq.s32.totalorder %v346_v0, %v384_v12  ;;  %582 = vpow2.f32 %v238_v32  ;;  %v354_v12 = vld [vmem:[#allocation4 + $0x20] sm:$0xff] }
 0x232   :  { %v398_v26 = vsel %vm391_vm7, %v706_v35, 0.0  ;;  %v242_v35 = vmul.f32 1.442695, %v230_v60  ;;  %584 = vpow2.f32 %v240_v33  ;;  %v579_v39 = vpop.eup %578 }
 0x233   :  { %v248_v44 = vmul.f32 %v579_v39, %v220_v41  ;;  %v430_v39 = vld [vmem:[#allocation2] sm:$0xff]  ;;  %v432_v41 = vld [vmem:[#allocation2 + $0x10] sm:$0xff] }
 0x234   :  { %407 = vadd.xlane.f32.xlu0 %v396_v13  ;;  %405 = vadd.xlane.f32.xlu1 %v395_v14  ;;  %586 = vpow2.f32 %v242_v35  ;;  %v355_v35 = vld [vmem:[#allocation4 + $0x28] sm:$0xff] }
 0x235   :  { %588 = vpow2.f32 %v234_v38  ;;  %v356_v38 = vld [vmem:[#allocation4 + $0x30] sm:$0xff] }
 0x236   :  { %590 = vpow2.f32 %v244_v43 }
 0x238   :  { %411 = vadd.xlane.f32.xlu0 %v398_v26  ;;  %409 = vadd.xlane.f32.xlu1 %v397_v23 }
 0x23a   :  { %v581_v45 = vpop.eup %580 }
 0x23b   :  { %v583_v51 = vpop.eup %582  ;;  %v246_v52 = vmul.f32 %v581_v45, %v218_v47 }
 0x23c   :  { %v585_v53 = vpop.eup %584  ;;  %v249_v62 = vmul.f32 %v583_v51, %v221_v58 }
 0x23d   :  { %v250_v61 = vmul.f32 %v585_v53, %v222_v55 }
 0x23e   :  { %v587_v60 = vpop.eup %586 }
 0x23f   :  { %v589_v1 = vpop.eup %588  ;;  %v251_v22 = vmul.f32 %v587_v60, %v223_v17 }
 0x240   :  { %v247_v21 = vmul.f32 %v589_v1, %v219_v16  ;;  %v591_v24 = vpop.eup %590 }
 0x241   :  { %v252_v40 = vmul.f32 %v591_v24, %v224_v28 }
 0x2a9   :  { %v314_v46 = vpop.xlane.xlu0 %313 }
 0x2aa   :  { %v325_v49 = vadd.f32 %v314_v46, %v248_v44 }
 0x2ac   :  { %333 = vst.msk [vmem:[#allocation3 + $0x10] sm:$0xff] %vm22_vm0, %v325_v49 }
 0x2ad   :  { %v310_v54 = vpop.xlane.xlu0 %309 }
 0x2ae   :  { %v323_v59 = vadd.f32 %v310_v54, %v246_v52 }
 0x2b0   :  { %331 = vst.msk [vmem:[#allocation3] sm:$0xff] %vm22_vm0, %v323_v59  ;;  %v434_v59 = vld [vmem:[#allocation2 + $0x20] sm:$0xff] }
 0x2b1   :  { %v318_v2 = vpop.xlane.xlu1 %317  ;;  %v316_v15 = vpop.xlane.xlu0 %315 }
 0x2b2   :  { %v327_v18 = vadd.f32 %v318_v2, %v250_v61  ;;  %v326_v19 = vadd.f32 %v316_v15, %v249_v62  ;;  %v433_v62 = vld [vmem:[#allocation2 + $0x18] sm:$0xff] }
 0x2b3   :  { %v439_v20 = vld [vmem:[#allocation3 + $0x10] sm:$0xff] }
 0x2b4   :  { %335 = vst.msk [vmem:[#allocation3 + $0x20] sm:$0xff] %vm22_vm0, %v327_v18  ;;  %334 = vst.msk [vmem:[#allocation3 + $0x18] sm:$0xff] %vm22_vm0, %v326_v19  ;;  %592 = vlog2.f32 %v439_v20  ;;  %v431_v20 = vld [vmem:[#allocation2 + $0x8] sm:$0xff] }
 0x2b5   :  { %v312_v25 = vpop.xlane.xlu1 %311  ;;  %v320_v27 = vpop.xlane.xlu0 %319 }
 0x2b6   :  { %v324_v29 = vadd.f32 %v312_v25, %v247_v21  ;;  %v328_v30 = vadd.f32 %v320_v27, %v251_v22  ;;  %v435_v25 = vld [vmem:[#allocation2 + $0x28] sm:$0xff] }
 0x2b7   :  { %v437_v36 = vld [vmem:[#allocation3] sm:$0xff] }
 0x2b8   :  { %594 = vlog2.f32 %v437_v36  ;;  %332 = vst.msk [vmem:[#allocation3 + $0x8] sm:$0xff] %vm22_vm0, %v324_v29  ;;  %336 = vst.msk [vmem:[#allocation3 + $0x28] sm:$0xff] %vm22_vm0, %v328_v30 }
 0x2b9   :  { %v322_v42 = vpop.xlane.xlu1 %321  ;;  %v400_v48 = vpop.xlane.xlu0 %399 }
 0x2ba   :  { %v329_v50 = vadd.f32 %v322_v42, %v252_v40  ;;  %v413_v56 = vadd.f32 %v400_v48, %v350_v37  ;;  %v436_v42 = vld [vmem:[#allocation2 + $0x30] sm:$0xff] }
 0x2bb   :  { %v441_v63 = vld [vmem:[#allocation3 + $0x20] sm:$0xff]  ;;  %v440_v0 = vld [vmem:[#allocation3 + $0x18] sm:$0xff] }
 0x2bc   :  { %596 = vlog2.f32 %v441_v63  ;;  %337 = vst.msk [vmem:[#allocation3 + $0x30] sm:$0xff] %vm22_vm0, %v329_v50  ;;  %420 = vst.msk [vmem:[#allocation4] sm:$0xff] %vm22_vm0, %v413_v56 }
 0x2bd   :  { %598 = vlog2.f32 %v440_v0  ;;  %v402_v4 = vpop.xlane.xlu1 %401  ;;  %v404_v5 = vpop.xlane.xlu0 %403 }
 0x2be   :  { %v414_v6 = vadd.f32 %v402_v4, %v351_v57  ;;  %v415_v7 = vadd.f32 %v404_v5, %v352_v3  ;;  %v593_v9 = vpop.eup %592 }
 0x2bf   :  { %v438_v10 = vld [vmem:[#allocation3 + $0x8] sm:$0xff]  ;;  %v449_v23 = vmul.f32 0.6931472, %v593_v9 }
 0x2c0   :  { %v442_v11 = vld [vmem:[#allocation3 + $0x28] sm:$0xff]  ;;  %600 = vlog2.f32 %v438_v10  ;;  %421 = vst.msk [vmem:[#allocation4 + $0x8] sm:$0xff] %vm22_vm0, %v414_v6  ;;  %422 = vst.msk [vmem:[#allocation4 + $0x10] sm:$0xff] %vm22_vm0, %v415_v7 }
 0x2c1   :  { %602 = vlog2.f32 %v442_v11  ;;  %v406_v13 = vpop.xlane.xlu1 %405  ;;  %v408_v14 = vpop.xlane.xlu0 %407  ;;  %v460_v49 = vadd.f32 %v449_v23, %v432_v41 }
 0x2c2   :  { %v595_v26 = vpop.eup %594  ;;  %v416_v34 = vadd.f32 %v406_v13, %v353_v8  ;;  %v417_v31 = vadd.f32 %v408_v14, %v354_v12 }
 0x2c3   :  { %v443_v32 = vld [vmem:[#allocation3 + $0x30] sm:$0xff]  ;;  %v445_v33 = vmul.f32 0.6931472, %v595_v26  ;;  %v465_v47 = vld [vmem:[#allocation4] sm:$0xff] }
 0x2c4   :  { %604 = vlog2.f32 %v443_v32  ;;  %423 = vst.msk [vmem:[#allocation4 + $0x18] sm:$0xff] %vm22_vm0, %v416_v34  ;;  %424 = vst.msk [vmem:[#allocation4 + $0x20] sm:$0xff] %vm22_vm0, %v417_v31 }
 0x2c5   :  { %v458_v43 = vadd.f32 %v445_v33, %v430_v39  ;;  %v410_v44 = vpop.xlane.xlu1 %409  ;;  %v412_v45 = vpop.xlane.xlu0 %411 }
 0x2c6   :  { %v597_v46 = vpop.eup %596  ;;  %v418_v51 = vadd.f32 %v410_v44, %v355_v35  ;;  %v419_v52 = vadd.f32 %v412_v45, %v356_v38 }
 0x2c7   :  { %v599_v53 = vpop.eup %598  ;;  %v472_v54 = vsub.f32 %v458_v43, %v465_v47  ;;  %v467_v55 = vld [vmem:[#allocation4 + $0x10] sm:$0xff]  ;;  %v453_v58 = vmul.f32 0.6931472, %v597_v46  ;;  %v466_v29 = vld [vmem:[#allocation4 + $0x8] sm:$0xff] }
 0x2c8   :  { %v474_v60 = vsub.f32 %v460_v49, %v467_v55  ;;  %v451_v61 = vmul.f32 0.6931472, %v599_v53  ;;  %425 = vst.msk [vmem:[#allocation4 + $0x28] sm:$0xff] %vm22_vm0, %v418_v51  ;;  %426 = vst.msk [vmem:[#allocation4 + $0x30] sm:$0xff] %vm22_vm0, %v419_v52 }
 0x2c9   :  { %479 = vst.msk [vmem:[%s896_s4] sm:$0xff] %vm22_vm0, %v472_v54  ;;  %v462_v1 = vadd.f32 %v453_v58, %v434_v59 }
 0x2ca   :  { %v601_v2 = vpop.eup %600  ;;  %481 = vst.msk [vmem:[%s896_s4 + $0x10] sm:$0xff] %vm22_vm0, %v474_v60  ;;  %v461_v15 = vadd.f32 %v451_v61, %v433_v62 }
 0x2cb   :  { %v603_v16 = vpop.eup %602  ;;  %v447_v17 = vmul.f32 0.6931472, %v601_v2  ;;  %v468_v18 = vld [vmem:[#allocation4 + $0x18] sm:$0xff]  ;;  %v469_v19 = vld [vmem:[#allocation4 + $0x20] sm:$0xff] }
 0x2cc   :  { %v475_v21 = vsub.f32 %v461_v15, %v468_v18  ;;  %v476_v22 = vsub.f32 %v462_v1, %v469_v19  ;;  %v455_v24 = vmul.f32 0.6931472, %v603_v16 }
 0x2cd   :  { %v459_v27 = vadd.f32 %v447_v17, %v431_v20 }
 0x2ce   :  { %v605_v28 = vpop.eup %604  ;;  %482 = vst.msk [vmem:[%s896_s4 + $0x18] sm:$0xff] %vm22_vm0, %v475_v21  ;;  %483 = vst.msk [vmem:[%s896_s4 + $0x20] sm:$0xff] %vm22_vm0, %v476_v22  ;;  %v463_v30 = vadd.f32 %v455_v24, %v435_v25 }
 0x2cf   :  { %v473_v36 = vsub.f32 %v459_v27, %v466_v29  ;;  %v470_v37 = vld [vmem:[#allocation4 + $0x28] sm:$0xff]  ;;  %v457_v40 = vmul.f32 0.6931472, %v605_v28  ;;  %v471_v56 = vld [vmem:[#allocation4 + $0x30] sm:$0xff] }
 0x2d0   :  { %v477_v48 = vsub.f32 %v463_v30, %v470_v37 }
 0x2d1   :  { %480 = vst.msk [vmem:[%s896_s4 + $0x8] sm:$0xff] %vm22_vm0, %v473_v36  ;;  %v464_v50 = vadd.f32 %v457_v40, %v436_v42 }
 0x2d2   :  { %484 = vst.msk [vmem:[%s896_s4 + $0x28] sm:$0xff] %vm22_vm0, %v477_v48 }
 0x2d3   :  { %v478_v57 = vsub.f32 %v464_v50, %v471_v56 }
 0x2d5   :  { %485 = vst.msk [vmem:[%s896_s4 + $0x30] sm:$0xff] %vm22_vm0, %v478_v57 }

// kernel: encoder_decoder_train.6
= control target key start
LH: loop header
LB: loop body
LE: loop exit
PB: predicated region body
PF: predicated region fallthrough
CT: control target
= control target key end

     0   :  { %v1450_v1 = vmov 0   ;;  %v1451_v33 = vmov 0.0|0.0   ;;  %s2094_s1 = inlined_call_operand.vmem [shape: bf16[128,512], index: 1, kind: input, shape index: {}]   ;;  %s2095_s0 = inlined_call_operand.vmem [shape: f32[8,8,512], index: 0, kind: input, shape index: {}]   ;;  %s2096_s3 = inlined_call_operand.vmem [shape: f32[8,128], index: 3, kind: output, shape index: {1}]   ;;  %s2097_s2 = inlined_call_operand.vmem [shape: f32[8,128], index: 2, kind: output, shape index: {0}]  }
   0x1   :  { %v1475_v0 = vld [vmem:[%s2094_s1 + $0x4] ss:$16 sps:$4 sm:$0xff]   ;;  %251 = vmatprep.mubr.bf16.mxu0 %v1450_v1  ;;  %292 = vmatprep.mubr.bf16.mxu1 %v1450_v1  ;;  %v1482_v2 = vld [vmem:[%s2094_s1] ss:$16 sps:$4 sm:$0xff]   ;;  %v1505_v6 = vld [vmem:[%s2094_s1 + $0xc] ss:$16 sps:$4 sm:$0xff]  }
   0x2   :  { %219 = vmatprep.subr.bf16.mxu0 %v1475_v0  ;;  %v1488_v3 = vld [vmem:[%s2094_s1 + $0x24] ss:$16 sps:$4 sm:$0xff]   ;;  %v1494_v4 = vld [vmem:[%s2094_s1 + $0x20] ss:$16 sps:$4 sm:$0xff]   ;;  %v1510_v7 = vld [vmem:[%s2094_s1 + $0x8] ss:$16 sps:$4 sm:$0xff]   ;;  %260 = vmatprep.subr.bf16.mxu1 %v1505_v6 }
   0x3   :  { %220 = vmatpush1.bf16.msra.mxu0 %v1482_v2  ;;  %v1500_v5 = vld [vmem:[%s2094_s1 + $0x44] ss:$16 sps:$4 sm:$0xff]   ;;  %v1516_v8 = vld [vmem:[%s2094_s1 + $0x40] ss:$16 sps:$4 sm:$0xff]   ;;  %261 = vmatpush1.bf16.msra.mxu1 %v1510_v7  ;;  %v1529_v10 = vld [vmem:[%s2094_s1 + $0x2c] ss:$16 sps:$4 sm:$0xff]  }
   0x4   :  { %221 = vmatprep.subr.bf16.mxu0 %v1488_v3  ;;  %v1523_v9 = vld [vmem:[%s2094_s1 + $0x64] ss:$16 sps:$4 sm:$0xff]   ;;  %v1534_v11 = vld [vmem:[%s2094_s1 + $0x28] ss:$16 sps:$4 sm:$0xff]   ;;  %262 = vmatprep.subr.bf16.mxu1 %v1529_v10  ;;  %v1541_v12 = vld [vmem:[%s2094_s1 + $0x60] ss:$16 sps:$4 sm:$0xff]  }
   0x5   :  { %v1546_v13 = vld [vmem:[%s2094_s1 + $0x84] ss:$16 sps:$4 sm:$0xff]   ;;  %v1551_v14 = vld [vmem:[%s2094_s1 + $0x4c] ss:$16 sps:$4 sm:$0xff]   ;;  %v1558_v15 = vld [vmem:[%s2094_s1 + $0x48] ss:$16 sps:$4 sm:$0xff]  }
   0x6   :  { %v1564_v16 = vld [vmem:[%s2094_s1 + $0x6c] ss:$16 sps:$4 sm:$0xff]   ;;  %v1570_v17 = vld [vmem:[%s2094_s1 + $0x80] ss:$16 sps:$4 sm:$0xff]   ;;  %v1576_v18 = vld [vmem:[%s2094_s1 + $0xa4] ss:$16 sps:$4 sm:$0xff]  }
   0x7   :  { %222 = vmatpush1.bf16.msra.mxu0 %v1494_v4  ;;  %263 = vmatpush1.bf16.msra.mxu1 %v1534_v11  ;;  %v1582_v19 = vld [vmem:[%s2094_s1 + $0x68] ss:$16 sps:$4 sm:$0xff]   ;;  %v1588_v20 = vld [vmem:[%s2094_s1 + $0x8c] ss:$16 sps:$4 sm:$0xff]   ;;  %v1594_v21 = vld [vmem:[%s2094_s1 + $0xa0] ss:$16 sps:$4 sm:$0xff]  }
   0x8   :  { %223 = vmatprep.subr.bf16.mxu0 %v1500_v5  ;;  %264 = vmatprep.subr.bf16.mxu1 %v1551_v14  ;;  %v1599_v22 = vld [vmem:[%s2094_s1 + $0xc4] ss:$16 sps:$4 sm:$0xff]   ;;  %v1606_v23 = vld [vmem:[%s2094_s1 + $0x88] ss:$16 sps:$4 sm:$0xff]   ;;  %v1612_v24 = vld [vmem:[%s2094_s1 + $0xac] ss:$16 sps:$4 sm:$0xff]  }
   0x9   :  { %v1618_v25 = vld [vmem:[%s2094_s1 + $0xc0] ss:$16 sps:$4 sm:$0xff]   ;;  %v1624_v26 = vld [vmem:[%s2094_s1 + $0xe4] ss:$16 sps:$4 sm:$0xff]   ;;  %v1630_v27 = vld [vmem:[%s2094_s1 + $0xa8] ss:$16 sps:$4 sm:$0xff]  }
   0xa   :  { %v1636_v28 = vld [vmem:[%s2094_s1 + $0xcc] ss:$16 sps:$4 sm:$0xff]   ;;  %v1642_v29 = vld [vmem:[%s2094_s1 + $0xe0] ss:$16 sps:$4 sm:$0xff]   ;;  %v1649_v30 = vld [vmem:[%s2094_s1 + $0xc8] ss:$16 sps:$4 sm:$0xff]  }
   0xb   :  { %224 = vmatpush1.bf16.msra.mxu0 %v1516_v8  ;;  %265 = vmatpush1.bf16.msra.mxu1 %v1558_v15  ;;  %v1655_v31 = vld [vmem:[%s2094_s1 + $0xec] ss:$16 sps:$4 sm:$0xff]   ;;  %v1662_v32 = vld [vmem:[%s2094_s1 + $0xe8] ss:$16 sps:$4 sm:$0xff]   ;;  %v54_v34 = vld [vmem:[%s2095_s0] sm:$0xff] }
   0xc   :  { %225 = vmatprep.subr.bf16.mxu0 %v1523_v9  ;;  %266 = vmatprep.subr.bf16.mxu1 %v1564_v16  ;;  %v55_v35 = vld [vmem:[%s2095_s0 + $0x8] sm:$0xff]  ;;  %v57_v44 = vld [vmem:[%s2095_s0 + $0x18] sm:$0xff]  ;;  %v56_v50 = vld [vmem:[%s2095_s0 + $0x10] sm:$0xff] }
   0xf   :  { %226 = vmatpush1.bf16.msra.mxu0 %v1541_v12  ;;  %267 = vmatpush1.bf16.msra.mxu1 %v1582_v19 }
  0x10   :  { %227 = vmatprep.subr.bf16.mxu0 %v1546_v13  ;;  %268 = vmatprep.subr.bf16.mxu1 %v1588_v20 }
  0x13   :  { %228 = vmatpush1.bf16.msra.mxu0 %v1570_v17  ;;  %269 = vmatpush1.bf16.msra.mxu1 %v1606_v23 }
  0x14   :  { %229 = vmatprep.subr.bf16.mxu0 %v1576_v18  ;;  %270 = vmatprep.subr.bf16.mxu1 %v1612_v24 }
  0x17   :  { %230 = vmatpush1.bf16.msra.mxu0 %v1594_v21  ;;  %271 = vmatpush1.bf16.msra.mxu1 %v1630_v27 }
  0x18   :  { %231 = vmatprep.subr.bf16.mxu0 %v1599_v22  ;;  %272 = vmatprep.subr.bf16.mxu1 %v1636_v28 }
  0x1b   :  { %232 = vmatpush1.bf16.msra.mxu0 %v1618_v25  ;;  %273 = vmatpush1.bf16.msra.mxu1 %v1649_v30 }
  0x1c   :  { %233 = vmatprep.subr.bf16.mxu0 %v1624_v26  ;;  %274 = vmatprep.subr.bf16.mxu1 %v1655_v31 }
  0x1f   :  { %234 = vmatpush1.bf16.msra.mxu0 %v1642_v29  ;;  %275 = vmatpush1.bf16.msra.mxu1 %v1662_v32 }
  0x20   :  { %335 = vmatprep.subr.bf16.mxu0 %v1475_v0  ;;  %376 = vmatprep.subr.bf16.mxu1 %v1505_v6 }
  0x22   :  { %252 = vmatmul.mubr.bf16.vlgmr.msra.gmra.mrb[0].mxu0 %v1451_v33  ;;  %293 = vmatmul.mubr.bf16.vlgmr.msra.gmra.mrb[0].mxu1 %v1451_v33 }
  0x23   :  { %336 = vmatpush1.bf16.msra.mxu0 %v1482_v2  ;;  %367 = vmatprep.mubr.bf16.mxu0 %v1450_v1 }
  0x24   :  { %337 = vmatprep.subr.bf16.mxu0 %v1488_v3  ;;  %377 = vmatpush1.bf16.msra.mxu1 %v1510_v7 }
  0x25   :  { %378 = vmatprep.subr.bf16.mxu1 %v1529_v10  ;;  %408 = vmatprep.mubr.bf16.mxu1 %v1450_v1 }
  0x27   :  { %338 = vmatpush1.bf16.msra.mxu0 %v1494_v4 }
  0x28   :  { %339 = vmatprep.subr.bf16.mxu0 %v1500_v5  ;;  %379 = vmatpush1.bf16.msra.mxu1 %v1534_v11 }
  0x29   :  { %380 = vmatprep.subr.bf16.mxu1 %v1551_v14 }
  0x2b   :  { %340 = vmatpush1.bf16.msra.mxu0 %v1516_v8 }
  0x2c   :  { %341 = vmatprep.subr.bf16.mxu0 %v1523_v9  ;;  %381 = vmatpush1.bf16.msra.mxu1 %v1558_v15 }
  0x2d   :  { %382 = vmatprep.subr.bf16.mxu1 %v1564_v16 }
  0x2f   :  { %342 = vmatpush1.bf16.msra.mxu0 %v1541_v12 }
  0x30   :  { %343 = vmatprep.subr.bf16.mxu0 %v1546_v13  ;;  %383 = vmatpush1.bf16.msra.mxu1 %v1582_v19 }
  0x31   :  { %384 = vmatprep.subr.bf16.mxu1 %v1588_v20 }
  0x33   :  { %344 = vmatpush1.bf16.msra.mxu0 %v1570_v17 }
  0x34   :  { %345 = vmatprep.subr.bf16.mxu0 %v1576_v18  ;;  %385 = vmatpush1.bf16.msra.mxu1 %v1606_v23 }
  0x35   :  { %386 = vmatprep.subr.bf16.mxu1 %v1612_v24 }
  0x37   :  { %346 = vmatpush1.bf16.msra.mxu0 %v1594_v21 }
  0x38   :  { %347 = vmatprep.subr.bf16.mxu0 %v1599_v22  ;;  %387 = vmatpush1.bf16.msra.mxu1 %v1630_v27 }
  0x39   :  { %388 = vmatprep.subr.bf16.mxu1 %v1636_v28 }
  0x3b   :  { %348 = vmatpush1.bf16.msra.mxu0 %v1618_v25 }
  0x3c   :  { %349 = vmatprep.subr.bf16.mxu0 %v1624_v26  ;;  %389 = vmatpush1.bf16.msra.mxu1 %v1649_v30 }
  0x3d   :  { %390 = vmatprep.subr.bf16.mxu1 %v1655_v31 }
  0x3f   :  { %350 = vmatpush1.bf16.msra.mxu0 %v1642_v29 }
  0x40   :  { %451 = vmatprep.subr.bf16.mxu0 %v1475_v0  ;;  %391 = vmatpush1.bf16.msra.mxu1 %v1662_v32 }
  0x41   :  { %492 = vmatprep.subr.bf16.mxu1 %v1505_v6 }
  0xf5   :  { %v253_v36 = vpop.f32.mrb[0].mxu0  ;;  %v294_v45 = vpop.f32.mrb[0].mxu1 }
  0xf6   :  { %v301_v37 = vadd.f32 %v253_v36, %v54_v34  ;;  %v255_v38 = vpop.f32.mrb[1].mxu0  ;;  %v296_v46 = vpop.f32.mrb[1].mxu1  ;;  %v303_v52 = vadd.f32 %v294_v45, %v56_v50 }
  0xf7   :  { %v302_v39 = vadd.f32 %v255_v38, %v55_v35  ;;  %v257_v40 = vpop.f32.mrb[2].mxu0  ;;  %v304_v47 = vadd.f32 %v296_v46, %v57_v44  ;;  %v298_v48 = vpop.f32.mrb[2].mxu1  ;;  %v1191_v38 = vld [vmem:[%s2095_s0 + $0x20] sm:$0xff] }
  0xf8   :  { %v1188_v41 = vmul.f32 -1.442695, %v301_v37  ;;  %v258_v42 = vpop.f32.mrb[3].mxu0  ;;  %v299_v49 = vpop.f32.mrb[3].mxu1 }
  0xf9   :  { %v1189_v43 = vmul.f32 -1.442695, %v302_v39  ;;  %v1190_v51 = vmul.f32 -1.442695, %v304_v47  ;;  %v1192_v39 = vld [vmem:[%s2095_s0 + $0x28] sm:$0xff] }
  0xfa   :  { %1290 = vpow2.f32 %v1188_v41 }
  0xfb   :  { %1292 = vpow2.f32 %v1189_v43 }
  0xfc   :  { %1294 = vpow2.f32 %v1190_v51 }
  0xfd   :  { %1296 = vtanh.f32 %v303_v52  ;;  %v1194_v52 = vld [vmem:[%s2095_s0 + $0x38] sm:$0xff] }
 0x104   :  { %v1291_v53 = vpop.eup %1290 }
 0x105   :  { %v1293_v54 = vpop.eup %1292  ;;  %v308_v55 = vadd.f32 1.0, %v1291_v53 }
 0x106   :  { %v314_v56 = vadd.f32 1.0, %v1293_v54  ;;  %v1295_v57 = vpop.eup %1294  ;;  %v1193_v54 = vld [vmem:[%s2095_s0 + $0x30] sm:$0xff] }
 0x107   :  { %1298 = vrcp.f32 %v308_v55  ;;  %v1297_v58 = vpop.eup %1296  ;;  %v321_v60 = vadd.f32 1.0, %v1295_v57 }
 0x108   :  { %1300 = vrcp.f32 %v314_v56 }
 0x109   :  { %1302 = vrcp.f32 %v321_v60 }
 0x111   :  { %v1299_v59 = vpop.eup %1298 }
 0x112   :  { %v1301_v61 = vpop.eup %1300  ;;  %v325_v62 = vmul.f32 %v1299_v59, %v1297_v58 }
 0x113   :  { %v324_v63 = vmul.f32 0.0, %v1301_v61  ;;  %v1303_v34 = vpop.eup %1302 }
 0x115   :  { %v1714_v33 = vadd.f32 %v325_v62, %v324_v63 }
 0x117   :  { %1304 = vtanh.f32 %v1714_v33 }
 0x121   :  { %v1305_v35 = vpop.eup %1304 }
 0x122   :  { %v328_v36 = vmul.f32 %v1305_v35, %v1303_v34 }
 0x124   :  { %v334_v37 = vpack.c.bf16 %v328_v36, %v328_v36 }
 0x126   :  { %368 = vmatmul.mubr.bf16.vlgmr.msra.gmra.mrb[4].mxu0 %v334_v37  ;;  %409 = vmatmul.mubr.bf16.vlgmr.msra.gmra.mrb[4].mxu1 %v334_v37 }
 0x127   :  { %452 = vmatpush1.bf16.msra.mxu0 %v1482_v2  ;;  %493 = vmatpush1.bf16.msra.mxu1 %v1510_v7 }
 0x128   :  { %453 = vmatprep.subr.bf16.mxu0 %v1488_v3  ;;  %494 = vmatprep.subr.bf16.mxu1 %v1529_v10 }
 0x129   :  { %483 = vmatprep.mubr.bf16.mxu0 %v1450_v1  ;;  %524 = vmatprep.mubr.bf16.mxu1 %v1450_v1 }
 0x12b   :  { %454 = vmatpush1.bf16.msra.mxu0 %v1494_v4  ;;  %495 = vmatpush1.bf16.msra.mxu1 %v1534_v11 }
 0x12c   :  { %455 = vmatprep.subr.bf16.mxu0 %v1500_v5  ;;  %496 = vmatprep.subr.bf16.mxu1 %v1551_v14 }
 0x12f   :  { %456 = vmatpush1.bf16.msra.mxu0 %v1516_v8  ;;  %497 = vmatpush1.bf16.msra.mxu1 %v1558_v15 }
 0x130   :  { %457 = vmatprep.subr.bf16.mxu0 %v1523_v9  ;;  %498 = vmatprep.subr.bf16.mxu1 %v1564_v16 }
 0x133   :  { %458 = vmatpush1.bf16.msra.mxu0 %v1541_v12  ;;  %499 = vmatpush1.bf16.msra.mxu1 %v1582_v19 }
 0x134   :  { %459 = vmatprep.subr.bf16.mxu0 %v1546_v13  ;;  %500 = vmatprep.subr.bf16.mxu1 %v1588_v20 }
 0x137   :  { %460 = vmatpush1.bf16.msra.mxu0 %v1570_v17  ;;  %501 = vmatpush1.bf16.msra.mxu1 %v1606_v23 }
 0x138   :  { %461 = vmatprep.subr.bf16.mxu0 %v1576_v18  ;;  %502 = vmatprep.subr.bf16.mxu1 %v1612_v24 }
 0x13b   :  { %462 = vmatpush1.bf16.msra.mxu0 %v1594_v21  ;;  %503 = vmatpush1.bf16.msra.mxu1 %v1630_v27 }
 0x13c   :  { %463 = vmatprep.subr.bf16.mxu0 %v1599_v22  ;;  %504 = vmatprep.subr.bf16.mxu1 %v1636_v28 }
 0x13f   :  { %464 = vmatpush1.bf16.msra.mxu0 %v1618_v25  ;;  %505 = vmatpush1.bf16.msra.mxu1 %v1649_v30 }
 0x140   :  { %465 = vmatprep.subr.bf16.mxu0 %v1624_v26  ;;  %506 = vmatprep.subr.bf16.mxu1 %v1655_v31 }
 0x143   :  { %466 = vmatpush1.bf16.msra.mxu0 %v1642_v29  ;;  %507 = vmatpush1.bf16.msra.mxu1 %v1662_v32 }
 0x144   :  { %567 = vmatprep.subr.bf16.mxu0 %v1475_v0  ;;  %608 = vmatprep.subr.bf16.mxu1 %v1505_v6 }
 0x1f9   :  { %v369_v40 = vpop.f32.mrb[4].mxu0  ;;  %v410_v41 = vpop.f32.mrb[4].mxu1 }
 0x1fa   :  { %v417_v42 = vadd.f32 %v1191_v38, %v369_v40  ;;  %v371_v43 = vpop.f32.mrb[5].mxu0  ;;  %v412_v44 = vpop.f32.mrb[5].mxu1  ;;  %v419_v56 = vadd.f32 %v1193_v54, %v410_v41 }
 0x1fb   :  { %v418_v45 = vadd.f32 %v1192_v39, %v371_v43  ;;  %v373_v46 = vpop.f32.mrb[6].mxu0  ;;  %v414_v47 = vpop.f32.mrb[6].mxu1  ;;  %v420_v53 = vadd.f32 %v1194_v52, %v412_v44  ;;  %v1199_v43 = vld [vmem:[%s2095_s0 + $0x48] sm:$0xff] }
 0x1fc   :  { %v1195_v48 = vmul.f32 -1.442695, %v417_v42  ;;  %v374_v49 = vpop.f32.mrb[7].mxu0  ;;  %v415_v50 = vpop.f32.mrb[7].mxu1 }
 0x1fd   :  { %v1196_v51 = vmul.f32 -1.442695, %v418_v45  ;;  %v1197_v55 = vmul.f32 -1.442695, %v420_v53 }
 0x1fe   :  { %1306 = vpow2.f32 %v1195_v48 }
 0x1ff   :  { %1308 = vpow2.f32 %v1196_v51 }
 0x200   :  { %1310 = vpow2.f32 %v1197_v55 }
 0x201   :  { %1312 = vtanh.f32 %v419_v56  ;;  %v1201_v56 = vld [vmem:[%s2095_s0 + $0x58] sm:$0xff] }
 0x208   :  { %v1307_v57 = vpop.eup %1306 }
 0x209   :  { %v1309_v58 = vpop.eup %1308  ;;  %v424_v59 = vadd.f32 1.0, %v1307_v57 }
 0x20a   :  { %v430_v60 = vadd.f32 1.0, %v1309_v58  ;;  %v1311_v61 = vpop.eup %1310  ;;  %v1200_v58 = vld [vmem:[%s2095_s0 + $0x50] sm:$0xff] }
 0x20b   :  { %1314 = vrcp.f32 %v424_v59  ;;  %v1313_v62 = vpop.eup %1312  ;;  %v437_v36 = vadd.f32 1.0, %v1311_v61 }
 0x20c   :  { %1316 = vrcp.f32 %v430_v60 }
 0x20d   :  { %1318 = vrcp.f32 %v437_v36 }
 0x215   :  { %v1315_v63 = vpop.eup %1314 }
 0x216   :  { %v1317_v34 = vpop.eup %1316  ;;  %v441_v35 = vmul.f32 %v1315_v63, %v1313_v62 }
 0x217   :  { %v440_v37 = vmul.f32 %v1317_v34, %v1714_v33  ;;  %v1319_v39 = vpop.eup %1318  ;;  %v1198_v33 = vld [vmem:[%s2095_s0 + $0x40] sm:$0xff] }
 0x219   :  { %v1764_v38 = vadd.f32 %v441_v35, %v440_v37 }
 0x21b   :  { %1320 = vtanh.f32 %v1764_v38 }
 0x225   :  { %v1321_v40 = vpop.eup %1320 }
 0x226   :  { %v444_v41 = vmul.f32 %v1321_v40, %v1319_v39 }
 0x228   :  { %v450_v42 = vpack.c.bf16 %v444_v41, %v444_v41 }
 0x22a   :  { %484 = vmatmul.mubr.bf16.vlgmr.msra.gmra.mrb[8].mxu0 %v450_v42  ;;  %525 = vmatmul.mubr.bf16.vlgmr.msra.gmra.mrb[8].mxu1 %v450_v42 }
 0x22b   :  { %568 = vmatpush1.bf16.msra.mxu0 %v1482_v2  ;;  %609 = vmatpush1.bf16.msra.mxu1 %v1510_v7 }
 0x22c   :  { %569 = vmatprep.subr.bf16.mxu0 %v1488_v3  ;;  %610 = vmatprep.subr.bf16.mxu1 %v1529_v10 }
 0x22d   :  { %599 = vmatprep.mubr.bf16.mxu0 %v1450_v1  ;;  %640 = vmatprep.mubr.bf16.mxu1 %v1450_v1 }
 0x22f   :  { %570 = vmatpush1.bf16.msra.mxu0 %v1494_v4  ;;  %611 = vmatpush1.bf16.msra.mxu1 %v1534_v11 }
 0x230   :  { %571 = vmatprep.subr.bf16.mxu0 %v1500_v5  ;;  %612 = vmatprep.subr.bf16.mxu1 %v1551_v14 }
 0x233   :  { %572 = vmatpush1.bf16.msra.mxu0 %v1516_v8  ;;  %613 = vmatpush1.bf16.msra.mxu1 %v1558_v15 }
 0x234   :  { %573 = vmatprep.subr.bf16.mxu0 %v1523_v9  ;;  %614 = vmatprep.subr.bf16.mxu1 %v1564_v16 }
 0x237   :  { %574 = vmatpush1.bf16.msra.mxu0 %v1541_v12  ;;  %615 = vmatpush1.bf16.msra.mxu1 %v1582_v19 }
 0x238   :  { %575 = vmatprep.subr.bf16.mxu0 %v1546_v13  ;;  %616 = vmatprep.subr.bf16.mxu1 %v1588_v20 }
 0x23b   :  { %576 = vmatpush1.bf16.msra.mxu0 %v1570_v17  ;;  %617 = vmatpush1.bf16.msra.mxu1 %v1606_v23 }
 0x23c   :  { %577 = vmatprep.subr.bf16.mxu0 %v1576_v18  ;;  %618 = vmatprep.subr.bf16.mxu1 %v1612_v24 }
 0x23f   :  { %578 = vmatpush1.bf16.msra.mxu0 %v1594_v21  ;;  %619 = vmatpush1.bf16.msra.mxu1 %v1630_v27 }
 0x240   :  { %579 = vmatprep.subr.bf16.mxu0 %v1599_v22  ;;  %620 = vmatprep.subr.bf16.mxu1 %v1636_v28 }
 0x243   :  { %580 = vmatpush1.bf16.msra.mxu0 %v1618_v25  ;;  %621 = vmatpush1.bf16.msra.mxu1 %v1649_v30 }
 0x244   :  { %581 = vmatprep.subr.bf16.mxu0 %v1624_v26  ;;  %622 = vmatprep.subr.bf16.mxu1 %v1655_v31 }
 0x247   :  { %582 = vmatpush1.bf16.msra.mxu0 %v1642_v29  ;;  %623 = vmatpush1.bf16.msra.mxu1 %v1662_v32 }
 0x248   :  { %683 = vmatprep.subr.bf16.mxu0 %v1475_v0  ;;  %724 = vmatprep.subr.bf16.mxu1 %v1505_v6 }
 0x2fd   :  { %v485_v44 = vpop.f32.mrb[8].mxu0  ;;  %v526_v45 = vpop.f32.mrb[8].mxu1 }
 0x2fe   :  { %v533_v46 = vadd.f32 %v1198_v33, %v485_v44  ;;  %v487_v47 = vpop.f32.mrb[9].mxu0  ;;  %v528_v48 = vpop.f32.mrb[9].mxu1  ;;  %v535_v60 = vadd.f32 %v1200_v58, %v526_v45 }
 0x2ff   :  { %v534_v49 = vadd.f32 %v1199_v43, %v487_v47  ;;  %v489_v50 = vpop.f32.mrb[10].mxu0  ;;  %v530_v51 = vpop.f32.mrb[10].mxu1  ;;  %v536_v57 = vadd.f32 %v1201_v56, %v528_v48  ;;  %v1206_v47 = vld [vmem:[%s2095_s0 + $0x68] sm:$0xff] }
 0x300   :  { %v1202_v52 = vmul.f32 -1.442695, %v533_v46  ;;  %v490_v53 = vpop.f32.mrb[11].mxu0  ;;  %v531_v54 = vpop.f32.mrb[11].mxu1 }
 0x301   :  { %v1203_v55 = vmul.f32 -1.442695, %v534_v49  ;;  %v1204_v59 = vmul.f32 -1.442695, %v536_v57 }
 0x302   :  { %1322 = vpow2.f32 %v1202_v52 }
 0x303   :  { %1324 = vpow2.f32 %v1203_v55 }
 0x304   :  { %1326 = vpow2.f32 %v1204_v59 }
 0x305   :  { %1328 = vtanh.f32 %v535_v60  ;;  %v1208_v60 = vld [vmem:[%s2095_s0 + $0x78] sm:$0xff] }
 0x30c   :  { %v1323_v61 = vpop.eup %1322 }
 0x30d   :  { %v1325_v62 = vpop.eup %1324  ;;  %v540_v63 = vadd.f32 1.0, %v1323_v61 }
 0x30e   :  { %v546_v34 = vadd.f32 1.0, %v1325_v62  ;;  %v1327_v35 = vpop.eup %1326  ;;  %v1207_v62 = vld [vmem:[%s2095_s0 + $0x70] sm:$0xff] }
 0x30f   :  { %1330 = vrcp.f32 %v540_v63  ;;  %v1329_v36 = vpop.eup %1328  ;;  %v553_v41 = vadd.f32 1.0, %v1327_v35 }
 0x310   :  { %1332 = vrcp.f32 %v546_v34 }
 0x311   :  { %1334 = vrcp.f32 %v553_v41 }
 0x319   :  { %v1331_v37 = vpop.eup %1330 }
 0x31a   :  { %v1333_v39 = vpop.eup %1332  ;;  %v557_v40 = vmul.f32 %v1331_v37, %v1329_v36 }
 0x31b   :  { %v556_v42 = vmul.f32 %v1333_v39, %v1764_v38  ;;  %v1335_v43 = vpop.eup %1334  ;;  %v1205_v38 = vld [vmem:[%s2095_s0 + $0x60] sm:$0xff] }
 0x31d   :  { %v1814_v33 = vadd.f32 %v557_v40, %v556_v42 }
 0x31f   :  { %1336 = vtanh.f32 %v1814_v33 }
 0x329   :  { %v1337_v44 = vpop.eup %1336 }
 0x32a   :  { %v560_v45 = vmul.f32 %v1337_v44, %v1335_v43 }
 0x32c   :  { %v566_v46 = vpack.c.bf16 %v560_v45, %v560_v45 }
 0x32e   :  { %600 = vmatmul.mubr.bf16.vlgmr.msra.gmra.mrb[12].mxu0 %v566_v46  ;;  %641 = vmatmul.mubr.bf16.vlgmr.msra.gmra.mrb[12].mxu1 %v566_v46 }
 0x32f   :  { %684 = vmatpush1.bf16.msra.mxu0 %v1482_v2  ;;  %725 = vmatpush1.bf16.msra.mxu1 %v1510_v7 }
 0x330   :  { %685 = vmatprep.subr.bf16.mxu0 %v1488_v3  ;;  %726 = vmatprep.subr.bf16.mxu1 %v1529_v10 }
 0x331   :  { %715 = vmatprep.mubr.bf16.mxu0 %v1450_v1  ;;  %756 = vmatprep.mubr.bf16.mxu1 %v1450_v1 }
 0x333   :  { %686 = vmatpush1.bf16.msra.mxu0 %v1494_v4  ;;  %727 = vmatpush1.bf16.msra.mxu1 %v1534_v11 }
 0x334   :  { %687 = vmatprep.subr.bf16.mxu0 %v1500_v5  ;;  %728 = vmatprep.subr.bf16.mxu1 %v1551_v14 }
 0x337   :  { %688 = vmatpush1.bf16.msra.mxu0 %v1516_v8  ;;  %729 = vmatpush1.bf16.msra.mxu1 %v1558_v15 }
 0x338   :  { %689 = vmatprep.subr.bf16.mxu0 %v1523_v9  ;;  %730 = vmatprep.subr.bf16.mxu1 %v1564_v16 }
 0x33b   :  { %690 = vmatpush1.bf16.msra.mxu0 %v1541_v12  ;;  %731 = vmatpush1.bf16.msra.mxu1 %v1582_v19 }
 0x33c   :  { %691 = vmatprep.subr.bf16.mxu0 %v1546_v13  ;;  %732 = vmatprep.subr.bf16.mxu1 %v1588_v20 }
 0x33f   :  { %692 = vmatpush1.bf16.msra.mxu0 %v1570_v17  ;;  %733 = vmatpush1.bf16.msra.mxu1 %v1606_v23 }
 0x340   :  { %693 = vmatprep.subr.bf16.mxu0 %v1576_v18  ;;  %734 = vmatprep.subr.bf16.mxu1 %v1612_v24 }
 0x343   :  { %694 = vmatpush1.bf16.msra.mxu0 %v1594_v21  ;;  %735 = vmatpush1.bf16.msra.mxu1 %v1630_v27 }
 0x344   :  { %695 = vmatprep.subr.bf16.mxu0 %v1599_v22  ;;  %736 = vmatprep.subr.bf16.mxu1 %v1636_v28 }
 0x347   :  { %696 = vmatpush1.bf16.msra.mxu0 %v1618_v25  ;;  %737 = vmatpush1.bf16.msra.mxu1 %v1649_v30 }
 0x348   :  { %697 = vmatprep.subr.bf16.mxu0 %v1624_v26  ;;  %738 = vmatprep.subr.bf16.mxu1 %v1655_v31 }
 0x34b   :  { %698 = vmatpush1.bf16.msra.mxu0 %v1642_v29  ;;  %739 = vmatpush1.bf16.msra.mxu1 %v1662_v32 }
 0x34c   :  { %799 = vmatprep.subr.bf16.mxu0 %v1475_v0  ;;  %840 = vmatprep.subr.bf16.mxu1 %v1505_v6 }
 0x401   :  { %v601_v48 = vpop.f32.mrb[12].mxu0  ;;  %v642_v49 = vpop.f32.mrb[12].mxu1 }
 0x402   :  { %v649_v50 = vadd.f32 %v1205_v38, %v601_v48  ;;  %v603_v51 = vpop.f32.mrb[13].mxu0  ;;  %v644_v52 = vpop.f32.mrb[13].mxu1  ;;  %v651_v34 = vadd.f32 %v1207_v62, %v642_v49  ;;  %v1215_v62 = vld [vmem:[%s2095_s0 + $0x98] sm:$0xff] }
 0x403   :  { %v650_v53 = vadd.f32 %v1206_v47, %v603_v51  ;;  %v605_v54 = vpop.f32.mrb[14].mxu0  ;;  %v646_v55 = vpop.f32.mrb[14].mxu1  ;;  %v652_v61 = vadd.f32 %v1208_v60, %v644_v52  ;;  %v1213_v51 = vld [vmem:[%s2095_s0 + $0x88] sm:$0xff] }
 0x404   :  { %v1209_v56 = vmul.f32 -1.442695, %v649_v50  ;;  %v606_v57 = vpop.f32.mrb[15].mxu0  ;;  %v647_v58 = vpop.f32.mrb[15].mxu1 }
 0x405   :  { %v1210_v59 = vmul.f32 -1.442695, %v650_v53  ;;  %v1211_v63 = vmul.f32 -1.442695, %v652_v61 }
 0x406   :  { %1338 = vpow2.f32 %v1209_v56 }
 0x407   :  { %1340 = vpow2.f32 %v1210_v59 }
 0x408   :  { %1342 = vpow2.f32 %v1211_v63 }
 0x409   :  { %1344 = vtanh.f32 %v651_v34  ;;  %v1214_v34 = vld [vmem:[%s2095_s0 + $0x90] sm:$0xff] }
 0x410   :  { %v1339_v35 = vpop.eup %1338 }
 0x411   :  { %v1341_v36 = vpop.eup %1340  ;;  %v656_v37 = vadd.f32 1.0, %v1339_v35 }
 0x412   :  { %v662_v39 = vadd.f32 1.0, %v1341_v36  ;;  %v1343_v40 = vpop.eup %1342 }
 0x413   :  { %1346 = vrcp.f32 %v656_v37  ;;  %v1345_v41 = vpop.eup %1344  ;;  %v669_v45 = vadd.f32 1.0, %v1343_v40 }
 0x414   :  { %1348 = vrcp.f32 %v662_v39 }
 0x415   :  { %1350 = vrcp.f32 %v669_v45 }
 0x41d   :  { %v1347_v42 = vpop.eup %1346 }
 0x41e   :  { %v1349_v43 = vpop.eup %1348  ;;  %v673_v44 = vmul.f32 %v1347_v42, %v1345_v41 }
 0x41f   :  { %v672_v46 = vmul.f32 %v1349_v43, %v1814_v33  ;;  %v1351_v47 = vpop.eup %1350  ;;  %v1212_v33 = vld [vmem:[%s2095_s0 + $0x80] sm:$0xff] }
 0x421   :  { %v1864_v38 = vadd.f32 %v673_v44, %v672_v46 }
 0x423   :  { %1352 = vtanh.f32 %v1864_v38 }
 0x42d   :  { %v1353_v48 = vpop.eup %1352 }
 0x42e   :  { %v676_v49 = vmul.f32 %v1353_v48, %v1351_v47 }
 0x430   :  { %v682_v50 = vpack.c.bf16 %v676_v49, %v676_v49 }
 0x432   :  { %716 = vmatmul.mubr.bf16.vlgmr.msra.gmra.mrb[16].mxu0 %v682_v50  ;;  %757 = vmatmul.mubr.bf16.vlgmr.msra.gmra.mrb[16].mxu1 %v682_v50 }
 0x433   :  { %800 = vmatpush1.bf16.msra.mxu0 %v1482_v2  ;;  %841 = vmatpush1.bf16.msra.mxu1 %v1510_v7 }
 0x434   :  { %801 = vmatprep.subr.bf16.mxu0 %v1488_v3  ;;  %842 = vmatprep.subr.bf16.mxu1 %v1529_v10 }
 0x435   :  { %831 = vmatprep.mubr.bf16.mxu0 %v1450_v1  ;;  %872 = vmatprep.mubr.bf16.mxu1 %v1450_v1 }
 0x437   :  { %802 = vmatpush1.bf16.msra.mxu0 %v1494_v4  ;;  %843 = vmatpush1.bf16.msra.mxu1 %v1534_v11 }
 0x438   :  { %803 = vmatprep.subr.bf16.mxu0 %v1500_v5  ;;  %844 = vmatprep.subr.bf16.mxu1 %v1551_v14 }
 0x43b   :  { %804 = vmatpush1.bf16.msra.mxu0 %v1516_v8  ;;  %845 = vmatpush1.bf16.msra.mxu1 %v1558_v15 }
 0x43c   :  { %805 = vmatprep.subr.bf16.mxu0 %v1523_v9  ;;  %846 = vmatprep.subr.bf16.mxu1 %v1564_v16 }
 0x43f   :  { %806 = vmatpush1.bf16.msra.mxu0 %v1541_v12  ;;  %847 = vmatpush1.bf16.msra.mxu1 %v1582_v19 }
 0x440   :  { %807 = vmatprep.subr.bf16.mxu0 %v1546_v13  ;;  %848 = vmatprep.subr.bf16.mxu1 %v1588_v20 }
 0x443   :  { %808 = vmatpush1.bf16.msra.mxu0 %v1570_v17  ;;  %849 = vmatpush1.bf16.msra.mxu1 %v1606_v23 }
 0x444   :  { %809 = vmatprep.subr.bf16.mxu0 %v1576_v18  ;;  %850 = vmatprep.subr.bf16.mxu1 %v1612_v24 }
 0x447   :  { %810 = vmatpush1.bf16.msra.mxu0 %v1594_v21  ;;  %851 = vmatpush1.bf16.msra.mxu1 %v1630_v27 }
 0x448   :  { %811 = vmatprep.subr.bf16.mxu0 %v1599_v22  ;;  %852 = vmatprep.subr.bf16.mxu1 %v1636_v28 }
 0x44b   :  { %812 = vmatpush1.bf16.msra.mxu0 %v1618_v25  ;;  %853 = vmatpush1.bf16.msra.mxu1 %v1649_v30 }
 0x44c   :  { %813 = vmatprep.subr.bf16.mxu0 %v1624_v26  ;;  %854 = vmatprep.subr.bf16.mxu1 %v1655_v31 }
 0x44f   :  { %814 = vmatpush1.bf16.msra.mxu0 %v1642_v29  ;;  %855 = vmatpush1.bf16.msra.mxu1 %v1662_v32 }
 0x450   :  { %915 = vmatprep.subr.bf16.mxu0 %v1475_v0  ;;  %956 = vmatprep.subr.bf16.mxu1 %v1505_v6 }
 0x505   :  { %v717_v52 = vpop.f32.mrb[16].mxu0  ;;  %v758_v53 = vpop.f32.mrb[16].mxu1 }
 0x506   :  { %v765_v54 = vadd.f32 %v1212_v33, %v717_v52  ;;  %v719_v55 = vpop.f32.mrb[17].mxu0  ;;  %v760_v56 = vpop.f32.mrb[17].mxu1  ;;  %v767_v36 = vadd.f32 %v1214_v34, %v758_v53  ;;  %v1427_v34 = vld [vmem:[%s2094_s1 + $0x4c] ss:$16 sps:$4 sm:$0xff]  }
 0x507   :  { %v766_v57 = vadd.f32 %v1213_v51, %v719_v55  ;;  %v721_v58 = vpop.f32.mrb[18].mxu0  ;;  %v762_v59 = vpop.f32.mrb[18].mxu1  ;;  %v768_v63 = vadd.f32 %v1215_v62, %v760_v56  ;;  %v1425_v62 = vld [vmem:[%s2094_s1 + $0x28] ss:$16 sps:$4 sm:$0xff]  }
 0x508   :  { %v1216_v60 = vmul.f32 -1.442695, %v765_v54  ;;  %v722_v0 = vpop.f32.mrb[19].mxu0  ;;  %v763_v61 = vpop.f32.mrb[19].mxu1  ;;  %v1420_v59 = vld [vmem:[%s2094_s1] ss:$16 sps:$4 sm:$0xff]  }
 0x509   :  { %v1217_v6 = vmul.f32 -1.442695, %v766_v57  ;;  %v1218_v35 = vmul.f32 -1.442695, %v768_v63  ;;  %v1422_v0 = vld [vmem:[%s2094_s1 + $0x24] ss:$16 sps:$4 sm:$0xff]  }
 0x50a   :  { %1354 = vpow2.f32 %v1216_v60  ;;  %v1421_v60 = vld [vmem:[%s2094_s1 + $0x8] ss:$16 sps:$4 sm:$0xff]   ;;  %v1423_v61 = vld [vmem:[%s2094_s1 + $0x2c] ss:$16 sps:$4 sm:$0xff]   ;;  %v1426_v63 = vld [vmem:[%s2094_s1 + $0x44] ss:$16 sps:$4 sm:$0xff]  }
 0x50b   :  { %1356 = vpow2.f32 %v1217_v6  ;;  %v1424_v6 = vld [vmem:[%s2094_s1 + $0x20] ss:$16 sps:$4 sm:$0xff]  }
 0x50c   :  { %1358 = vpow2.f32 %v1218_v35  ;;  %v1429_v35 = vld [vmem:[%s2094_s1 + $0x48] ss:$16 sps:$4 sm:$0xff]  }
 0x50d   :  { %1360 = vtanh.f32 %v767_v36  ;;  %v1430_v36 = vld [vmem:[%s2094_s1 + $0x64] ss:$16 sps:$4 sm:$0xff]  }
 0x514   :  { %v1355_v37 = vpop.eup %1354 }
 0x515   :  { %v1357_v39 = vpop.eup %1356  ;;  %v772_v40 = vadd.f32 1.0, %v1355_v37  ;;  %v1431_v37 = vld [vmem:[%s2094_s1 + $0x6c] ss:$16 sps:$4 sm:$0xff]  }
 0x516   :  { %v778_v41 = vadd.f32 1.0, %v1357_v39  ;;  %v1359_v42 = vpop.eup %1358  ;;  %v1432_v39 = vld [vmem:[%s2094_s1 + $0x60] ss:$16 sps:$4 sm:$0xff]  }
 0x517   :  { %1362 = vrcp.f32 %v772_v40  ;;  %v1361_v43 = vpop.eup %1360  ;;  %v785_v47 = vadd.f32 1.0, %v1359_v42  ;;  %v1433_v40 = vld [vmem:[%s2094_s1 + $0x68] ss:$16 sps:$4 sm:$0xff]   ;;  %v1435_v42 = vld [vmem:[%s2094_s1 + $0x8c] ss:$16 sps:$4 sm:$0xff]  }
 0x518   :  { %1364 = vrcp.f32 %v778_v41  ;;  %v1434_v41 = vld [vmem:[%s2094_s1 + $0x84] ss:$16 sps:$4 sm:$0xff]  }
 0x519   :  { %1366 = vrcp.f32 %v785_v47  ;;  %v1440_v47 = vld [vmem:[%s2094_s1 + $0xa0] ss:$16 sps:$4 sm:$0xff]  }
 0x521   :  { %v1363_v44 = vpop.eup %1362 }
 0x522   :  { %v1365_v45 = vpop.eup %1364  ;;  %v789_v46 = vmul.f32 %v1363_v44, %v1361_v43  ;;  %v1436_v43 = vld [vmem:[%s2094_s1 + $0x80] ss:$16 sps:$4 sm:$0xff]   ;;  %v1437_v44 = vld [vmem:[%s2094_s1 + $0x88] ss:$16 sps:$4 sm:$0xff]  }
 0x523   :  { %v788_v48 = vmul.f32 %v1365_v45, %v1864_v38  ;;  %v1367_v50 = vpop.eup %1366  ;;  %v1438_v45 = vld [vmem:[%s2094_s1 + $0xa4] ss:$16 sps:$4 sm:$0xff]  }
 0x525   :  { %v1914_v49 = vadd.f32 %v789_v46, %v788_v48  ;;  %v1439_v46 = vld [vmem:[%s2094_s1 + $0xac] ss:$16 sps:$4 sm:$0xff]   ;;  %v1441_v48 = vld [vmem:[%s2094_s1 + $0xa8] ss:$16 sps:$4 sm:$0xff]  }
 0x527   :  { %1368 = vtanh.f32 %v1914_v49 }
 0x531   :  { %v1369_v33 = vpop.eup %1368 }
 0x532   :  { %v792_v51 = vmul.f32 %v1369_v33, %v1367_v50  ;;  %v1443_v50 = vld [vmem:[%s2094_s1 + $0xcc] ss:$16 sps:$4 sm:$0xff]   ;;  %v1444_v33 = vld [vmem:[%s2094_s1 + $0xc0] ss:$16 sps:$4 sm:$0xff]  }
 0x534   :  { %v798_v52 = vpack.c.bf16 %v792_v51, %v792_v51  ;;  %v1445_v51 = vld [vmem:[%s2094_s1 + $0xc8] ss:$16 sps:$4 sm:$0xff]  }
 0x536   :  { %832 = vmatmul.mubr.bf16.vlgmr.msra.gmra.mrb[20].mxu0 %v798_v52  ;;  %873 = vmatmul.mubr.bf16.vlgmr.msra.gmra.mrb[20].mxu1 %v798_v52  ;;  %v1446_v52 = vld [vmem:[%s2094_s1 + $0xe4] ss:$16 sps:$4 sm:$0xff]  }
 0x537   :  { %916 = vmatpush1.bf16.msra.mxu0 %v1482_v2  ;;  %957 = vmatpush1.bf16.msra.mxu1 %v1510_v7  ;;  %v1418_v2 = vld [vmem:[%s2094_s1 + $0x4] ss:$16 sps:$4 sm:$0xff]  }
 0x538   :  { %917 = vmatprep.subr.bf16.mxu0 %v1488_v3  ;;  %958 = vmatprep.subr.bf16.mxu1 %v1529_v10  ;;  %v1419_v3 = vld [vmem:[%s2094_s1 + $0xc] ss:$16 sps:$4 sm:$0xff]  }
 0x539   :  { %947 = vmatprep.mubr.bf16.mxu0 %v1450_v1  ;;  %988 = vmatprep.mubr.bf16.mxu1 %v1450_v1 }
 0x53b   :  { %918 = vmatpush1.bf16.msra.mxu0 %v1494_v4  ;;  %959 = vmatpush1.bf16.msra.mxu1 %v1534_v11  ;;  %v1219_v4 = vld [vmem:[%s2095_s0 + $0xa0] sm:$0xff] }
 0x53c   :  { %919 = vmatprep.subr.bf16.mxu0 %v1500_v5  ;;  %960 = vmatprep.subr.bf16.mxu1 %v1551_v14  ;;  %v1220_v5 = vld [vmem:[%s2095_s0 + $0xa8] sm:$0xff] }
 0x53f   :  { %920 = vmatpush1.bf16.msra.mxu0 %v1516_v8  ;;  %961 = vmatpush1.bf16.msra.mxu1 %v1558_v15 }
 0x540   :  { %921 = vmatprep.subr.bf16.mxu0 %v1523_v9  ;;  %962 = vmatprep.subr.bf16.mxu1 %v1564_v16 }
 0x543   :  { %922 = vmatpush1.bf16.msra.mxu0 %v1541_v12  ;;  %963 = vmatpush1.bf16.msra.mxu1 %v1582_v19  ;;  %v1222_v19 = vld [vmem:[%s2095_s0 + $0xb8] sm:$0xff] }
 0x544   :  { %923 = vmatprep.subr.bf16.mxu0 %v1546_v13  ;;  %964 = vmatprep.subr.bf16.mxu1 %v1588_v20 }
 0x547   :  { %924 = vmatpush1.bf16.msra.mxu0 %v1570_v17  ;;  %965 = vmatpush1.bf16.msra.mxu1 %v1606_v23 }
 0x548   :  { %925 = vmatprep.subr.bf16.mxu0 %v1576_v18  ;;  %966 = vmatprep.subr.bf16.mxu1 %v1612_v24 }
 0x54b   :  { %926 = vmatpush1.bf16.msra.mxu0 %v1594_v21  ;;  %967 = vmatpush1.bf16.msra.mxu1 %v1630_v27  ;;  %v1221_v21 = vld [vmem:[%s2095_s0 + $0xb0] sm:$0xff] }
 0x54c   :  { %927 = vmatprep.subr.bf16.mxu0 %v1599_v22  ;;  %968 = vmatprep.subr.bf16.mxu1 %v1636_v28 }
 0x54f   :  { %928 = vmatpush1.bf16.msra.mxu0 %v1618_v25  ;;  %969 = vmatpush1.bf16.msra.mxu1 %v1649_v30 }
 0x550   :  { %929 = vmatprep.subr.bf16.mxu0 %v1624_v26  ;;  %970 = vmatprep.subr.bf16.mxu1 %v1655_v31 }
 0x553   :  { %930 = vmatpush1.bf16.msra.mxu0 %v1642_v29  ;;  %971 = vmatpush1.bf16.msra.mxu1 %v1662_v32 }
 0x554   :  { %1031 = vmatprep.subr.bf16.mxu0 %v1418_v2  ;;  %1072 = vmatprep.subr.bf16.mxu1 %v1419_v3  ;;  %v1447_v2 = vld [vmem:[%s2094_s1 + $0xec] ss:$16 sps:$4 sm:$0xff]   ;;  %v1448_v3 = vld [vmem:[%s2094_s1 + $0xe0] ss:$16 sps:$4 sm:$0xff]  }
 0x609   :  { %v833_v7 = vpop.f32.mrb[20].mxu0  ;;  %v874_v8 = vpop.f32.mrb[20].mxu1 }
 0x60a   :  { %v881_v9 = vadd.f32 %v1219_v4, %v833_v7  ;;  %v835_v10 = vpop.f32.mrb[21].mxu0  ;;  %v876_v11 = vpop.f32.mrb[21].mxu1  ;;  %v883_v23 = vadd.f32 %v1221_v21, %v874_v8  ;;  %v1449_v4 = vld [vmem:[%s2094_s1 + $0xe8] ss:$16 sps:$4 sm:$0xff]  }
 0x60b   :  { %v882_v12 = vadd.f32 %v1220_v5, %v835_v10  ;;  %v837_v13 = vpop.f32.mrb[22].mxu0  ;;  %v878_v14 = vpop.f32.mrb[22].mxu1  ;;  %v884_v20 = vadd.f32 %v1222_v19, %v876_v11  ;;  %v1226_v5 = vld [vmem:[%s2095_s0 + $0xc0] sm:$0xff]  ;;  %v1227_v7 = vld [vmem:[%s2095_s0 + $0xc8] sm:$0xff] }
 0x60c   :  { %v1223_v15 = vmul.f32 -1.442695, %v881_v9  ;;  %v838_v16 = vpop.f32.mrb[23].mxu0  ;;  %v879_v17 = vpop.f32.mrb[23].mxu1 }
 0x60d   :  { %v1224_v18 = vmul.f32 -1.442695, %v882_v12  ;;  %v1225_v22 = vmul.f32 -1.442695, %v884_v20  ;;  %v1229_v20 = vld [vmem:[%s2095_s0 + $0xd8] sm:$0xff] }
 0x60e   :  { %1370 = vpow2.f32 %v1223_v15 }
 0x60f   :  { %1372 = vpow2.f32 %v1224_v18 }
 0x610   :  { %1374 = vpow2.f32 %v1225_v22  ;;  %v1228_v22 = vld [vmem:[%s2095_s0 + $0xd0] sm:$0xff] }
 0x611   :  { %1376 = vtanh.f32 %v883_v23 }
 0x618   :  { %v1371_v24 = vpop.eup %1370 }
 0x619   :  { %v1373_v25 = vpop.eup %1372  ;;  %v888_v26 = vadd.f32 1.0, %v1371_v24 }
 0x61a   :  { %v894_v27 = vadd.f32 1.0, %v1373_v25  ;;  %v1375_v28 = vpop.eup %1374 }
 0x61b   :  { %1378 = vrcp.f32 %v888_v26  ;;  %v1377_v29 = vpop.eup %1376  ;;  %v901_v38 = vadd.f32 1.0, %v1375_v28 }
 0x61c   :  { %1380 = vrcp.f32 %v894_v27 }
 0x61d   :  { %1382 = vrcp.f32 %v901_v38 }
 0x625   :  { %v1379_v30 = vpop.eup %1378 }
 0x626   :  { %v1381_v31 = vpop.eup %1380  ;;  %v905_v32 = vmul.f32 %v1379_v30, %v1377_v29 }
 0x627   :  { %v904_v53 = vmul.f32 %v1381_v31, %v1914_v49  ;;  %v1383_v55 = vpop.eup %1382  ;;  %v1442_v49 = vld [vmem:[%s2094_s1 + $0xc4] ss:$16 sps:$4 sm:$0xff]  }
 0x629   :  { %v1968_v54 = vadd.f32 %v905_v32, %v904_v53 }
 0x62b   :  { %1384 = vtanh.f32 %v1968_v54 }
 0x635   :  { %v1385_v56 = vpop.eup %1384 }
 0x636   :  { %v908_v57 = vmul.f32 %v1385_v56, %v1383_v55 }
 0x638   :  { %v914_v58 = vpack.c.bf16 %v908_v57, %v908_v57 }
 0x63a   :  { %948 = vmatmul.mubr.bf16.vlgmr.msra.gmra.mrb[24].mxu0 %v914_v58  ;;  %989 = vmatmul.mubr.bf16.vlgmr.msra.gmra.mrb[24].mxu1 %v914_v58 }
 0x63b   :  { %1032 = vmatpush1.bf16.msra.mxu0 %v1420_v59  ;;  %1073 = vmatpush1.bf16.msra.mxu1 %v1421_v60 }
 0x63c   :  { %1033 = vmatprep.subr.bf16.mxu0 %v1422_v0  ;;  %1074 = vmatprep.subr.bf16.mxu1 %v1423_v61  ;;  %v1233_v0 = vld [vmem:[%s2095_s0 + $0xe0] sm:$0xff]  ;;  %v1234_v61 = vld [vmem:[%s2095_s0 + $0xe8] sm:$0xff] }
 0x63d   :  { %1063 = vmatprep.mubr.bf16.mxu0 %v1450_v1  ;;  %1104 = vmatprep.mubr.bf16.mxu1 %v1450_v1  ;;  %v1428_v1 = vld [vmem:[%s2094_s1 + $0x40] ss:$16 sps:$4 sm:$0xff]  }
 0x63f   :  { %1034 = vmatpush1.bf16.msra.mxu0 %v1424_v6  ;;  %1075 = vmatpush1.bf16.msra.mxu1 %v1425_v62 }
 0x640   :  { %1035 = vmatprep.subr.bf16.mxu0 %v1426_v63  ;;  %1076 = vmatprep.subr.bf16.mxu1 %v1427_v34 }
 0x643   :  { %1036 = vmatpush1.bf16.msra.mxu0 %v1428_v1  ;;  %1077 = vmatpush1.bf16.msra.mxu1 %v1429_v35 }
 0x644   :  { %1037 = vmatprep.subr.bf16.mxu0 %v1430_v36  ;;  %1078 = vmatprep.subr.bf16.mxu1 %v1431_v37 }
 0x647   :  { %1038 = vmatpush1.bf16.msra.mxu0 %v1432_v39  ;;  %1079 = vmatpush1.bf16.msra.mxu1 %v1433_v40 }
 0x648   :  { %1039 = vmatprep.subr.bf16.mxu0 %v1434_v41  ;;  %1080 = vmatprep.subr.bf16.mxu1 %v1435_v42  ;;  %v1236_v42 = vld [vmem:[%s2095_s0 + $0xf8] sm:$0xff] }
 0x64b   :  { %1040 = vmatpush1.bf16.msra.mxu0 %v1436_v43  ;;  %1081 = vmatpush1.bf16.msra.mxu1 %v1437_v44  ;;  %v1235_v44 = vld [vmem:[%s2095_s0 + $0xf0] sm:$0xff] }
 0x64c   :  { %1041 = vmatprep.subr.bf16.mxu0 %v1438_v45  ;;  %1082 = vmatprep.subr.bf16.mxu1 %v1439_v46 }
 0x64f   :  { %1042 = vmatpush1.bf16.msra.mxu0 %v1440_v47  ;;  %1083 = vmatpush1.bf16.msra.mxu1 %v1441_v48 }
 0x650   :  { %1043 = vmatprep.subr.bf16.mxu0 %v1442_v49  ;;  %1084 = vmatprep.subr.bf16.mxu1 %v1443_v50 }
 0x653   :  { %1044 = vmatpush1.bf16.msra.mxu0 %v1444_v33  ;;  %1085 = vmatpush1.bf16.msra.mxu1 %v1445_v51 }
 0x654   :  { %1045 = vmatprep.subr.bf16.mxu0 %v1446_v52  ;;  %1086 = vmatprep.subr.bf16.mxu1 %v1447_v2 }
 0x657   :  { %1046 = vmatpush1.bf16.msra.mxu0 %v1448_v3  ;;  %1087 = vmatpush1.bf16.msra.mxu1 %v1449_v4 }
 0x70d   :  { %v949_v8 = vpop.f32.mrb[24].mxu0  ;;  %v990_v9 = vpop.f32.mrb[24].mxu1 }
 0x70e   :  { %v997_v10 = vadd.f32 %v1226_v5, %v949_v8  ;;  %v951_v11 = vpop.f32.mrb[25].mxu0  ;;  %v992_v12 = vpop.f32.mrb[25].mxu1  ;;  %v999_v24 = vadd.f32 %v1228_v22, %v990_v9 }
 0x70f   :  { %v998_v13 = vadd.f32 %v1227_v7, %v951_v11  ;;  %v953_v14 = vpop.f32.mrb[26].mxu0  ;;  %v994_v15 = vpop.f32.mrb[26].mxu1  ;;  %v1000_v21 = vadd.f32 %v1229_v20, %v992_v12 }
 0x710   :  { %v1230_v16 = vmul.f32 -1.442695, %v997_v10  ;;  %v954_v17 = vpop.f32.mrb[27].mxu0  ;;  %v995_v18 = vpop.f32.mrb[27].mxu1 }
 0x711   :  { %v1231_v19 = vmul.f32 -1.442695, %v998_v13  ;;  %v1232_v23 = vmul.f32 -1.442695, %v1000_v21 }
 0x712   :  { %1386 = vpow2.f32 %v1230_v16 }
 0x713   :  { %1388 = vpow2.f32 %v1231_v19 }
 0x714   :  { %1390 = vpow2.f32 %v1232_v23 }
 0x715   :  { %1392 = vtanh.f32 %v999_v24 }
 0x71c   :  { %v1387_v25 = vpop.eup %1386 }
 0x71d   :  { %v1389_v26 = vpop.eup %1388  ;;  %v1004_v27 = vadd.f32 1.0, %v1387_v25 }
 0x71e   :  { %v1010_v28 = vadd.f32 1.0, %v1389_v26  ;;  %v1391_v29 = vpop.eup %1390 }
 0x71f   :  { %1394 = vrcp.f32 %v1004_v27  ;;  %v1393_v30 = vpop.eup %1392  ;;  %v1017_v53 = vadd.f32 1.0, %v1391_v29 }
 0x720   :  { %1396 = vrcp.f32 %v1010_v28 }
 0x721   :  { %1398 = vrcp.f32 %v1017_v53 }
 0x729   :  { %v1395_v31 = vpop.eup %1394 }
 0x72a   :  { %v1397_v32 = vpop.eup %1396  ;;  %v1021_v38 = vmul.f32 %v1395_v31, %v1393_v30 }
 0x72b   :  { %v1020_v55 = vmul.f32 %v1397_v32, %v1968_v54  ;;  %v1399_v57 = vpop.eup %1398 }
 0x72d   :  { %v1022_v56 = vadd.f32 %v1021_v38, %v1020_v55 }
 0x72f   :  { %1400 = vtanh.f32 %v1022_v56 }
 0x739   :  { %v1401_v58 = vpop.eup %1400 }
 0x73a   :  { %v1024_v59 = vmul.f32 %v1401_v58, %v1399_v57 }
 0x73c   :  { %v1030_v60 = vpack.c.bf16 %v1024_v59, %v1024_v59 }
 0x73e   :  { %1064 = vmatmul.mubr.bf16.vlgmr.msra.gmra.mrb[28].mxu0 %v1030_v60  ;;  %1105 = vmatmul.mubr.bf16.vlgmr.msra.gmra.mrb[28].mxu1 %v1030_v60 }
 0x811   :  { %v1065_v6 = vpop.f32.mrb[28].mxu0  ;;  %v1106_v62 = vpop.f32.mrb[28].mxu1 }
 0x812   :  { %v1113_v54 = vadd.f32 %v1233_v0, %v1065_v6  ;;  %v1067_v63 = vpop.f32.mrb[29].mxu0  ;;  %v1108_v34 = vpop.f32.mrb[29].mxu1  ;;  %v1115_v46 = vadd.f32 %v1235_v44, %v1106_v62 }
 0x813   :  { %v1114_v1 = vadd.f32 %v1234_v61, %v1067_v63  ;;  %v1069_v35 = vpop.f32.mrb[30].mxu0  ;;  %v1110_v36 = vpop.f32.mrb[30].mxu1  ;;  %v1116_v43 = vadd.f32 %v1236_v42, %v1108_v34 }
 0x814   :  { %v1237_v37 = vmul.f32 -1.442695, %v1113_v54  ;;  %v1070_v39 = vpop.f32.mrb[31].mxu0  ;;  %v1111_v40 = vpop.f32.mrb[31].mxu1 }
 0x815   :  { %v1238_v41 = vmul.f32 -1.442695, %v1114_v1  ;;  %v1239_v45 = vmul.f32 -1.442695, %v1116_v43 }
 0x816   :  { %1402 = vpow2.f32 %v1237_v37 }
 0x817   :  { %1404 = vpow2.f32 %v1238_v41 }
 0x818   :  { %1406 = vpow2.f32 %v1239_v45 }
 0x819   :  { %1408 = vtanh.f32 %v1115_v46 }
 0x820   :  { %v1403_v47 = vpop.eup %1402 }
 0x821   :  { %v1405_v48 = vpop.eup %1404  ;;  %v1120_v49 = vadd.f32 1.0, %v1403_v47 }
 0x822   :  { %v1126_v50 = vadd.f32 1.0, %v1405_v48  ;;  %v1407_v33 = vpop.eup %1406 }
 0x823   :  { %1410 = vrcp.f32 %v1120_v49  ;;  %v1409_v51 = vpop.eup %1408  ;;  %v1133_v4 = vadd.f32 1.0, %v1407_v33 }
 0x824   :  { %1412 = vrcp.f32 %v1126_v50 }
 0x825   :  { %1414 = vrcp.f32 %v1133_v4 }
 0x82d   :  { %v1411_v52 = vpop.eup %1410 }
 0x82e   :  { %v1413_v2 = vpop.eup %1412  ;;  %v1137_v3 = vmul.f32 %v1411_v52, %v1409_v51 }
 0x82f   :  { %v1136_v5 = vmul.f32 %v1413_v2, %v1022_v56  ;;  %v1415_v8 = vpop.eup %1414 }
 0x831   :  { %v1138_v7 = vadd.f32 %v1137_v3, %v1136_v5 }
 0x833   :  { %1416 = vtanh.f32 %v1138_v7  ;;  %1147 = vst [vmem:[%s2096_s3] sm:$0xff] %v1138_v7 }
 0x83d   :  { %v1417_v9 = vpop.eup %1416 }
 0x83e   :  { %v1140_v10 = vmul.f32 %v1417_v9, %v1415_v8 }
 0x840   :  { %1146 = vst [vmem:[%s2097_s2] sm:$0xff] %v1140_v10 }

</bundles_post_ra>
